<compile_context>
chip_gen: v7x
topology: tpu7x:2x2x1
jax: 0.10.0
libtpu: 0.0.40
codegen_flags: <defaults>
</compile_context>

<pallas_src>
from functools import partial

import jax
import jax.numpy as jnp
from jax import lax
from jax.experimental import pallas as pl
from jax.experimental.pallas import tpu as pltpu

SELU_ALPHA = 1.6732632423543772
SELU_SCALE = 1.0507009873554805


def _selu(x):
    # exp(min(x,0)) avoids inf intermediates in the (masked-out) positive branch.
    return SELU_SCALE * jnp.where(x > 0, x,
                                  SELU_ALPHA * (jnp.exp(jnp.minimum(x, 0.0)) - 1.0))


def _sigmoid(x):
    # tanh-form sigmoid: no inf intermediates for large |x|, tanh runs on the EUP.
    return 0.5 * (jnp.tanh(0.5 * x) + 1.0)


def sa_make_dense_kernel(x_ref, wconv_ref, bconv_ref, w1t_ref, b1_ref,
                         w2t_ref, b2_ref, wsa_ref, bsa_ref, y_ref, *, H, W):
    # x_ref:    (TB, Cin, HW)      NCHW-flat input tile (lane-dense, HW on lanes)
    # wconv_ref:(Cout, 9*Cin)      3x3 conv weight, (kh, kw, cin) minor order
    # bconv_ref:(Cout, 1)
    # w1t_ref:  (Cr, Cout), b1_ref: (Cr, 1)     channel-attention MLP (pre-transposed)
    # w2t_ref:  (Cout, Cr), b2_ref: (Cout, 1)
    # wsa_ref:  (98,)  SMEM        7x7x{avg,max} spatial-attention weights, (kh, kw, ch) order
    # bsa_ref:  (1,)   SMEM
    # y_ref:    (TB, Cin+Cout, HW) NCHW-flat output tile: [:, :Cin] = x, [:, Cin:] = features
    TB, Cin, HW = x_ref.shape
    Ctot = y_ref.shape[1]
    Cout = Ctot - Cin

    wconvT = wconv_ref[...]                                    # (Cout, 9*Cin)
    bconv = bconv_ref[...]                                     # (Cout, 1)
    w1t = w1t_ref[...]
    b1 = b1_ref[...]
    w2t = w2t_ref[...]
    b2 = b2_ref[...]
    bsa = bsa_ref[0]

    # Column-boundary masks for lane-shifted taps (hoisted out of all loops).
    w_idx = lax.broadcasted_iota(jnp.int32, (1, HW), 1) % W
    col_ok = {dw: jnp.logical_and(w_idx + dw >= 0, w_idx + dw <= W - 1)
              for dw in (-3, -2, -1, 1, 2, 3)}

    PAD3 = W + 1        # flat halo for the 3x3 taps
    PAD7 = 3 * W + 3    # flat halo for the 7x7 taps

    for t in range(TB):                                        # TB is a compile-time constant
        xf = x_ref[t]                                          # (Cin, HW) lane-dense
        # ---- DenseNet concat: pass-through channels written straight from VMEM ----
        y_ref[t, 0:Cin, :] = xf

        # ---- 3x3 "SAME" conv as ONE im2col MXU matmul (taps = flat lane shifts) ----
        zp = jnp.zeros((Cin, PAD3), jnp.float32)
        xpad = jnp.concatenate([zp, xf, zp], axis=1)           # (Cin, HW + 2*PAD3)
        taps = []
        for kh in range(3):
            for kw in range(3):
                dh, dw = kh - 1, kw - 1
                s = PAD3 + dh * W + dw                         # static slice start
                tap = xpad[:, s:s + HW]                        # (Cin, HW)
                if dw != 0:
                    tap = jnp.where(col_ok[dw], tap, 0.0)      # kill row-wrap reads
                taps.append(tap)
        patches = jnp.concatenate(taps, axis=0)                # (9*Cin, HW)
        y2 = jnp.dot(wconvT, patches,
                     preferred_element_type=jnp.float32)       # (Cout, HW) lane-dense
        y2 = _selu(y2 + bconv)

        # ---- CBAM channel attention (avg & max pooled vectors fused into one MLP) ----
        pooled = jnp.concatenate([jnp.mean(y2, axis=1, keepdims=True),
                                  jnp.max(y2, axis=1, keepdims=True)], axis=1)  # (Cout, 2)
        h = _selu(jnp.dot(w1t, pooled,
                          preferred_element_type=jnp.float32) + b1)             # (Cr, 2)
        z = jnp.dot(w2t, h,
                    preferred_element_type=jnp.float32) + b2                    # (Cout, 2)
        # z[:,0]+z[:,1] deliberately contains b2 twice == mlp(avg)+mlp(max) in the reference.
        ca = _sigmoid(z[:, 0:1] + z[:, 1:2])                   # (Cout, 1)
        y2 = y2 * ca

        # ---- CBAM spatial attention: 7x7 conv as 98 scalar-broadcast VPU FMAs ----
        smap = jnp.concatenate([jnp.mean(y2, axis=0, keepdims=True),
                                jnp.max(y2, axis=0, keepdims=True)], axis=0)    # (2, HW)
        zp7 = jnp.zeros((2, PAD7), jnp.float32)
        spad = jnp.concatenate([zp7, smap, zp7], axis=1)       # (2, HW + 2*PAD7)
        sa = jnp.zeros((1, HW), jnp.float32)
        for kh in range(7):
            for kw in range(7):
                dh, dw = kh - 3, kw - 3
                s = PAD7 + dh * W + dw
                tap = spad[:, s:s + HW]                        # (2, HW)
                if dw != 0:
                    tap = jnp.where(col_ok[dw], tap, 0.0)
                k = (kh * 7 + kw) * 2
                sa = sa + wsa_ref[k] * tap[0:1, :] + wsa_ref[k + 1] * tap[1:2, :]
        sa = _sigmoid(sa + bsa)

        # ---- lane-dense store of the new features ----
        y_ref[t, Cin:Cin + Cout, :] = (y2 * sa).astype(y_ref.dtype)


def _pick_tb(B, max_tb=8):
    """Batch tile: divides B, <= max_tb, and keeps >=2 grid steps (v7x has 2 TCs)."""
    best = 1
    for t in range(1, min(max_tb, max(1, B // 2)) + 1):
        if B % t == 0:
            best = t
    return best


def sa_make_dense(x_nchw, params, tb=None):
    """Forward pass of SA_make_dense. x_nchw: (B, Cin, H, W) f32 -> (B, Cin+Cout, H, W)."""
    B, Cin, H, W = x_nchw.shape
    Cout = params["wconv"].shape[-1]
    Cr = params["w1"].shape[-1]
    HW = H * W
    if tb is None:
        tb = _pick_tb(B)

    x_flat = x_nchw.reshape(B, Cin, HW)                        # contiguous reshape (free)

    # (9*Cin, Cout) -> (Cout, 9*Cin): matches the (kh, kw, cin) im2col row order.
    wconvT = params["wconv"].reshape(9 * Cin, Cout).T
    bconv = params["bconv"].reshape(Cout, 1)
    w1t = params["w1"].T                                       # (Cr, Cout)
    b1 = params["b1"].reshape(Cr, 1)
    w2t = params["w2"].T                                       # (Cout, Cr)
    b2 = params["b2"].reshape(Cout, 1)
    wsa = params["wsa"].reshape(7 * 7 * 2)                     # SMEM scalars
    bsa = params["bsa"].reshape(1)

    kernel = partial(sa_make_dense_kernel, H=H, W=W)

    out_flat = pl.pallas_call(
        kernel,
        out_shape=jax.ShapeDtypeStruct((B, Cin + Cout, HW), jnp.float32),
        grid=(B // tb,),
        in_specs=[
            pl.BlockSpec((tb, Cin, HW), lambda b: (b, 0, 0)),
            pl.BlockSpec((Cout, 9 * Cin), lambda b: (0, 0)),
            pl.BlockSpec((Cout, 1), lambda b: (0, 0)),
            pl.BlockSpec((Cr, Cout), lambda b: (0, 0)),
            pl.BlockSpec((Cr, 1), lambda b: (0, 0)),
            pl.BlockSpec((Cout, Cr), lambda b: (0, 0)),
            pl.BlockSpec((Cout, 1), lambda b: (0, 0)),
            pl.BlockSpec(memory_space=pltpu.MemorySpace.SMEM),
            pl.BlockSpec(memory_space=pltpu.MemorySpace.SMEM),
        ],
        out_specs=pl.BlockSpec((tb, Cin + Cout, HW), lambda b: (b, 0, 0)),
        compiler_params=pltpu.CompilerParams(
            # batch tiles are independent -> shard across TensorCores on v7x
            dimension_semantics=("parallel",),
            # tiny per-step working set; well inside v5e/v6e 128 MiB and v7x 64 MiB
            vmem_limit_bytes=32 * 1024 * 1024,
        ),
    )(x_flat, wconvT, bconv, w1t, b1, w2t, b2, wsa, bsa)

    return out_flat.reshape(B, Cin + Cout, H, W)               # contiguous reshape (free)


def reference_nchw(x_nchw, params):
    """Pure-JAX reference of the same forward pass (for a sanity check)."""
    x = jnp.transpose(x_nchw, (0, 2, 3, 1))
    Cout = params["wconv"].shape[-1]
    y = lax.conv_general_dilated(x, params["wconv"], (1, 1), "SAME",
                                 dimension_numbers=("NHWC", "HWIO", "NHWC"))
    y = _selu(y + params["bconv"].reshape(1, 1, 1, Cout))
    avg = jnp.mean(y, axis=(1, 2))
    mx = jnp.max(y, axis=(1, 2))

    def mlp(v):
        return _selu(v @ params["w1"] + params["b1"]) @ params["w2"] + params["b2"]

    ca = _sigmoid(mlp(avg) + mlp(mx))
    y = y * ca[:, None, None, :]
    smap = jnp.concatenate([jnp.mean(y, axis=-1, keepdims=True),
                            jnp.max(y, axis=-1, keepdims=True)], axis=-1)
    sa = lax.conv_general_dilated(smap, params["wsa"].reshape(7, 7, 2, 1), (1, 1), "SAME",
                                  dimension_numbers=("NHWC", "HWIO", "NHWC"))
    y = y * _sigmoid(sa + params["bsa"][0])
    out = jnp.concatenate([x, y], axis=-1)
    return jnp.transpose(out, (0, 3, 1, 2))


def init_params(key, n_channels, growth_rate, reduction=2):
    cr = max(growth_rate // reduction, 1)
    ks = jax.random.split(key, 7)
    return {
        "wconv": jax.random.normal(ks[0], (3, 3, n_channels, growth_rate), jnp.float32)
                 * (1.0 / (3 * 3 * n_channels) ** 0.5),
        "bconv": jax.random.normal(ks[1], (1, growth_rate), jnp.float32) * 0.01,
        "w1": jax.random.normal(ks[2], (growth_rate, cr), jnp.float32)
              * (1.0 / growth_rate ** 0.5),
        "b1": jax.random.normal(ks[3], (1, cr), jnp.float32) * 0.01,
        "w2": jax.random.normal(ks[4], (cr, growth_rate), jnp.float32)
              * (1.0 / cr ** 0.5),
        "b2": jax.random.normal(ks[5], (1, growth_rate), jnp.float32) * 0.01,
        "wsa": jax.random.normal(ks[6], (7 * 7 * 2,), jnp.float32)
               * (1.0 / (7 * 7 * 2) ** 0.5),
        "bsa": jnp.zeros((1,), jnp.float32),
    }


if __name__ == "__main__":
    B, Cin, H, W = 2, 4, 16, 16
    growth_rate = 8

    key = jax.random.PRNGKey(0)
    kx, kp = jax.random.split(key)
    x = jax.random.normal(kx, (B, Cin, H, W), jnp.float32)     # NCHW, like PyTorch
    params = init_params(kp, Cin, growth_rate)

    out = jax.block_until_ready(sa_make_dense(x, params))
    assert out.shape == (B, Cin + growth_rate, H, W), out.shape

    ref = jax.block_until_ready(reference_nchw(x, params))
    assert jnp.allclose(out, ref, rtol=1e-3, atol=1e-3), float(jnp.max(jnp.abs(out - ref)))

    print("KERNEL_OK")
</pallas_src>

<mosaic_0001>
module attributes {stable_mosaic.version = 11 : i64} {
  func.func @sa_make_dense_kernel(%arg0: i32, %arg1: memref<1x4x256xf32, #tpu.memory_space<vmem>>, %arg2: memref<8x36xf32, #tpu.memory_space<vmem>>, %arg3: memref<8x1xf32, #tpu.memory_space<vmem>>, %arg4: memref<4x8xf32, #tpu.memory_space<vmem>>, %arg5: memref<4x1xf32, #tpu.memory_space<vmem>>, %arg6: memref<8x4xf32, #tpu.memory_space<vmem>>, %arg7: memref<8x1xf32, #tpu.memory_space<vmem>>, %arg8: memref<98xf32, #tpu.memory_space<smem>>, %arg9: memref<1xf32, #tpu.memory_space<smem>>, %arg10: memref<1x12x256xf32, #tpu.memory_space<vmem>>) attributes {dimension_semantics = [#tpu.dimension_semantics<parallel>], iteration_bounds = array<i64: 2>, scalar_prefetch = 0 : i64, scratch_operands = 0 : i64, tpu.core_type = #tpu.core_type<tc>, window_params = [{transform_indices = @transform_0, window_bounds = array<i64: 1, 4, 256>}, {pipeline_mode = #tpu.pipeline_mode<synchronous>, transform_indices = @transform_1, window_bounds = array<i64: 8, 36>}, {pipeline_mode = #tpu.pipeline_mode<synchronous>, transform_indices = @transform_2, window_bounds = array<i64: 8, 1>}, {pipeline_mode = #tpu.pipeline_mode<synchronous>, transform_indices = @transform_3, window_bounds = array<i64: 4, 8>}, {pipeline_mode = #tpu.pipeline_mode<synchronous>, transform_indices = @transform_4, window_bounds = array<i64: 4, 1>}, {pipeline_mode = #tpu.pipeline_mode<synchronous>, transform_indices = @transform_5, window_bounds = array<i64: 8, 4>}, {pipeline_mode = #tpu.pipeline_mode<synchronous>, transform_indices = @transform_6, window_bounds = array<i64: 8, 1>}, {transform_indices = @transform_7, window_bounds = array<i64: 98>}, {transform_indices = @transform_8, window_bounds = array<i64: 1>}, {transform_indices = @transform_9, window_bounds = array<i64: 1, 12, 256>}]} {
    %c0 = arith.constant 0 : index
    %c0_0 = arith.constant 0 : index
    %0 = vector.load %arg2[%c0, %c0_0] : memref<8x36xf32, #tpu.memory_space<vmem>>, vector<8x36xf32>
    %c0_1 = arith.constant 0 : index
    %c0_2 = arith.constant 0 : index
    %1 = vector.load %arg3[%c0_1, %c0_2] : memref<8x1xf32, #tpu.memory_space<vmem>>, vector<8x1xf32>
    %c0_3 = arith.constant 0 : index
    %c0_4 = arith.constant 0 : index
    %2 = vector.load %arg4[%c0_3, %c0_4] : memref<4x8xf32, #tpu.memory_space<vmem>>, vector<4x8xf32>
    %c0_5 = arith.constant 0 : index
    %c0_6 = arith.constant 0 : index
    %3 = vector.load %arg5[%c0_5, %c0_6] : memref<4x1xf32, #tpu.memory_space<vmem>>, vector<4x1xf32>
    %c0_7 = arith.constant 0 : index
    %c0_8 = arith.constant 0 : index
    %4 = vector.load %arg6[%c0_7, %c0_8] : memref<8x4xf32, #tpu.memory_space<vmem>>, vector<8x4xf32>
    %c0_9 = arith.constant 0 : index
    %c0_10 = arith.constant 0 : index
    %5 = vector.load %arg7[%c0_9, %c0_10] : memref<8x1xf32, #tpu.memory_space<vmem>>, vector<8x1xf32>
    %c0_11 = arith.constant 0 : index
    %6 = memref.load %arg9[%c0_11] : memref<1xf32, #tpu.memory_space<smem>>
    %7 = tpu.iota {dimensions = array<i32: 1>} : vector<1x256xi32>
    %c16_i32 = arith.constant 16 : i32
    %c0_i32 = arith.constant 0 : i32
    %8 = arith.cmpi eq, %c16_i32, %c0_i32 : i32
    %c1_i32 = arith.constant 1 : i32
    %9 = arith.select %8, %c1_i32, %c16_i32 : i32
    %10 = vector.broadcast %9 : i32 to vector<1x256xi32>
    %11 = arith.remsi %7, %10 : vector<1x256xi32>
    %c0_i32_12 = arith.constant 0 : i32
    %12 = vector.broadcast %c0_i32_12 : i32 to vector<1x256xi32>
    %13 = arith.cmpi ne, %11, %12 : vector<1x256xi32>
    %c0_i32_13 = arith.constant 0 : i32
    %14 = vector.broadcast %c0_i32_13 : i32 to vector<1x256xi32>
    %15 = arith.cmpi slt, %11, %14 : vector<1x256xi32>
    %c0_i32_14 = arith.constant 0 : i32
    %16 = arith.cmpi slt, %9, %c0_i32_14 : i32
    %17 = vector.broadcast %16 : i1 to vector<1x256xi1>
    %18 = vector.broadcast %17 : vector<1x256xi1> to vector<1x256xi1>
    %19 = arith.xori %15, %18 : vector<1x256xi1>
    %20 = arith.andi %19, %13 : vector<1x256xi1>
    %21 = vector.broadcast %9 : i32 to vector<1x256xi32>
    %22 = arith.addi %11, %21 : vector<1x256xi32>
    %23 = arith.select %20, %22, %11 : vector<1x256xi1>, vector<1x256xi32>
    %c-3_i32 = arith.constant -3 : i32
    %24 = vector.broadcast %c-3_i32 : i32 to vector<1x256xi32>
    %25 = arith.addi %23, %24 : vector<1x256xi32>
    %c0_i32_15 = arith.constant 0 : i32
    %26 = vector.broadcast %c0_i32_15 : i32 to vector<1x256xi32>
    %27 = arith.cmpi sge, %25, %26 : vector<1x256xi32>
    %c-3_i32_16 = arith.constant -3 : i32
    %28 = vector.broadcast %c-3_i32_16 : i32 to vector<1x256xi32>
    %29 = arith.addi %23, %28 : vector<1x256xi32>
    %c15_i32 = arith.constant 15 : i32
    %30 = vector.broadcast %c15_i32 : i32 to vector<1x256xi32>
    %31 = arith.cmpi sle, %29, %30 : vector<1x256xi32>
    %32 = arith.andi %27, %31 : vector<1x256xi1>
    %c-2_i32 = arith.constant -2 : i32
    %33 = vector.broadcast %c-2_i32 : i32 to vector<1x256xi32>
    %34 = arith.addi %23, %33 : vector<1x256xi32>
    %c0_i32_17 = arith.constant 0 : i32
    %35 = vector.broadcast %c0_i32_17 : i32 to vector<1x256xi32>
    %36 = arith.cmpi sge, %34, %35 : vector<1x256xi32>
    %c-2_i32_18 = arith.constant -2 : i32
    %37 = vector.broadcast %c-2_i32_18 : i32 to vector<1x256xi32>
    %38 = arith.addi %23, %37 : vector<1x256xi32>
    %c15_i32_19 = arith.constant 15 : i32
    %39 = vector.broadcast %c15_i32_19 : i32 to vector<1x256xi32>
    %40 = arith.cmpi sle, %38, %39 : vector<1x256xi32>
    %41 = arith.andi %36, %40 : vector<1x256xi1>
    %c-1_i32 = arith.constant -1 : i32
    %42 = vector.broadcast %c-1_i32 : i32 to vector<1x256xi32>
    %43 = arith.addi %23, %42 : vector<1x256xi32>
    %c0_i32_20 = arith.constant 0 : i32
    %44 = vector.broadcast %c0_i32_20 : i32 to vector<1x256xi32>
    %45 = arith.cmpi sge, %43, %44 : vector<1x256xi32>
    %c-1_i32_21 = arith.constant -1 : i32
    %46 = vector.broadcast %c-1_i32_21 : i32 to vector<1x256xi32>
    %47 = arith.addi %23, %46 : vector<1x256xi32>
    %c15_i32_22 = arith.constant 15 : i32
    %48 = vector.broadcast %c15_i32_22 : i32 to vector<1x256xi32>
    %49 = arith.cmpi sle, %47, %48 : vector<1x256xi32>
    %50 = arith.andi %45, %49 : vector<1x256xi1>
    %c1_i32_23 = arith.constant 1 : i32
    %51 = vector.broadcast %c1_i32_23 : i32 to vector<1x256xi32>
    %52 = arith.addi %23, %51 : vector<1x256xi32>
    %c0_i32_24 = arith.constant 0 : i32
    %53 = vector.broadcast %c0_i32_24 : i32 to vector<1x256xi32>
    %54 = arith.cmpi sge, %52, %53 : vector<1x256xi32>
    %c1_i32_25 = arith.constant 1 : i32
    %55 = vector.broadcast %c1_i32_25 : i32 to vector<1x256xi32>
    %56 = arith.addi %23, %55 : vector<1x256xi32>
    %c15_i32_26 = arith.constant 15 : i32
    %57 = vector.broadcast %c15_i32_26 : i32 to vector<1x256xi32>
    %58 = arith.cmpi sle, %56, %57 : vector<1x256xi32>
    %59 = arith.andi %54, %58 : vector<1x256xi1>
    %c2_i32 = arith.constant 2 : i32
    %60 = vector.broadcast %c2_i32 : i32 to vector<1x256xi32>
    %61 = arith.addi %23, %60 : vector<1x256xi32>
    %c0_i32_27 = arith.constant 0 : i32
    %62 = vector.broadcast %c0_i32_27 : i32 to vector<1x256xi32>
    %63 = arith.cmpi sge, %61, %62 : vector<1x256xi32>
    %c2_i32_28 = arith.constant 2 : i32
    %64 = vector.broadcast %c2_i32_28 : i32 to vector<1x256xi32>
    %65 = arith.addi %23, %64 : vector<1x256xi32>
    %c15_i32_29 = arith.constant 15 : i32
    %66 = vector.broadcast %c15_i32_29 : i32 to vector<1x256xi32>
    %67 = arith.cmpi sle, %65, %66 : vector<1x256xi32>
    %68 = arith.andi %63, %67 : vector<1x256xi1>
    %c3_i32 = arith.constant 3 : i32
    %69 = vector.broadcast %c3_i32 : i32 to vector<1x256xi32>
    %70 = arith.addi %23, %69 : vector<1x256xi32>
    %c0_i32_30 = arith.constant 0 : i32
    %71 = vector.broadcast %c0_i32_30 : i32 to vector<1x256xi32>
    %72 = arith.cmpi sge, %70, %71 : vector<1x256xi32>
    %c3_i32_31 = arith.constant 3 : i32
    %73 = vector.broadcast %c3_i32_31 : i32 to vector<1x256xi32>
    %74 = arith.addi %23, %73 : vector<1x256xi32>
    %c15_i32_32 = arith.constant 15 : i32
    %75 = vector.broadcast %c15_i32_32 : i32 to vector<1x256xi32>
    %76 = arith.cmpi sle, %74, %75 : vector<1x256xi32>
    %77 = arith.andi %72, %76 : vector<1x256xi1>
    %c0_33 = arith.constant 0 : index
    %c0_34 = arith.constant 0 : index
    %c0_35 = arith.constant 0 : index
    %78 = vector.load %arg1[%c0_33, %c0_34, %c0_35] : memref<1x4x256xf32, #tpu.memory_space<vmem>>, vector<1x4x256xf32>
    %79 = vector.shape_cast %78 : vector<1x4x256xf32> to vector<4x256xf32>
    %c0_36 = arith.constant 0 : index
    %c0_37 = arith.constant 0 : index
    %c0_38 = arith.constant 0 : index
    %80 = vector.load %arg10[%c0_36, %c0_37, %c0_38] : memref<1x12x256xf32, #tpu.memory_space<vmem>>, vector<1x4x256xf32>
    %81 = vector.shape_cast %80 : vector<1x4x256xf32> to vector<4x256xf32>
    %82 = vector.shape_cast %79 : vector<4x256xf32> to vector<1x4x256xf32>
    tpu.vector_store %arg10[%c0_36, %c0_37, %c0_38], %82 {strides = array<i32>} : memref<1x12x256xf32, #tpu.memory_space<vmem>>, vector<1x4x256xf32>,
    %cst = arith.constant 0.000000e+00 : f32
    %83 = vector.broadcast %cst : f32 to vector<4x17xf32>
    %84 = tpu.concatenate %83, %79, %83 in 1 : vector<4x17xf32>, vector<4x256xf32>, vector<4x17xf32> -> vector<4x290xf32>
    %85 = vector.extract_strided_slice %84 {offsets = [0, 0], sizes = [4, 256], strides = [1, 1]} : vector<4x290xf32> to vector<4x256xf32>
    %cst_39 = arith.constant 0.000000e+00 : f32
    %86 = vector.shape_cast %50 : vector<1x256xi1> to vector<1x256xi1>
    %87 = vector.broadcast %86 : vector<1x256xi1> to vector<4x256xi1>
    %88 = vector.broadcast %cst_39 : f32 to vector<4x256xf32>
    %89 = arith.select %87, %85, %88 : vector<4x256xi1>, vector<4x256xf32>
    %90 = vector.extract_strided_slice %84 {offsets = [0, 1], sizes = [4, 256], strides = [1, 1]} : vector<4x290xf32> to vector<4x256xf32>
    %91 = vector.extract_strided_slice %84 {offsets = [0, 2], sizes = [4, 256], strides = [1, 1]} : vector<4x290xf32> to vector<4x256xf32>
    %cst_40 = arith.constant 0.000000e+00 : f32
    %92 = vector.shape_cast %59 : vector<1x256xi1> to vector<1x256xi1>
    %93 = vector.broadcast %92 : vector<1x256xi1> to vector<4x256xi1>
    %94 = vector.broadcast %cst_40 : f32 to vector<4x256xf32>
    %95 = arith.select %93, %91, %94 : vector<4x256xi1>, vector<4x256xf32>
    %96 = vector.extract_strided_slice %84 {offsets = [0, 16], sizes = [4, 256], strides = [1, 1]} : vector<4x290xf32> to vector<4x256xf32>
    %cst_41 = arith.constant 0.000000e+00 : f32
    %97 = vector.shape_cast %50 : vector<1x256xi1> to vector<1x256xi1>
    %98 = vector.broadcast %97 : vector<1x256xi1> to vector<4x256xi1>
    %99 = vector.broadcast %cst_41 : f32 to vector<4x256xf32>
    %100 = arith.select %98, %96, %99 : vector<4x256xi1>, vector<4x256xf32>
    %101 = vector.extract_strided_slice %84 {offsets = [0, 17], sizes = [4, 256], strides = [1, 1]} : vector<4x290xf32> to vector<4x256xf32>
    %102 = vector.extract_strided_slice %84 {offsets = [0, 18], sizes = [4, 256], strides = [1, 1]} : vector<4x290xf32> to vector<4x256xf32>
    %cst_42 = arith.constant 0.000000e+00 : f32
    %103 = vector.shape_cast %59 : vector<1x256xi1> to vector<1x256xi1>
    %104 = vector.broadcast %103 : vector<1x256xi1> to vector<4x256xi1>
    %105 = vector.broadcast %cst_42 : f32 to vector<4x256xf32>
    %106 = arith.select %104, %102, %105 : vector<4x256xi1>, vector<4x256xf32>
    %107 = vector.extract_strided_slice %84 {offsets = [0, 32], sizes = [4, 256], strides = [1, 1]} : vector<4x290xf32> to vector<4x256xf32>
    %cst_43 = arith.constant 0.000000e+00 : f32
    %108 = vector.shape_cast %50 : vector<1x256xi1> to vector<1x256xi1>
    %109 = vector.broadcast %108 : vector<1x256xi1> to vector<4x256xi1>
    %110 = vector.broadcast %cst_43 : f32 to vector<4x256xf32>
    %111 = arith.select %109, %107, %110 : vector<4x256xi1>, vector<4x256xf32>
    %112 = vector.extract_strided_slice %84 {offsets = [0, 33], sizes = [4, 256], strides = [1, 1]} : vector<4x290xf32> to vector<4x256xf32>
    %113 = vector.extract_strided_slice %84 {offsets = [0, 34], sizes = [4, 256], strides = [1, 1]} : vector<4x290xf32> to vector<4x256xf32>
    %cst_44 = arith.constant 0.000000e+00 : f32
    %114 = vector.shape_cast %59 : vector<1x256xi1> to vector<1x256xi1>
    %115 = vector.broadcast %114 : vector<1x256xi1> to vector<4x256xi1>
    %116 = vector.broadcast %cst_44 : f32 to vector<4x256xf32>
    %117 = arith.select %115, %113, %116 : vector<4x256xi1>, vector<4x256xf32>
    %118 = tpu.concatenate %89, %90, %95, %100, %101, %106, %111, %112, %117 in 0 : vector<4x256xf32>, vector<4x256xf32>, vector<4x256xf32>, vector<4x256xf32>, vector<4x256xf32>, vector<4x256xf32>, vector<4x256xf32>, vector<4x256xf32>, vector<4x256xf32> -> vector<36x256xf32>
    %cst_45 = arith.constant dense<0.000000e+00> : vector<8x256xf32>
    %119 = tpu.matmul %0, %118, %cst_45 {dimension_numbers = #tpu.dot_dimension_numbers<[1], [0], [0], [1], [0, 0, 1, 1], [], []>} : vector<8x36xf32>, vector<36x256xf32>, vector<8x256xf32> -> vector<8x256xf32>
    %120 = vector.broadcast %1 : vector<8x1xf32> to vector<8x256xf32>
    %121 = arith.addf %119, %120 : vector<8x256xf32>
    %cst_46 = arith.constant 0.000000e+00 : f32
    %122 = vector.broadcast %cst_46 : f32 to vector<8x256xf32>
    %123 = arith.cmpf ogt, %121, %122 : vector<8x256xf32>
    %cst_47 = arith.constant 0.000000e+00 : f32
    %124 = vector.broadcast %cst_47 : f32 to vector<8x256xf32>
    %125 = arith.minimumf %121, %124 : vector<8x256xf32>
    %126 = math.exp %125 : vector<8x256xf32>
    %cst_48 = arith.constant 1.000000e+00 : f32
    %127 = vector.broadcast %cst_48 : f32 to vector<8x256xf32>
    %128 = arith.subf %126, %127 : vector<8x256xf32>
    %cst_49 = arith.constant 1.67326319 : f32
    %129 = vector.broadcast %cst_49 : f32 to vector<8x256xf32>
    %130 = arith.mulf %129, %128 : vector<8x256xf32>
    %131 = arith.select %123, %121, %130 : vector<8x256xi1>, vector<8x256xf32>
    %cst_50 = arith.constant 1.05070102 : f32
    %132 = vector.broadcast %cst_50 : f32 to vector<8x256xf32>
    %133 = arith.mulf %132, %131 : vector<8x256xf32>
    %cst_51 = arith.constant dense<0.000000e+00> : vector<8xf32>
    %134 = vector.multi_reduction <add>, %133, %cst_51 [1] : vector<8x256xf32> to vector<8xf32>
    %135 = vector.shape_cast %134 : vector<8xf32> to vector<8x1xf32>
    %cst_52 = arith.constant 2.560000e+02 : f32
    %136 = vector.broadcast %cst_52 : f32 to vector<8x1xf32>
    %137 = arith.divf %135, %136 : vector<8x1xf32>
    %cst_53 = arith.constant dense<0xFF800000> : vector<8xf32>
    %138 = vector.multi_reduction <maximumf>, %133, %cst_53 [1] : vector<8x256xf32> to vector<8xf32>
    %139 = vector.shape_cast %138 : vector<8xf32> to vector<8x1xf32>
    %140 = tpu.concatenate %137, %139 in 1 : vector<8x1xf32>, vector<8x1xf32> -> vector<8x2xf32>
    %cst_54 = arith.constant dense<0.000000e+00> : vector<4x2xf32>
    %141 = tpu.matmul %2, %140, %cst_54 {dimension_numbers = #tpu.dot_dimension_numbers<[1], [0], [0], [1], [0, 0, 1, 1], [], []>} : vector<4x8xf32>, vector<8x2xf32>, vector<4x2xf32> -> vector<4x2xf32>
    %142 = vector.broadcast %3 : vector<4x1xf32> to vector<4x2xf32>
    %143 = arith.addf %141, %142 : vector<4x2xf32>
    %cst_55 = arith.constant 0.000000e+00 : f32
    %144 = vector.broadcast %cst_55 : f32 to vector<4x2xf32>
    %145 = arith.cmpf ogt, %143, %144 : vector<4x2xf32>
    %cst_56 = arith.constant 0.000000e+00 : f32
    %146 = vector.broadcast %cst_56 : f32 to vector<4x2xf32>
    %147 = arith.minimumf %143, %146 : vector<4x2xf32>
    %148 = math.exp %147 : vector<4x2xf32>
    %cst_57 = arith.constant 1.000000e+00 : f32
    %149 = vector.broadcast %cst_57 : f32 to vector<4x2xf32>
    %150 = arith.subf %148, %149 : vector<4x2xf32>
    %cst_58 = arith.constant 1.67326319 : f32
    %151 = vector.broadcast %cst_58 : f32 to vector<4x2xf32>
    %152 = arith.mulf %151, %150 : vector<4x2xf32>
    %153 = arith.select %145, %143, %152 : vector<4x2xi1>, vector<4x2xf32>
    %cst_59 = arith.constant 1.05070102 : f32
    %154 = vector.broadcast %cst_59 : f32 to vector<4x2xf32>
    %155 = arith.mulf %154, %153 : vector<4x2xf32>
    %cst_60 = arith.constant dense<0.000000e+00> : vector<8x2xf32>
    %156 = tpu.matmul %4, %155, %cst_60 {dimension_numbers = #tpu.dot_dimension_numbers<[1], [0], [0], [1], [0, 0, 1, 1], [], []>} : vector<8x4xf32>, vector<4x2xf32>, vector<8x2xf32> -> vector<8x2xf32>
    %157 = vector.broadcast %5 : vector<8x1xf32> to vector<8x2xf32>
    %158 = arith.addf %156, %157 : vector<8x2xf32>
    %159 = vector.extract_strided_slice %158 {offsets = [0, 0], sizes = [8, 1], strides = [1, 1]} : vector<8x2xf32> to vector<8x1xf32>
    %160 = vector.extract_strided_slice %158 {offsets = [0, 1], sizes = [8, 1], strides = [1, 1]} : vector<8x2xf32> to vector<8x1xf32>
    %161 = arith.addf %159, %160 : vector<8x1xf32>
    %cst_61 = arith.constant 5.000000e-01 : f32
    %162 = vector.broadcast %cst_61 : f32 to vector<8x1xf32>
    %163 = arith.mulf %162, %161 : vector<8x1xf32>
    %164 = math.tanh %163 : vector<8x1xf32>
    %cst_62 = arith.constant 1.000000e+00 : f32
    %165 = vector.broadcast %cst_62 : f32 to vector<8x1xf32>
    %166 = arith.addf %164, %165 : vector<8x1xf32>
    %cst_63 = arith.constant 5.000000e-01 : f32
    %167 = vector.broadcast %cst_63 : f32 to vector<8x1xf32>
    %168 = arith.mulf %167, %166 : vector<8x1xf32>
    %169 = vector.broadcast %168 : vector<8x1xf32> to vector<8x256xf32>
    %170 = arith.mulf %133, %169 : vector<8x256xf32>
    %cst_64 = arith.constant dense<0.000000e+00> : vector<256xf32>
    %171 = vector.multi_reduction <add>, %170, %cst_64 [0] : vector<8x256xf32> to vector<256xf32>
    %172 = vector.shape_cast %171 : vector<256xf32> to vector<1x256xf32>
    %cst_65 = arith.constant 8.000000e+00 : f32
    %173 = vector.broadcast %cst_65 : f32 to vector<1x256xf32>
    %174 = arith.divf %172, %173 : vector<1x256xf32>
    %cst_66 = arith.constant dense<0xFF800000> : vector<256xf32>
    %175 = vector.multi_reduction <maximumf>, %170, %cst_66 [0] : vector<8x256xf32> to vector<256xf32>
    %176 = vector.shape_cast %175 : vector<256xf32> to vector<1x256xf32>
    %177 = tpu.concatenate %174, %176 in 0 : vector<1x256xf32>, vector<1x256xf32> -> vector<2x256xf32>
    %cst_67 = arith.constant 0.000000e+00 : f32
    %178 = vector.broadcast %cst_67 : f32 to vector<2x51xf32>
    %179 = tpu.concatenate %178, %177, %178 in 1 : vector<2x51xf32>, vector<2x256xf32>, vector<2x51xf32> -> vector<2x358xf32>
    %cst_68 = arith.constant 0.000000e+00 : f32
    %180 = vector.broadcast %cst_68 : f32 to vector<1x256xf32>
    %181 = vector.extract_strided_slice %179 {offsets = [0, 0], sizes = [2, 256], strides = [1, 1]} : vector<2x358xf32> to vector<2x256xf32>
    %cst_69 = arith.constant 0.000000e+00 : f32
    %182 = vector.shape_cast %32 : vector<1x256xi1> to vector<1x256xi1>
    %183 = vector.broadcast %182 : vector<1x256xi1> to vector<2x256xi1>
    %184 = vector.broadcast %cst_69 : f32 to vector<2x256xf32>
    %185 = arith.select %183, %181, %184 : vector<2x256xi1>, vector<2x256xf32>
    %c0_70 = arith.constant 0 : index
    %186 = memref.load %arg8[%c0_70] : memref<98xf32, #tpu.memory_space<smem>>
    %187 = vector.extract_strided_slice %185 {offsets = [0, 0], sizes = [1, 256], strides = [1, 1]} : vector<2x256xf32> to vector<1x256xf32>
    %188 = vector.broadcast %186 : f32 to vector<1x256xf32>
    %189 = arith.mulf %188, %187 : vector<1x256xf32>
    %190 = arith.addf %180, %189 : vector<1x256xf32>
    %c1 = arith.constant 1 : index
    %191 = memref.load %arg8[%c1] : memref<98xf32, #tpu.memory_space<smem>>
    %192 = vector.extract_strided_slice %185 {offsets = [1, 0], sizes = [1, 256], strides = [1, 1]} : vector<2x256xf32> to vector<1x256xf32>
    %193 = vector.broadcast %191 : f32 to vector<1x256xf32>
    %194 = arith.mulf %193, %192 : vector<1x256xf32>
    %195 = arith.addf %190, %194 : vector<1x256xf32>
    %196 = vector.extract_strided_slice %179 {offsets = [0, 1], sizes = [2, 256], strides = [1, 1]} : vector<2x358xf32> to vector<2x256xf32>
    %cst_71 = arith.constant 0.000000e+00 : f32
    %197 = vector.shape_cast %41 : vector<1x256xi1> to vector<1x256xi1>
    %198 = vector.broadcast %197 : vector<1x256xi1> to vector<2x256xi1>
    %199 = vector.broadcast %cst_71 : f32 to vector<2x256xf32>
    %200 = arith.select %198, %196, %199 : vector<2x256xi1>, vector<2x256xf32>
    %c2 = arith.constant 2 : index
    %201 = memref.load %arg8[%c2] : memref<98xf32, #tpu.memory_space<smem>>
    %202 = vector.extract_strided_slice %200 {offsets = [0, 0], sizes = [1, 256], strides = [1, 1]} : vector<2x256xf32> to vector<1x256xf32>
    %203 = vector.broadcast %201 : f32 to vector<1x256xf32>
    %204 = arith.mulf %203, %202 : vector<1x256xf32>
    %205 = arith.addf %195, %204 : vector<1x256xf32>
    %c3 = arith.constant 3 : index
    %206 = memref.load %arg8[%c3] : memref<98xf32, #tpu.memory_space<smem>>
    %207 = vector.extract_strided_slice %200 {offsets = [1, 0], sizes = [1, 256], strides = [1, 1]} : vector<2x256xf32> to vector<1x256xf32>
    %208 = vector.broadcast %206 : f32 to vector<1x256xf32>
    %209 = arith.mulf %208, %207 : vector<1x256xf32>
    %210 = arith.addf %205, %209 : vector<1x256xf32>
    %211 = vector.extract_strided_slice %179 {offsets = [0, 2], sizes = [2, 256], strides = [1, 1]} : vector<2x358xf32> to vector<2x256xf32>
    %cst_72 = arith.constant 0.000000e+00 : f32
    %212 = vector.shape_cast %50 : vector<1x256xi1> to vector<1x256xi1>
    %213 = vector.broadcast %212 : vector<1x256xi1> to vector<2x256xi1>
    %214 = vector.broadcast %cst_72 : f32 to vector<2x256xf32>
    %215 = arith.select %213, %211, %214 : vector<2x256xi1>, vector<2x256xf32>
    %c4 = arith.constant 4 : index
    %216 = memref.load %arg8[%c4] : memref<98xf32, #tpu.memory_space<smem>>
    %217 = vector.extract_strided_slice %215 {offsets = [0, 0], sizes = [1, 256], strides = [1, 1]} : vector<2x256xf32> to vector<1x256xf32>
    %218 = vector.broadcast %216 : f32 to vector<1x256xf32>
    %219 = arith.mulf %218, %217 : vector<1x256xf32>
    %220 = arith.addf %210, %219 : vector<1x256xf32>
    %c5 = arith.constant 5 : index
    %221 = memref.load %arg8[%c5] : memref<98xf32, #tpu.memory_space<smem>>
    %222 = vector.extract_strided_slice %215 {offsets = [1, 0], sizes = [1, 256], strides = [1, 1]} : vector<2x256xf32> to vector<1x256xf32>
    %223 = vector.broadcast %221 : f32 to vector<1x256xf32>
    %224 = arith.mulf %223, %222 : vector<1x256xf32>
    %225 = arith.addf %220, %224 : vector<1x256xf32>
    %226 = vector.extract_strided_slice %179 {offsets = [0, 3], sizes = [2, 256], strides = [1, 1]} : vector<2x358xf32> to vector<2x256xf32>
    %c6 = arith.constant 6 : index
    %227 = memref.load %arg8[%c6] : memref<98xf32, #tpu.memory_space<smem>>
    %228 = vector.extract_strided_slice %226 {offsets = [0, 0], sizes = [1, 256], strides = [1, 1]} : vector<2x256xf32> to vector<1x256xf32>
    %229 = vector.broadcast %227 : f32 to vector<1x256xf32>
    %230 = arith.mulf %229, %228 : vector<1x256xf32>
    %231 = arith.addf %225, %230 : vector<1x256xf32>
    %c7 = arith.constant 7 : index
    %232 = memref.load %arg8[%c7] : memref<98xf32, #tpu.memory_space<smem>>
    %233 = vector.extract_strided_slice %226 {offsets = [1, 0], sizes = [1, 256], strides = [1, 1]} : vector<2x256xf32> to vector<1x256xf32>
    %234 = vector.broadcast %232 : f32 to vector<1x256xf32>
    %235 = arith.mulf %234, %233 : vector<1x256xf32>
    %236 = arith.addf %231, %235 : vector<1x256xf32>
    %237 = vector.extract_strided_slice %179 {offsets = [0, 4], sizes = [2, 256], strides = [1, 1]} : vector<2x358xf32> to vector<2x256xf32>
    %cst_73 = arith.constant 0.000000e+00 : f32
    %238 = vector.shape_cast %59 : vector<1x256xi1> to vector<1x256xi1>
    %239 = vector.broadcast %238 : vector<1x256xi1> to vector<2x256xi1>
    %240 = vector.broadcast %cst_73 : f32 to vector<2x256xf32>
    %241 = arith.select %239, %237, %240 : vector<2x256xi1>, vector<2x256xf32>
    %c8 = arith.constant 8 : index
    %242 = memref.load %arg8[%c8] : memref<98xf32, #tpu.memory_space<smem>>
    %243 = vector.extract_strided_slice %241 {offsets = [0, 0], sizes = [1, 256], strides = [1, 1]} : vector<2x256xf32> to vector<1x256xf32>
    %244 = vector.broadcast %242 : f32 to vector<1x256xf32>
    %245 = arith.mulf %244, %243 : vector<1x256xf32>
    %246 = arith.addf %236, %245 : vector<1x256xf32>
    %c9 = arith.constant 9 : index
    %247 = memref.load %arg8[%c9] : memref<98xf32, #tpu.memory_space<smem>>
    %248 = vector.extract_strided_slice %241 {offsets = [1, 0], sizes = [1, 256], strides = [1, 1]} : vector<2x256xf32> to vector<1x256xf32>
    %249 = vector.broadcast %247 : f32 to vector<1x256xf32>
    %250 = arith.mulf %249, %248 : vector<1x256xf32>
    %251 = arith.addf %246, %250 : vector<1x256xf32>
    %252 = vector.extract_strided_slice %179 {offsets = [0, 5], sizes = [2, 256], strides = [1, 1]} : vector<2x358xf32> to vector<2x256xf32>
    %cst_74 = arith.constant 0.000000e+00 : f32
    %253 = vector.shape_cast %68 : vector<1x256xi1> to vector<1x256xi1>
    %254 = vector.broadcast %253 : vector<1x256xi1> to vector<2x256xi1>
    %255 = vector.broadcast %cst_74 : f32 to vector<2x256xf32>
    %256 = arith.select %254, %252, %255 : vector<2x256xi1>, vector<2x256xf32>
    %c10 = arith.constant 10 : index
    %257 = memref.load %arg8[%c10] : memref<98xf32, #tpu.memory_space<smem>>
    %258 = vector.extract_strided_slice %256 {offsets = [0, 0], sizes = [1, 256], strides = [1, 1]} : vector<2x256xf32> to vector<1x256xf32>
    %259 = vector.broadcast %257 : f32 to vector<1x256xf32>
    %260 = arith.mulf %259, %258 : vector<1x256xf32>
    %261 = arith.addf %251, %260 : vector<1x256xf32>
    %c11 = arith.constant 11 : index
    %262 = memref.load %arg8[%c11] : memref<98xf32, #tpu.memory_space<smem>>
    %263 = vector.extract_strided_slice %256 {offsets = [1, 0], sizes = [1, 256], strides = [1, 1]} : vector<2x256xf32> to vector<1x256xf32>
    %264 = vector.broadcast %262 : f32 to vector<1x256xf32>
    %265 = arith.mulf %264, %263 : vector<1x256xf32>
    %266 = arith.addf %261, %265 : vector<1x256xf32>
    %267 = vector.extract_strided_slice %179 {offsets = [0, 6], sizes = [2, 256], strides = [1, 1]} : vector<2x358xf32> to vector<2x256xf32>
    %cst_75 = arith.constant 0.000000e+00 : f32
    %268 = vector.shape_cast %77 : vector<1x256xi1> to vector<1x256xi1>
    %269 = vector.broadcast %268 : vector<1x256xi1> to vector<2x256xi1>
    %270 = vector.broadcast %cst_75 : f32 to vector<2x256xf32>
    %271 = arith.select %269, %267, %270 : vector<2x256xi1>, vector<2x256xf32>
    %c12 = arith.constant 12 : index
    %272 = memref.load %arg8[%c12] : memref<98xf32, #tpu.memory_space<smem>>
    %273 = vector.extract_strided_slice %271 {offsets = [0, 0], sizes = [1, 256], strides = [1, 1]} : vector<2x256xf32> to vector<1x256xf32>
    %274 = vector.broadcast %272 : f32 to vector<1x256xf32>
    %275 = arith.mulf %274, %273 : vector<1x256xf32>
    %276 = arith.addf %266, %275 : vector<1x256xf32>
    %c13 = arith.constant 13 : index
    %277 = memref.load %arg8[%c13] : memref<98xf32, #tpu.memory_space<smem>>
    %278 = vector.extract_strided_slice %271 {offsets = [1, 0], sizes = [1, 256], strides = [1, 1]} : vector<2x256xf32> to vector<1x256xf32>
    %279 = vector.broadcast %277 : f32 to vector<1x256xf32>
    %280 = arith.mulf %279, %278 : vector<1x256xf32>
    %281 = arith.addf %276, %280 : vector<1x256xf32>
    %282 = vector.extract_strided_slice %179 {offsets = [0, 16], sizes = [2, 256], strides = [1, 1]} : vector<2x358xf32> to vector<2x256xf32>
    %cst_76 = arith.constant 0.000000e+00 : f32
    %283 = vector.shape_cast %32 : vector<1x256xi1> to vector<1x256xi1>
    %284 = vector.broadcast %283 : vector<1x256xi1> to vector<2x256xi1>
    %285 = vector.broadcast %cst_76 : f32 to vector<2x256xf32>
    %286 = arith.select %284, %282, %285 : vector<2x256xi1>, vector<2x256xf32>
    %c14 = arith.constant 14 : index
    %287 = memref.load %arg8[%c14] : memref<98xf32, #tpu.memory_space<smem>>
    %288 = vector.extract_strided_slice %286 {offsets = [0, 0], sizes = [1, 256], strides = [1, 1]} : vector<2x256xf32> to vector<1x256xf32>
    %289 = vector.broadcast %287 : f32 to vector<1x256xf32>
    %290 = arith.mulf %289, %288 : vector<1x256xf32>
    %291 = arith.addf %281, %290 : vector<1x256xf32>
    %c15 = arith.constant 15 : index
    %292 = memref.load %arg8[%c15] : memref<98xf32, #tpu.memory_space<smem>>
    %293 = vector.extract_strided_slice %286 {offsets = [1, 0], sizes = [1, 256], strides = [1, 1]} : vector<2x256xf32> to vector<1x256xf32>
    %294 = vector.broadcast %292 : f32 to vector<1x256xf32>
    %295 = arith.mulf %294, %293 : vector<1x256xf32>
    %296 = arith.addf %291, %295 : vector<1x256xf32>
    %297 = vector.extract_strided_slice %179 {offsets = [0, 17], sizes = [2, 256], strides = [1, 1]} : vector<2x358xf32> to vector<2x256xf32>
    %cst_77 = arith.constant 0.000000e+00 : f32
    %298 = vector.shape_cast %41 : vector<1x256xi1> to vector<1x256xi1>
    %299 = vector.broadcast %298 : vector<1x256xi1> to vector<2x256xi1>
    %300 = vector.broadcast %cst_77 : f32 to vector<2x256xf32>
    %301 = arith.select %299, %297, %300 : vector<2x256xi1>, vector<2x256xf32>
    %c16 = arith.constant 16 : index
    %302 = memref.load %arg8[%c16] : memref<98xf32, #tpu.memory_space<smem>>
    %303 = vector.extract_strided_slice %301 {offsets = [0, 0], sizes = [1, 256], strides = [1, 1]} : vector<2x256xf32> to vector<1x256xf32>
    %304 = vector.broadcast %302 : f32 to vector<1x256xf32>
    %305 = arith.mulf %304, %303 : vector<1x256xf32>
    %306 = arith.addf %296, %305 : vector<1x256xf32>
    %c17 = arith.constant 17 : index
    %307 = memref.load %arg8[%c17] : memref<98xf32, #tpu.memory_space<smem>>
    %308 = vector.extract_strided_slice %301 {offsets = [1, 0], sizes = [1, 256], strides = [1, 1]} : vector<2x256xf32> to vector<1x256xf32>
    %309 = vector.broadcast %307 : f32 to vector<1x256xf32>
    %310 = arith.mulf %309, %308 : vector<1x256xf32>
    %311 = arith.addf %306, %310 : vector<1x256xf32>
    %312 = vector.extract_strided_slice %179 {offsets = [0, 18], sizes = [2, 256], strides = [1, 1]} : vector<2x358xf32> to vector<2x256xf32>
    %cst_78 = arith.constant 0.000000e+00 : f32
    %313 = vector.shape_cast %50 : vector<1x256xi1> to vector<1x256xi1>
    %314 = vector.broadcast %313 : vector<1x256xi1> to vector<2x256xi1>
    %315 = vector.broadcast %cst_78 : f32 to vector<2x256xf32>
    %316 = arith.select %314, %312, %315 : vector<2x256xi1>, vector<2x256xf32>
    %c18 = arith.constant 18 : index
    %317 = memref.load %arg8[%c18] : memref<98xf32, #tpu.memory_space<smem>>
    %318 = vector.extract_strided_slice %316 {offsets = [0, 0], sizes = [1, 256], strides = [1, 1]} : vector<2x256xf32> to vector<1x256xf32>
    %319 = vector.broadcast %317 : f32 to vector<1x256xf32>
    %320 = arith.mulf %319, %318 : vector<1x256xf32>
    %321 = arith.addf %311, %320 : vector<1x256xf32>
    %c19 = arith.constant 19 : index
    %322 = memref.load %arg8[%c19] : memref<98xf32, #tpu.memory_space<smem>>
    %323 = vector.extract_strided_slice %316 {offsets = [1, 0], sizes = [1, 256], strides = [1, 1]} : vector<2x256xf32> to vector<1x256xf32>
    %324 = vector.broadcast %322 : f32 to vector<1x256xf32>
    %325 = arith.mulf %324, %323 : vector<1x256xf32>
    %326 = arith.addf %321, %325 : vector<1x256xf32>
    %327 = vector.extract_strided_slice %179 {offsets = [0, 19], sizes = [2, 256], strides = [1, 1]} : vector<2x358xf32> to vector<2x256xf32>
    %c20 = arith.constant 20 : index
    %328 = memref.load %arg8[%c20] : memref<98xf32, #tpu.memory_space<smem>>
    %329 = vector.extract_strided_slice %327 {offsets = [0, 0], sizes = [1, 256], strides = [1, 1]} : vector<2x256xf32> to vector<1x256xf32>
    %330 = vector.broadcast %328 : f32 to vector<1x256xf32>
    %331 = arith.mulf %330, %329 : vector<1x256xf32>
    %332 = arith.addf %326, %331 : vector<1x256xf32>
    %c21 = arith.constant 21 : index
    %333 = memref.load %arg8[%c21] : memref<98xf32, #tpu.memory_space<smem>>
    %334 = vector.extract_strided_slice %327 {offsets = [1, 0], sizes = [1, 256], strides = [1, 1]} : vector<2x256xf32> to vector<1x256xf32>
    %335 = vector.broadcast %333 : f32 to vector<1x256xf32>
    %336 = arith.mulf %335, %334 : vector<1x256xf32>
    %337 = arith.addf %332, %336 : vector<1x256xf32>
    %338 = vector.extract_strided_slice %179 {offsets = [0, 20], sizes = [2, 256], strides = [1, 1]} : vector<2x358xf32> to vector<2x256xf32>
    %cst_79 = arith.constant 0.000000e+00 : f32
    %339 = vector.shape_cast %59 : vector<1x256xi1> to vector<1x256xi1>
    %340 = vector.broadcast %339 : vector<1x256xi1> to vector<2x256xi1>
    %341 = vector.broadcast %cst_79 : f32 to vector<2x256xf32>
    %342 = arith.select %340, %338, %341 : vector<2x256xi1>, vector<2x256xf32>
    %c22 = arith.constant 22 : index
    %343 = memref.load %arg8[%c22] : memref<98xf32, #tpu.memory_space<smem>>
    %344 = vector.extract_strided_slice %342 {offsets = [0, 0], sizes = [1, 256], strides = [1, 1]} : vector<2x256xf32> to vector<1x256xf32>
    %345 = vector.broadcast %343 : f32 to vector<1x256xf32>
    %346 = arith.mulf %345, %344 : vector<1x256xf32>
    %347 = arith.addf %337, %346 : vector<1x256xf32>
    %c23 = arith.constant 23 : index
    %348 = memref.load %arg8[%c23] : memref<98xf32, #tpu.memory_space<smem>>
    %349 = vector.extract_strided_slice %342 {offsets = [1, 0], sizes = [1, 256], strides = [1, 1]} : vector<2x256xf32> to vector<1x256xf32>
    %350 = vector.broadcast %348 : f32 to vector<1x256xf32>
    %351 = arith.mulf %350, %349 : vector<1x256xf32>
    %352 = arith.addf %347, %351 : vector<1x256xf32>
    %353 = vector.extract_strided_slice %179 {offsets = [0, 21], sizes = [2, 256], strides = [1, 1]} : vector<2x358xf32> to vector<2x256xf32>
    %cst_80 = arith.constant 0.000000e+00 : f32
    %354 = vector.shape_cast %68 : vector<1x256xi1> to vector<1x256xi1>
    %355 = vector.broadcast %354 : vector<1x256xi1> to vector<2x256xi1>
    %356 = vector.broadcast %cst_80 : f32 to vector<2x256xf32>
    %357 = arith.select %355, %353, %356 : vector<2x256xi1>, vector<2x256xf32>
    %c24 = arith.constant 24 : index
    %358 = memref.load %arg8[%c24] : memref<98xf32, #tpu.memory_space<smem>>
    %359 = vector.extract_strided_slice %357 {offsets = [0, 0], sizes = [1, 256], strides = [1, 1]} : vector<2x256xf32> to vector<1x256xf32>
    %360 = vector.broadcast %358 : f32 to vector<1x256xf32>
    %361 = arith.mulf %360, %359 : vector<1x256xf32>
    %362 = arith.addf %352, %361 : vector<1x256xf32>
    %c25 = arith.constant 25 : index
    %363 = memref.load %arg8[%c25] : memref<98xf32, #tpu.memory_space<smem>>
    %364 = vector.extract_strided_slice %357 {offsets = [1, 0], sizes = [1, 256], strides = [1, 1]} : vector<2x256xf32> to vector<1x256xf32>
    %365 = vector.broadcast %363 : f32 to vector<1x256xf32>
    %366 = arith.mulf %365, %364 : vector<1x256xf32>
    %367 = arith.addf %362, %366 : vector<1x256xf32>
    %368 = vector.extract_strided_slice %179 {offsets = [0, 22], sizes = [2, 256], strides = [1, 1]} : vector<2x358xf32> to vector<2x256xf32>
    %cst_81 = arith.constant 0.000000e+00 : f32
    %369 = vector.shape_cast %77 : vector<1x256xi1> to vector<1x256xi1>
    %370 = vector.broadcast %369 : vector<1x256xi1> to vector<2x256xi1>
    %371 = vector.broadcast %cst_81 : f32 to vector<2x256xf32>
    %372 = arith.select %370, %368, %371 : vector<2x256xi1>, vector<2x256xf32>
    %c26 = arith.constant 26 : index
    %373 = memref.load %arg8[%c26] : memref<98xf32, #tpu.memory_space<smem>>
    %374 = vector.extract_strided_slice %372 {offsets = [0, 0], sizes = [1, 256], strides = [1, 1]} : vector<2x256xf32> to vector<1x256xf32>
    %375 = vector.broadcast %373 : f32 to vector<1x256xf32>
    %376 = arith.mulf %375, %374 : vector<1x256xf32>
    %377 = arith.addf %367, %376 : vector<1x256xf32>
    %c27 = arith.constant 27 : index
    %378 = memref.load %arg8[%c27] : memref<98xf32, #tpu.memory_space<smem>>
    %379 = vector.extract_strided_slice %372 {offsets = [1, 0], sizes = [1, 256], strides = [1, 1]} : vector<2x256xf32> to vector<1x256xf32>
    %380 = vector.broadcast %378 : f32 to vector<1x256xf32>
    %381 = arith.mulf %380, %379 : vector<1x256xf32>
    %382 = arith.addf %377, %381 : vector<1x256xf32>
    %383 = vector.extract_strided_slice %179 {offsets = [0, 32], sizes = [2, 256], strides = [1, 1]} : vector<2x358xf32> to vector<2x256xf32>
    %cst_82 = arith.constant 0.000000e+00 : f32
    %384 = vector.shape_cast %32 : vector<1x256xi1> to vector<1x256xi1>
    %385 = vector.broadcast %384 : vector<1x256xi1> to vector<2x256xi1>
    %386 = vector.broadcast %cst_82 : f32 to vector<2x256xf32>
    %387 = arith.select %385, %383, %386 : vector<2x256xi1>, vector<2x256xf32>
    %c28 = arith.constant 28 : index
    %388 = memref.load %arg8[%c28] : memref<98xf32, #tpu.memory_space<smem>>
    %389 = vector.extract_strided_slice %387 {offsets = [0, 0], sizes = [1, 256], strides = [1, 1]} : vector<2x256xf32> to vector<1x256xf32>
    %390 = vector.broadcast %388 : f32 to vector<1x256xf32>
    %391 = arith.mulf %390, %389 : vector<1x256xf32>
    %392 = arith.addf %382, %391 : vector<1x256xf32>
    %c29 = arith.constant 29 : index
    %393 = memref.load %arg8[%c29] : memref<98xf32, #tpu.memory_space<smem>>
    %394 = vector.extract_strided_slice %387 {offsets = [1, 0], sizes = [1, 256], strides = [1, 1]} : vector<2x256xf32> to vector<1x256xf32>
    %395 = vector.broadcast %393 : f32 to vector<1x256xf32>
    %396 = arith.mulf %395, %394 : vector<1x256xf32>
    %397 = arith.addf %392, %396 : vector<1x256xf32>
    %398 = vector.extract_strided_slice %179 {offsets = [0, 33], sizes = [2, 256], strides = [1, 1]} : vector<2x358xf32> to vector<2x256xf32>
    %cst_83 = arith.constant 0.000000e+00 : f32
    %399 = vector.shape_cast %41 : vector<1x256xi1> to vector<1x256xi1>
    %400 = vector.broadcast %399 : vector<1x256xi1> to vector<2x256xi1>
    %401 = vector.broadcast %cst_83 : f32 to vector<2x256xf32>
    %402 = arith.select %400, %398, %401 : vector<2x256xi1>, vector<2x256xf32>
    %c30 = arith.constant 30 : index
    %403 = memref.load %arg8[%c30] : memref<98xf32, #tpu.memory_space<smem>>
    %404 = vector.extract_strided_slice %402 {offsets = [0, 0], sizes = [1, 256], strides = [1, 1]} : vector<2x256xf32> to vector<1x256xf32>
    %405 = vector.broadcast %403 : f32 to vector<1x256xf32>
    %406 = arith.mulf %405, %404 : vector<1x256xf32>
    %407 = arith.addf %397, %406 : vector<1x256xf32>
    %c31 = arith.constant 31 : index
    %408 = memref.load %arg8[%c31] : memref<98xf32, #tpu.memory_space<smem>>
    %409 = vector.extract_strided_slice %402 {offsets = [1, 0], sizes = [1, 256], strides = [1, 1]} : vector<2x256xf32> to vector<1x256xf32>
    %410 = vector.broadcast %408 : f32 to vector<1x256xf32>
    %411 = arith.mulf %410, %409 : vector<1x256xf32>
    %412 = arith.addf %407, %411 : vector<1x256xf32>
    %413 = vector.extract_strided_slice %179 {offsets = [0, 34], sizes = [2, 256], strides = [1, 1]} : vector<2x358xf32> to vector<2x256xf32>
    %cst_84 = arith.constant 0.000000e+00 : f32
    %414 = vector.shape_cast %50 : vector<1x256xi1> to vector<1x256xi1>
    %415 = vector.broadcast %414 : vector<1x256xi1> to vector<2x256xi1>
    %416 = vector.broadcast %cst_84 : f32 to vector<2x256xf32>
    %417 = arith.select %415, %413, %416 : vector<2x256xi1>, vector<2x256xf32>
    %c32 = arith.constant 32 : index
    %418 = memref.load %arg8[%c32] : memref<98xf32, #tpu.memory_space<smem>>
    %419 = vector.extract_strided_slice %417 {offsets = [0, 0], sizes = [1, 256], strides = [1, 1]} : vector<2x256xf32> to vector<1x256xf32>
    %420 = vector.broadcast %418 : f32 to vector<1x256xf32>
    %421 = arith.mulf %420, %419 : vector<1x256xf32>
    %422 = arith.addf %412, %421 : vector<1x256xf32>
    %c33 = arith.constant 33 : index
    %423 = memref.load %arg8[%c33] : memref<98xf32, #tpu.memory_space<smem>>
    %424 = vector.extract_strided_slice %417 {offsets = [1, 0], sizes = [1, 256], strides = [1, 1]} : vector<2x256xf32> to vector<1x256xf32>
    %425 = vector.broadcast %423 : f32 to vector<1x256xf32>
    %426 = arith.mulf %425, %424 : vector<1x256xf32>
    %427 = arith.addf %422, %426 : vector<1x256xf32>
    %428 = vector.extract_strided_slice %179 {offsets = [0, 35], sizes = [2, 256], strides = [1, 1]} : vector<2x358xf32> to vector<2x256xf32>
    %c34 = arith.constant 34 : index
    %429 = memref.load %arg8[%c34] : memref<98xf32, #tpu.memory_space<smem>>
    %430 = vector.extract_strided_slice %428 {offsets = [0, 0], sizes = [1, 256], strides = [1, 1]} : vector<2x256xf32> to vector<1x256xf32>
    %431 = vector.broadcast %429 : f32 to vector<1x256xf32>
    %432 = arith.mulf %431, %430 : vector<1x256xf32>
    %433 = arith.addf %427, %432 : vector<1x256xf32>
    %c35 = arith.constant 35 : index
    %434 = memref.load %arg8[%c35] : memref<98xf32, #tpu.memory_space<smem>>
    %435 = vector.extract_strided_slice %428 {offsets = [1, 0], sizes = [1, 256], strides = [1, 1]} : vector<2x256xf32> to vector<1x256xf32>
    %436 = vector.broadcast %434 : f32 to vector<1x256xf32>
    %437 = arith.mulf %436, %435 : vector<1x256xf32>
    %438 = arith.addf %433, %437 : vector<1x256xf32>
    %439 = vector.extract_strided_slice %179 {offsets = [0, 36], sizes = [2, 256], strides = [1, 1]} : vector<2x358xf32> to vector<2x256xf32>
    %cst_85 = arith.constant 0.000000e+00 : f32
    %440 = vector.shape_cast %59 : vector<1x256xi1> to vector<1x256xi1>
    %441 = vector.broadcast %440 : vector<1x256xi1> to vector<2x256xi1>
    %442 = vector.broadcast %cst_85 : f32 to vector<2x256xf32>
    %443 = arith.select %441, %439, %442 : vector<2x256xi1>, vector<2x256xf32>
    %c36 = arith.constant 36 : index
    %444 = memref.load %arg8[%c36] : memref<98xf32, #tpu.memory_space<smem>>
    %445 = vector.extract_strided_slice %443 {offsets = [0, 0], sizes = [1, 256], strides = [1, 1]} : vector<2x256xf32> to vector<1x256xf32>
    %446 = vector.broadcast %444 : f32 to vector<1x256xf32>
    %447 = arith.mulf %446, %445 : vector<1x256xf32>
    %448 = arith.addf %438, %447 : vector<1x256xf32>
    %c37 = arith.constant 37 : index
    %449 = memref.load %arg8[%c37] : memref<98xf32, #tpu.memory_space<smem>>
    %450 = vector.extract_strided_slice %443 {offsets = [1, 0], sizes = [1, 256], strides = [1, 1]} : vector<2x256xf32> to vector<1x256xf32>
    %451 = vector.broadcast %449 : f32 to vector<1x256xf32>
    %452 = arith.mulf %451, %450 : vector<1x256xf32>
    %453 = arith.addf %448, %452 : vector<1x256xf32>
    %454 = vector.extract_strided_slice %179 {offsets = [0, 37], sizes = [2, 256], strides = [1, 1]} : vector<2x358xf32> to vector<2x256xf32>
    %cst_86 = arith.constant 0.000000e+00 : f32
    %455 = vector.shape_cast %68 : vector<1x256xi1> to vector<1x256xi1>
    %456 = vector.broadcast %455 : vector<1x256xi1> to vector<2x256xi1>
    %457 = vector.broadcast %cst_86 : f32 to vector<2x256xf32>
    %458 = arith.select %456, %454, %457 : vector<2x256xi1>, vector<2x256xf32>
    %c38 = arith.constant 38 : index
    %459 = memref.load %arg8[%c38] : memref<98xf32, #tpu.memory_space<smem>>
    %460 = vector.extract_strided_slice %458 {offsets = [0, 0], sizes = [1, 256], strides = [1, 1]} : vector<2x256xf32> to vector<1x256xf32>
    %461 = vector.broadcast %459 : f32 to vector<1x256xf32>
    %462 = arith.mulf %461, %460 : vector<1x256xf32>
    %463 = arith.addf %453, %462 : vector<1x256xf32>
    %c39 = arith.constant 39 : index
    %464 = memref.load %arg8[%c39] : memref<98xf32, #tpu.memory_space<smem>>
    %465 = vector.extract_strided_slice %458 {offsets = [1, 0], sizes = [1, 256], strides = [1, 1]} : vector<2x256xf32> to vector<1x256xf32>
    %466 = vector.broadcast %464 : f32 to vector<1x256xf32>
    %467 = arith.mulf %466, %465 : vector<1x256xf32>
    %468 = arith.addf %463, %467 : vector<1x256xf32>
    %469 = vector.extract_strided_slice %179 {offsets = [0, 38], sizes = [2, 256], strides = [1, 1]} : vector<2x358xf32> to vector<2x256xf32>
    %cst_87 = arith.constant 0.000000e+00 : f32
    %470 = vector.shape_cast %77 : vector<1x256xi1> to vector<1x256xi1>
    %471 = vector.broadcast %470 : vector<1x256xi1> to vector<2x256xi1>
    %472 = vector.broadcast %cst_87 : f32 to vector<2x256xf32>
    %473 = arith.select %471, %469, %472 : vector<2x256xi1>, vector<2x256xf32>
    %c40 = arith.constant 40 : index
    %474 = memref.load %arg8[%c40] : memref<98xf32, #tpu.memory_space<smem>>
    %475 = vector.extract_strided_slice %473 {offsets = [0, 0], sizes = [1, 256], strides = [1, 1]} : vector<2x256xf32> to vector<1x256xf32>
    %476 = vector.broadcast %474 : f32 to vector<1x256xf32>
    %477 = arith.mulf %476, %475 : vector<1x256xf32>
    %478 = arith.addf %468, %477 : vector<1x256xf32>
    %c41 = arith.constant 41 : index
    %479 = memref.load %arg8[%c41] : memref<98xf32, #tpu.memory_space<smem>>
    %480 = vector.extract_strided_slice %473 {offsets = [1, 0], sizes = [1, 256], strides = [1, 1]} : vector<2x256xf32> to vector<1x256xf32>
    %481 = vector.broadcast %479 : f32 to vector<1x256xf32>
    %482 = arith.mulf %481, %480 : vector<1x256xf32>
    %483 = arith.addf %478, %482 : vector<1x256xf32>
    %484 = vector.extract_strided_slice %179 {offsets = [0, 48], sizes = [2, 256], strides = [1, 1]} : vector<2x358xf32> to vector<2x256xf32>
    %cst_88 = arith.constant 0.000000e+00 : f32
    %485 = vector.shape_cast %32 : vector<1x256xi1> to vector<1x256xi1>
    %486 = vector.broadcast %485 : vector<1x256xi1> to vector<2x256xi1>
    %487 = vector.broadcast %cst_88 : f32 to vector<2x256xf32>
    %488 = arith.select %486, %484, %487 : vector<2x256xi1>, vector<2x256xf32>
    %c42 = arith.constant 42 : index
    %489 = memref.load %arg8[%c42] : memref<98xf32, #tpu.memory_space<smem>>
    %490 = vector.extract_strided_slice %488 {offsets = [0, 0], sizes = [1, 256], strides = [1, 1]} : vector<2x256xf32> to vector<1x256xf32>
    %491 = vector.broadcast %489 : f32 to vector<1x256xf32>
    %492 = arith.mulf %491, %490 : vector<1x256xf32>
    %493 = arith.addf %483, %492 : vector<1x256xf32>
    %c43 = arith.constant 43 : index
    %494 = memref.load %arg8[%c43] : memref<98xf32, #tpu.memory_space<smem>>
    %495 = vector.extract_strided_slice %488 {offsets = [1, 0], sizes = [1, 256], strides = [1, 1]} : vector<2x256xf32> to vector<1x256xf32>
    %496 = vector.broadcast %494 : f32 to vector<1x256xf32>
    %497 = arith.mulf %496, %495 : vector<1x256xf32>
    %498 = arith.addf %493, %497 : vector<1x256xf32>
    %499 = vector.extract_strided_slice %179 {offsets = [0, 49], sizes = [2, 256], strides = [1, 1]} : vector<2x358xf32> to vector<2x256xf32>
    %cst_89 = arith.constant 0.000000e+00 : f32
    %500 = vector.shape_cast %41 : vector<1x256xi1> to vector<1x256xi1>
    %501 = vector.broadcast %500 : vector<1x256xi1> to vector<2x256xi1>
    %502 = vector.broadcast %cst_89 : f32 to vector<2x256xf32>
    %503 = arith.select %501, %499, %502 : vector<2x256xi1>, vector<2x256xf32>
    %c44 = arith.constant 44 : index
    %504 = memref.load %arg8[%c44] : memref<98xf32, #tpu.memory_space<smem>>
    %505 = vector.extract_strided_slice %503 {offsets = [0, 0], sizes = [1, 256], strides = [1, 1]} : vector<2x256xf32> to vector<1x256xf32>
    %506 = vector.broadcast %504 : f32 to vector<1x256xf32>
    %507 = arith.mulf %506, %505 : vector<1x256xf32>
    %508 = arith.addf %498, %507 : vector<1x256xf32>
    %c45 = arith.constant 45 : index
    %509 = memref.load %arg8[%c45] : memref<98xf32, #tpu.memory_space<smem>>
    %510 = vector.extract_strided_slice %503 {offsets = [1, 0], sizes = [1, 256], strides = [1, 1]} : vector<2x256xf32> to vector<1x256xf32>
    %511 = vector.broadcast %509 : f32 to vector<1x256xf32>
    %512 = arith.mulf %511, %510 : vector<1x256xf32>
    %513 = arith.addf %508, %512 : vector<1x256xf32>
    %514 = vector.extract_strided_slice %179 {offsets = [0, 50], sizes = [2, 256], strides = [1, 1]} : vector<2x358xf32> to vector<2x256xf32>
    %cst_90 = arith.constant 0.000000e+00 : f32
    %515 = vector.shape_cast %50 : vector<1x256xi1> to vector<1x256xi1>
    %516 = vector.broadcast %515 : vector<1x256xi1> to vector<2x256xi1>
    %517 = vector.broadcast %cst_90 : f32 to vector<2x256xf32>
    %518 = arith.select %516, %514, %517 : vector<2x256xi1>, vector<2x256xf32>
    %c46 = arith.constant 46 : index
    %519 = memref.load %arg8[%c46] : memref<98xf32, #tpu.memory_space<smem>>
    %520 = vector.extract_strided_slice %518 {offsets = [0, 0], sizes = [1, 256], strides = [1, 1]} : vector<2x256xf32> to vector<1x256xf32>
    %521 = vector.broadcast %519 : f32 to vector<1x256xf32>
    %522 = arith.mulf %521, %520 : vector<1x256xf32>
    %523 = arith.addf %513, %522 : vector<1x256xf32>
    %c47 = arith.constant 47 : index
    %524 = memref.load %arg8[%c47] : memref<98xf32, #tpu.memory_space<smem>>
    %525 = vector.extract_strided_slice %518 {offsets = [1, 0], sizes = [1, 256], strides = [1, 1]} : vector<2x256xf32> to vector<1x256xf32>
    %526 = vector.broadcast %524 : f32 to vector<1x256xf32>
    %527 = arith.mulf %526, %525 : vector<1x256xf32>
    %528 = arith.addf %523, %527 : vector<1x256xf32>
    %529 = vector.extract_strided_slice %179 {offsets = [0, 51], sizes = [2, 256], strides = [1, 1]} : vector<2x358xf32> to vector<2x256xf32>
    %c48 = arith.constant 48 : index
    %530 = memref.load %arg8[%c48] : memref<98xf32, #tpu.memory_space<smem>>
    %531 = vector.extract_strided_slice %529 {offsets = [0, 0], sizes = [1, 256], strides = [1, 1]} : vector<2x256xf32> to vector<1x256xf32>
    %532 = vector.broadcast %530 : f32 to vector<1x256xf32>
    %533 = arith.mulf %532, %531 : vector<1x256xf32>
    %534 = arith.addf %528, %533 : vector<1x256xf32>
    %c49 = arith.constant 49 : index
    %535 = memref.load %arg8[%c49] : memref<98xf32, #tpu.memory_space<smem>>
    %536 = vector.extract_strided_slice %529 {offsets = [1, 0], sizes = [1, 256], strides = [1, 1]} : vector<2x256xf32> to vector<1x256xf32>
    %537 = vector.broadcast %535 : f32 to vector<1x256xf32>
    %538 = arith.mulf %537, %536 : vector<1x256xf32>
    %539 = arith.addf %534, %538 : vector<1x256xf32>
    %540 = vector.extract_strided_slice %179 {offsets = [0, 52], sizes = [2, 256], strides = [1, 1]} : vector<2x358xf32> to vector<2x256xf32>
    %cst_91 = arith.constant 0.000000e+00 : f32
    %541 = vector.shape_cast %59 : vector<1x256xi1> to vector<1x256xi1>
    %542 = vector.broadcast %541 : vector<1x256xi1> to vector<2x256xi1>
    %543 = vector.broadcast %cst_91 : f32 to vector<2x256xf32>
    %544 = arith.select %542, %540, %543 : vector<2x256xi1>, vector<2x256xf32>
    %c50 = arith.constant 50 : index
    %545 = memref.load %arg8[%c50] : memref<98xf32, #tpu.memory_space<smem>>
    %546 = vector.extract_strided_slice %544 {offsets = [0, 0], sizes = [1, 256], strides = [1, 1]} : vector<2x256xf32> to vector<1x256xf32>
    %547 = vector.broadcast %545 : f32 to vector<1x256xf32>
    %548 = arith.mulf %547, %546 : vector<1x256xf32>
    %549 = arith.addf %539, %548 : vector<1x256xf32>
    %c51 = arith.constant 51 : index
    %550 = memref.load %arg8[%c51] : memref<98xf32, #tpu.memory_space<smem>>
    %551 = vector.extract_strided_slice %544 {offsets = [1, 0], sizes = [1, 256], strides = [1, 1]} : vector<2x256xf32> to vector<1x256xf32>
    %552 = vector.broadcast %550 : f32 to vector<1x256xf32>
    %553 = arith.mulf %552, %551 : vector<1x256xf32>
    %554 = arith.addf %549, %553 : vector<1x256xf32>
    %555 = vector.extract_strided_slice %179 {offsets = [0, 53], sizes = [2, 256], strides = [1, 1]} : vector<2x358xf32> to vector<2x256xf32>
    %cst_92 = arith.constant 0.000000e+00 : f32
    %556 = vector.shape_cast %68 : vector<1x256xi1> to vector<1x256xi1>
    %557 = vector.broadcast %556 : vector<1x256xi1> to vector<2x256xi1>
    %558 = vector.broadcast %cst_92 : f32 to vector<2x256xf32>
    %559 = arith.select %557, %555, %558 : vector<2x256xi1>, vector<2x256xf32>
    %c52 = arith.constant 52 : index
    %560 = memref.load %arg8[%c52] : memref<98xf32, #tpu.memory_space<smem>>
    %561 = vector.extract_strided_slice %559 {offsets = [0, 0], sizes = [1, 256], strides = [1, 1]} : vector<2x256xf32> to vector<1x256xf32>
    %562 = vector.broadcast %560 : f32 to vector<1x256xf32>
    %563 = arith.mulf %562, %561 : vector<1x256xf32>
    %564 = arith.addf %554, %563 : vector<1x256xf32>
    %c53 = arith.constant 53 : index
    %565 = memref.load %arg8[%c53] : memref<98xf32, #tpu.memory_space<smem>>
    %566 = vector.extract_strided_slice %559 {offsets = [1, 0], sizes = [1, 256], strides = [1, 1]} : vector<2x256xf32> to vector<1x256xf32>
    %567 = vector.broadcast %565 : f32 to vector<1x256xf32>
    %568 = arith.mulf %567, %566 : vector<1x256xf32>
    %569 = arith.addf %564, %568 : vector<1x256xf32>
    %570 = vector.extract_strided_slice %179 {offsets = [0, 54], sizes = [2, 256], strides = [1, 1]} : vector<2x358xf32> to vector<2x256xf32>
    %cst_93 = arith.constant 0.000000e+00 : f32
    %571 = vector.shape_cast %77 : vector<1x256xi1> to vector<1x256xi1>
    %572 = vector.broadcast %571 : vector<1x256xi1> to vector<2x256xi1>
    %573 = vector.broadcast %cst_93 : f32 to vector<2x256xf32>
    %574 = arith.select %572, %570, %573 : vector<2x256xi1>, vector<2x256xf32>
    %c54 = arith.constant 54 : index
    %575 = memref.load %arg8[%c54] : memref<98xf32, #tpu.memory_space<smem>>
    %576 = vector.extract_strided_slice %574 {offsets = [0, 0], sizes = [1, 256], strides = [1, 1]} : vector<2x256xf32> to vector<1x256xf32>
    %577 = vector.broadcast %575 : f32 to vector<1x256xf32>
    %578 = arith.mulf %577, %576 : vector<1x256xf32>
    %579 = arith.addf %569, %578 : vector<1x256xf32>
    %c55 = arith.constant 55 : index
    %580 = memref.load %arg8[%c55] : memref<98xf32, #tpu.memory_space<smem>>
    %581 = vector.extract_strided_slice %574 {offsets = [1, 0], sizes = [1, 256], strides = [1, 1]} : vector<2x256xf32> to vector<1x256xf32>
    %582 = vector.broadcast %580 : f32 to vector<1x256xf32>
    %583 = arith.mulf %582, %581 : vector<1x256xf32>
    %584 = arith.addf %579, %583 : vector<1x256xf32>
    %585 = vector.extract_strided_slice %179 {offsets = [0, 64], sizes = [2, 256], strides = [1, 1]} : vector<2x358xf32> to vector<2x256xf32>
    %cst_94 = arith.constant 0.000000e+00 : f32
    %586 = vector.shape_cast %32 : vector<1x256xi1> to vector<1x256xi1>
    %587 = vector.broadcast %586 : vector<1x256xi1> to vector<2x256xi1>
    %588 = vector.broadcast %cst_94 : f32 to vector<2x256xf32>
    %589 = arith.select %587, %585, %588 : vector<2x256xi1>, vector<2x256xf32>
    %c56 = arith.constant 56 : index
    %590 = memref.load %arg8[%c56] : memref<98xf32, #tpu.memory_space<smem>>
    %591 = vector.extract_strided_slice %589 {offsets = [0, 0], sizes = [1, 256], strides = [1, 1]} : vector<2x256xf32> to vector<1x256xf32>
    %592 = vector.broadcast %590 : f32 to vector<1x256xf32>
    %593 = arith.mulf %592, %591 : vector<1x256xf32>
    %594 = arith.addf %584, %593 : vector<1x256xf32>
    %c57 = arith.constant 57 : index
    %595 = memref.load %arg8[%c57] : memref<98xf32, #tpu.memory_space<smem>>
    %596 = vector.extract_strided_slice %589 {offsets = [1, 0], sizes = [1, 256], strides = [1, 1]} : vector<2x256xf32> to vector<1x256xf32>
    %597 = vector.broadcast %595 : f32 to vector<1x256xf32>
    %598 = arith.mulf %597, %596 : vector<1x256xf32>
    %599 = arith.addf %594, %598 : vector<1x256xf32>
    %600 = vector.extract_strided_slice %179 {offsets = [0, 65], sizes = [2, 256], strides = [1, 1]} : vector<2x358xf32> to vector<2x256xf32>
    %cst_95 = arith.constant 0.000000e+00 : f32
    %601 = vector.shape_cast %41 : vector<1x256xi1> to vector<1x256xi1>
    %602 = vector.broadcast %601 : vector<1x256xi1> to vector<2x256xi1>
    %603 = vector.broadcast %cst_95 : f32 to vector<2x256xf32>
    %604 = arith.select %602, %600, %603 : vector<2x256xi1>, vector<2x256xf32>
    %c58 = arith.constant 58 : index
    %605 = memref.load %arg8[%c58] : memref<98xf32, #tpu.memory_space<smem>>
    %606 = vector.extract_strided_slice %604 {offsets = [0, 0], sizes = [1, 256], strides = [1, 1]} : vector<2x256xf32> to vector<1x256xf32>
    %607 = vector.broadcast %605 : f32 to vector<1x256xf32>
    %608 = arith.mulf %607, %606 : vector<1x256xf32>
    %609 = arith.addf %599, %608 : vector<1x256xf32>
    %c59 = arith.constant 59 : index
    %610 = memref.load %arg8[%c59] : memref<98xf32, #tpu.memory_space<smem>>
    %611 = vector.extract_strided_slice %604 {offsets = [1, 0], sizes = [1, 256], strides = [1, 1]} : vector<2x256xf32> to vector<1x256xf32>
    %612 = vector.broadcast %610 : f32 to vector<1x256xf32>
    %613 = arith.mulf %612, %611 : vector<1x256xf32>
    %614 = arith.addf %609, %613 : vector<1x256xf32>
    %615 = vector.extract_strided_slice %179 {offsets = [0, 66], sizes = [2, 256], strides = [1, 1]} : vector<2x358xf32> to vector<2x256xf32>
    %cst_96 = arith.constant 0.000000e+00 : f32
    %616 = vector.shape_cast %50 : vector<1x256xi1> to vector<1x256xi1>
    %617 = vector.broadcast %616 : vector<1x256xi1> to vector<2x256xi1>
    %618 = vector.broadcast %cst_96 : f32 to vector<2x256xf32>
    %619 = arith.select %617, %615, %618 : vector<2x256xi1>, vector<2x256xf32>
    %c60 = arith.constant 60 : index
    %620 = memref.load %arg8[%c60] : memref<98xf32, #tpu.memory_space<smem>>
    %621 = vector.extract_strided_slice %619 {offsets = [0, 0], sizes = [1, 256], strides = [1, 1]} : vector<2x256xf32> to vector<1x256xf32>
    %622 = vector.broadcast %620 : f32 to vector<1x256xf32>
    %623 = arith.mulf %622, %621 : vector<1x256xf32>
    %624 = arith.addf %614, %623 : vector<1x256xf32>
    %c61 = arith.constant 61 : index
    %625 = memref.load %arg8[%c61] : memref<98xf32, #tpu.memory_space<smem>>
    %626 = vector.extract_strided_slice %619 {offsets = [1, 0], sizes = [1, 256], strides = [1, 1]} : vector<2x256xf32> to vector<1x256xf32>
    %627 = vector.broadcast %625 : f32 to vector<1x256xf32>
    %628 = arith.mulf %627, %626 : vector<1x256xf32>
    %629 = arith.addf %624, %628 : vector<1x256xf32>
    %630 = vector.extract_strided_slice %179 {offsets = [0, 67], sizes = [2, 256], strides = [1, 1]} : vector<2x358xf32> to vector<2x256xf32>
    %c62 = arith.constant 62 : index
    %631 = memref.load %arg8[%c62] : memref<98xf32, #tpu.memory_space<smem>>
    %632 = vector.extract_strided_slice %630 {offsets = [0, 0], sizes = [1, 256], strides = [1, 1]} : vector<2x256xf32> to vector<1x256xf32>
    %633 = vector.broadcast %631 : f32 to vector<1x256xf32>
    %634 = arith.mulf %633, %632 : vector<1x256xf32>
    %635 = arith.addf %629, %634 : vector<1x256xf32>
    %c63 = arith.constant 63 : index
    %636 = memref.load %arg8[%c63] : memref<98xf32, #tpu.memory_space<smem>>
    %637 = vector.extract_strided_slice %630 {offsets = [1, 0], sizes = [1, 256], strides = [1, 1]} : vector<2x256xf32> to vector<1x256xf32>
    %638 = vector.broadcast %636 : f32 to vector<1x256xf32>
    %639 = arith.mulf %638, %637 : vector<1x256xf32>
    %640 = arith.addf %635, %639 : vector<1x256xf32>
    %641 = vector.extract_strided_slice %179 {offsets = [0, 68], sizes = [2, 256], strides = [1, 1]} : vector<2x358xf32> to vector<2x256xf32>
    %cst_97 = arith.constant 0.000000e+00 : f32
    %642 = vector.shape_cast %59 : vector<1x256xi1> to vector<1x256xi1>
    %643 = vector.broadcast %642 : vector<1x256xi1> to vector<2x256xi1>
    %644 = vector.broadcast %cst_97 : f32 to vector<2x256xf32>
    %645 = arith.select %643, %641, %644 : vector<2x256xi1>, vector<2x256xf32>
    %c64 = arith.constant 64 : index
    %646 = memref.load %arg8[%c64] : memref<98xf32, #tpu.memory_space<smem>>
    %647 = vector.extract_strided_slice %645 {offsets = [0, 0], sizes = [1, 256], strides = [1, 1]} : vector<2x256xf32> to vector<1x256xf32>
    %648 = vector.broadcast %646 : f32 to vector<1x256xf32>
    %649 = arith.mulf %648, %647 : vector<1x256xf32>
    %650 = arith.addf %640, %649 : vector<1x256xf32>
    %c65 = arith.constant 65 : index
    %651 = memref.load %arg8[%c65] : memref<98xf32, #tpu.memory_space<smem>>
    %652 = vector.extract_strided_slice %645 {offsets = [1, 0], sizes = [1, 256], strides = [1, 1]} : vector<2x256xf32> to vector<1x256xf32>
    %653 = vector.broadcast %651 : f32 to vector<1x256xf32>
    %654 = arith.mulf %653, %652 : vector<1x256xf32>
    %655 = arith.addf %650, %654 : vector<1x256xf32>
    %656 = vector.extract_strided_slice %179 {offsets = [0, 69], sizes = [2, 256], strides = [1, 1]} : vector<2x358xf32> to vector<2x256xf32>
    %cst_98 = arith.constant 0.000000e+00 : f32
    %657 = vector.shape_cast %68 : vector<1x256xi1> to vector<1x256xi1>
    %658 = vector.broadcast %657 : vector<1x256xi1> to vector<2x256xi1>
    %659 = vector.broadcast %cst_98 : f32 to vector<2x256xf32>
    %660 = arith.select %658, %656, %659 : vector<2x256xi1>, vector<2x256xf32>
    %c66 = arith.constant 66 : index
    %661 = memref.load %arg8[%c66] : memref<98xf32, #tpu.memory_space<smem>>
    %662 = vector.extract_strided_slice %660 {offsets = [0, 0], sizes = [1, 256], strides = [1, 1]} : vector<2x256xf32> to vector<1x256xf32>
    %663 = vector.broadcast %661 : f32 to vector<1x256xf32>
    %664 = arith.mulf %663, %662 : vector<1x256xf32>
    %665 = arith.addf %655, %664 : vector<1x256xf32>
    %c67 = arith.constant 67 : index
    %666 = memref.load %arg8[%c67] : memref<98xf32, #tpu.memory_space<smem>>
    %667 = vector.extract_strided_slice %660 {offsets = [1, 0], sizes = [1, 256], strides = [1, 1]} : vector<2x256xf32> to vector<1x256xf32>
    %668 = vector.broadcast %666 : f32 to vector<1x256xf32>
    %669 = arith.mulf %668, %667 : vector<1x256xf32>
    %670 = arith.addf %665, %669 : vector<1x256xf32>
    %671 = vector.extract_strided_slice %179 {offsets = [0, 70], sizes = [2, 256], strides = [1, 1]} : vector<2x358xf32> to vector<2x256xf32>
    %cst_99 = arith.constant 0.000000e+00 : f32
    %672 = vector.shape_cast %77 : vector<1x256xi1> to vector<1x256xi1>
    %673 = vector.broadcast %672 : vector<1x256xi1> to vector<2x256xi1>
    %674 = vector.broadcast %cst_99 : f32 to vector<2x256xf32>
    %675 = arith.select %673, %671, %674 : vector<2x256xi1>, vector<2x256xf32>
    %c68 = arith.constant 68 : index
    %676 = memref.load %arg8[%c68] : memref<98xf32, #tpu.memory_space<smem>>
    %677 = vector.extract_strided_slice %675 {offsets = [0, 0], sizes = [1, 256], strides = [1, 1]} : vector<2x256xf32> to vector<1x256xf32>
    %678 = vector.broadcast %676 : f32 to vector<1x256xf32>
    %679 = arith.mulf %678, %677 : vector<1x256xf32>
    %680 = arith.addf %670, %679 : vector<1x256xf32>
    %c69 = arith.constant 69 : index
    %681 = memref.load %arg8[%c69] : memref<98xf32, #tpu.memory_space<smem>>
    %682 = vector.extract_strided_slice %675 {offsets = [1, 0], sizes = [1, 256], strides = [1, 1]} : vector<2x256xf32> to vector<1x256xf32>
    %683 = vector.broadcast %681 : f32 to vector<1x256xf32>
    %684 = arith.mulf %683, %682 : vector<1x256xf32>
    %685 = arith.addf %680, %684 : vector<1x256xf32>
    %686 = vector.extract_strided_slice %179 {offsets = [0, 80], sizes = [2, 256], strides = [1, 1]} : vector<2x358xf32> to vector<2x256xf32>
    %cst_100 = arith.constant 0.000000e+00 : f32
    %687 = vector.shape_cast %32 : vector<1x256xi1> to vector<1x256xi1>
    %688 = vector.broadcast %687 : vector<1x256xi1> to vector<2x256xi1>
    %689 = vector.broadcast %cst_100 : f32 to vector<2x256xf32>
    %690 = arith.select %688, %686, %689 : vector<2x256xi1>, vector<2x256xf32>
    %c70 = arith.constant 70 : index
    %691 = memref.load %arg8[%c70] : memref<98xf32, #tpu.memory_space<smem>>
    %692 = vector.extract_strided_slice %690 {offsets = [0, 0], sizes = [1, 256], strides = [1, 1]} : vector<2x256xf32> to vector<1x256xf32>
    %693 = vector.broadcast %691 : f32 to vector<1x256xf32>
    %694 = arith.mulf %693, %692 : vector<1x256xf32>
    %695 = arith.addf %685, %694 : vector<1x256xf32>
    %c71 = arith.constant 71 : index
    %696 = memref.load %arg8[%c71] : memref<98xf32, #tpu.memory_space<smem>>
    %697 = vector.extract_strided_slice %690 {offsets = [1, 0], sizes = [1, 256], strides = [1, 1]} : vector<2x256xf32> to vector<1x256xf32>
    %698 = vector.broadcast %696 : f32 to vector<1x256xf32>
    %699 = arith.mulf %698, %697 : vector<1x256xf32>
    %700 = arith.addf %695, %699 : vector<1x256xf32>
    %701 = vector.extract_strided_slice %179 {offsets = [0, 81], sizes = [2, 256], strides = [1, 1]} : vector<2x358xf32> to vector<2x256xf32>
    %cst_101 = arith.constant 0.000000e+00 : f32
    %702 = vector.shape_cast %41 : vector<1x256xi1> to vector<1x256xi1>
    %703 = vector.broadcast %702 : vector<1x256xi1> to vector<2x256xi1>
    %704 = vector.broadcast %cst_101 : f32 to vector<2x256xf32>
    %705 = arith.select %703, %701, %704 : vector<2x256xi1>, vector<2x256xf32>
    %c72 = arith.constant 72 : index
    %706 = memref.load %arg8[%c72] : memref<98xf32, #tpu.memory_space<smem>>
    %707 = vector.extract_strided_slice %705 {offsets = [0, 0], sizes = [1, 256], strides = [1, 1]} : vector<2x256xf32> to vector<1x256xf32>
    %708 = vector.broadcast %706 : f32 to vector<1x256xf32>
    %709 = arith.mulf %708, %707 : vector<1x256xf32>
    %710 = arith.addf %700, %709 : vector<1x256xf32>
    %c73 = arith.constant 73 : index
    %711 = memref.load %arg8[%c73] : memref<98xf32, #tpu.memory_space<smem>>
    %712 = vector.extract_strided_slice %705 {offsets = [1, 0], sizes = [1, 256], strides = [1, 1]} : vector<2x256xf32> to vector<1x256xf32>
    %713 = vector.broadcast %711 : f32 to vector<1x256xf32>
    %714 = arith.mulf %713, %712 : vector<1x256xf32>
    %715 = arith.addf %710, %714 : vector<1x256xf32>
    %716 = vector.extract_strided_slice %179 {offsets = [0, 82], sizes = [2, 256], strides = [1, 1]} : vector<2x358xf32> to vector<2x256xf32>
    %cst_102 = arith.constant 0.000000e+00 : f32
    %717 = vector.shape_cast %50 : vector<1x256xi1> to vector<1x256xi1>
    %718 = vector.broadcast %717 : vector<1x256xi1> to vector<2x256xi1>
    %719 = vector.broadcast %cst_102 : f32 to vector<2x256xf32>
    %720 = arith.select %718, %716, %719 : vector<2x256xi1>, vector<2x256xf32>
    %c74 = arith.constant 74 : index
    %721 = memref.load %arg8[%c74] : memref<98xf32, #tpu.memory_space<smem>>
    %722 = vector.extract_strided_slice %720 {offsets = [0, 0], sizes = [1, 256], strides = [1, 1]} : vector<2x256xf32> to vector<1x256xf32>
    %723 = vector.broadcast %721 : f32 to vector<1x256xf32>
    %724 = arith.mulf %723, %722 : vector<1x256xf32>
    %725 = arith.addf %715, %724 : vector<1x256xf32>
    %c75 = arith.constant 75 : index
    %726 = memref.load %arg8[%c75] : memref<98xf32, #tpu.memory_space<smem>>
    %727 = vector.extract_strided_slice %720 {offsets = [1, 0], sizes = [1, 256], strides = [1, 1]} : vector<2x256xf32> to vector<1x256xf32>
    %728 = vector.broadcast %726 : f32 to vector<1x256xf32>
    %729 = arith.mulf %728, %727 : vector<1x256xf32>
    %730 = arith.addf %725, %729 : vector<1x256xf32>
    %731 = vector.extract_strided_slice %179 {offsets = [0, 83], sizes = [2, 256], strides = [1, 1]} : vector<2x358xf32> to vector<2x256xf32>
    %c76 = arith.constant 76 : index
    %732 = memref.load %arg8[%c76] : memref<98xf32, #tpu.memory_space<smem>>
    %733 = vector.extract_strided_slice %731 {offsets = [0, 0], sizes = [1, 256], strides = [1, 1]} : vector<2x256xf32> to vector<1x256xf32>
    %734 = vector.broadcast %732 : f32 to vector<1x256xf32>
    %735 = arith.mulf %734, %733 : vector<1x256xf32>
    %736 = arith.addf %730, %735 : vector<1x256xf32>
    %c77 = arith.constant 77 : index
    %737 = memref.load %arg8[%c77] : memref<98xf32, #tpu.memory_space<smem>>
    %738 = vector.extract_strided_slice %731 {offsets = [1, 0], sizes = [1, 256], strides = [1, 1]} : vector<2x256xf32> to vector<1x256xf32>
    %739 = vector.broadcast %737 : f32 to vector<1x256xf32>
    %740 = arith.mulf %739, %738 : vector<1x256xf32>
    %741 = arith.addf %736, %740 : vector<1x256xf32>
    %742 = vector.extract_strided_slice %179 {offsets = [0, 84], sizes = [2, 256], strides = [1, 1]} : vector<2x358xf32> to vector<2x256xf32>
    %cst_103 = arith.constant 0.000000e+00 : f32
    %743 = vector.shape_cast %59 : vector<1x256xi1> to vector<1x256xi1>
    %744 = vector.broadcast %743 : vector<1x256xi1> to vector<2x256xi1>
    %745 = vector.broadcast %cst_103 : f32 to vector<2x256xf32>
    %746 = arith.select %744, %742, %745 : vector<2x256xi1>, vector<2x256xf32>
    %c78 = arith.constant 78 : index
    %747 = memref.load %arg8[%c78] : memref<98xf32, #tpu.memory_space<smem>>
    %748 = vector.extract_strided_slice %746 {offsets = [0, 0], sizes = [1, 256], strides = [1, 1]} : vector<2x256xf32> to vector<1x256xf32>
    %749 = vector.broadcast %747 : f32 to vector<1x256xf32>
    %750 = arith.mulf %749, %748 : vector<1x256xf32>
    %751 = arith.addf %741, %750 : vector<1x256xf32>
    %c79 = arith.constant 79 : index
    %752 = memref.load %arg8[%c79] : memref<98xf32, #tpu.memory_space<smem>>
    %753 = vector.extract_strided_slice %746 {offsets = [1, 0], sizes = [1, 256], strides = [1, 1]} : vector<2x256xf32> to vector<1x256xf32>
    %754 = vector.broadcast %752 : f32 to vector<1x256xf32>
    %755 = arith.mulf %754, %753 : vector<1x256xf32>
    %756 = arith.addf %751, %755 : vector<1x256xf32>
    %757 = vector.extract_strided_slice %179 {offsets = [0, 85], sizes = [2, 256], strides = [1, 1]} : vector<2x358xf32> to vector<2x256xf32>
    %cst_104 = arith.constant 0.000000e+00 : f32
    %758 = vector.shape_cast %68 : vector<1x256xi1> to vector<1x256xi1>
    %759 = vector.broadcast %758 : vector<1x256xi1> to vector<2x256xi1>
    %760 = vector.broadcast %cst_104 : f32 to vector<2x256xf32>
    %761 = arith.select %759, %757, %760 : vector<2x256xi1>, vector<2x256xf32>
    %c80 = arith.constant 80 : index
    %762 = memref.load %arg8[%c80] : memref<98xf32, #tpu.memory_space<smem>>
    %763 = vector.extract_strided_slice %761 {offsets = [0, 0], sizes = [1, 256], strides = [1, 1]} : vector<2x256xf32> to vector<1x256xf32>
    %764 = vector.broadcast %762 : f32 to vector<1x256xf32>
    %765 = arith.mulf %764, %763 : vector<1x256xf32>
    %766 = arith.addf %756, %765 : vector<1x256xf32>
    %c81 = arith.constant 81 : index
    %767 = memref.load %arg8[%c81] : memref<98xf32, #tpu.memory_space<smem>>
    %768 = vector.extract_strided_slice %761 {offsets = [1, 0], sizes = [1, 256], strides = [1, 1]} : vector<2x256xf32> to vector<1x256xf32>
    %769 = vector.broadcast %767 : f32 to vector<1x256xf32>
    %770 = arith.mulf %769, %768 : vector<1x256xf32>
    %771 = arith.addf %766, %770 : vector<1x256xf32>
    %772 = vector.extract_strided_slice %179 {offsets = [0, 86], sizes = [2, 256], strides = [1, 1]} : vector<2x358xf32> to vector<2x256xf32>
    %cst_105 = arith.constant 0.000000e+00 : f32
    %773 = vector.shape_cast %77 : vector<1x256xi1> to vector<1x256xi1>
    %774 = vector.broadcast %773 : vector<1x256xi1> to vector<2x256xi1>
    %775 = vector.broadcast %cst_105 : f32 to vector<2x256xf32>
    %776 = arith.select %774, %772, %775 : vector<2x256xi1>, vector<2x256xf32>
    %c82 = arith.constant 82 : index
    %777 = memref.load %arg8[%c82] : memref<98xf32, #tpu.memory_space<smem>>
    %778 = vector.extract_strided_slice %776 {offsets = [0, 0], sizes = [1, 256], strides = [1, 1]} : vector<2x256xf32> to vector<1x256xf32>
    %779 = vector.broadcast %777 : f32 to vector<1x256xf32>
    %780 = arith.mulf %779, %778 : vector<1x256xf32>
    %781 = arith.addf %771, %780 : vector<1x256xf32>
    %c83 = arith.constant 83 : index
    %782 = memref.load %arg8[%c83] : memref<98xf32, #tpu.memory_space<smem>>
    %783 = vector.extract_strided_slice %776 {offsets = [1, 0], sizes = [1, 256], strides = [1, 1]} : vector<2x256xf32> to vector<1x256xf32>
    %784 = vector.broadcast %782 : f32 to vector<1x256xf32>
    %785 = arith.mulf %784, %783 : vector<1x256xf32>
    %786 = arith.addf %781, %785 : vector<1x256xf32>
    %787 = vector.extract_strided_slice %179 {offsets = [0, 96], sizes = [2, 256], strides = [1, 1]} : vector<2x358xf32> to vector<2x256xf32>
    %cst_106 = arith.constant 0.000000e+00 : f32
    %788 = vector.shape_cast %32 : vector<1x256xi1> to vector<1x256xi1>
    %789 = vector.broadcast %788 : vector<1x256xi1> to vector<2x256xi1>
    %790 = vector.broadcast %cst_106 : f32 to vector<2x256xf32>
    %791 = arith.select %789, %787, %790 : vector<2x256xi1>, vector<2x256xf32>
    %c84 = arith.constant 84 : index
    %792 = memref.load %arg8[%c84] : memref<98xf32, #tpu.memory_space<smem>>
    %793 = vector.extract_strided_slice %791 {offsets = [0, 0], sizes = [1, 256], strides = [1, 1]} : vector<2x256xf32> to vector<1x256xf32>
    %794 = vector.broadcast %792 : f32 to vector<1x256xf32>
    %795 = arith.mulf %794, %793 : vector<1x256xf32>
    %796 = arith.addf %786, %795 : vector<1x256xf32>
    %c85 = arith.constant 85 : index
    %797 = memref.load %arg8[%c85] : memref<98xf32, #tpu.memory_space<smem>>
    %798 = vector.extract_strided_slice %791 {offsets = [1, 0], sizes = [1, 256], strides = [1, 1]} : vector<2x256xf32> to vector<1x256xf32>
    %799 = vector.broadcast %797 : f32 to vector<1x256xf32>
    %800 = arith.mulf %799, %798 : vector<1x256xf32>
    %801 = arith.addf %796, %800 : vector<1x256xf32>
    %802 = vector.extract_strided_slice %179 {offsets = [0, 97], sizes = [2, 256], strides = [1, 1]} : vector<2x358xf32> to vector<2x256xf32>
    %cst_107 = arith.constant 0.000000e+00 : f32
    %803 = vector.shape_cast %41 : vector<1x256xi1> to vector<1x256xi1>
    %804 = vector.broadcast %803 : vector<1x256xi1> to vector<2x256xi1>
    %805 = vector.broadcast %cst_107 : f32 to vector<2x256xf32>
    %806 = arith.select %804, %802, %805 : vector<2x256xi1>, vector<2x256xf32>
    %c86 = arith.constant 86 : index
    %807 = memref.load %arg8[%c86] : memref<98xf32, #tpu.memory_space<smem>>
    %808 = vector.extract_strided_slice %806 {offsets = [0, 0], sizes = [1, 256], strides = [1, 1]} : vector<2x256xf32> to vector<1x256xf32>
    %809 = vector.broadcast %807 : f32 to vector<1x256xf32>
    %810 = arith.mulf %809, %808 : vector<1x256xf32>
    %811 = arith.addf %801, %810 : vector<1x256xf32>
    %c87 = arith.constant 87 : index
    %812 = memref.load %arg8[%c87] : memref<98xf32, #tpu.memory_space<smem>>
    %813 = vector.extract_strided_slice %806 {offsets = [1, 0], sizes = [1, 256], strides = [1, 1]} : vector<2x256xf32> to vector<1x256xf32>
    %814 = vector.broadcast %812 : f32 to vector<1x256xf32>
    %815 = arith.mulf %814, %813 : vector<1x256xf32>
    %816 = arith.addf %811, %815 : vector<1x256xf32>
    %817 = vector.extract_strided_slice %179 {offsets = [0, 98], sizes = [2, 256], strides = [1, 1]} : vector<2x358xf32> to vector<2x256xf32>
    %cst_108 = arith.constant 0.000000e+00 : f32
    %818 = vector.shape_cast %50 : vector<1x256xi1> to vector<1x256xi1>
    %819 = vector.broadcast %818 : vector<1x256xi1> to vector<2x256xi1>
    %820 = vector.broadcast %cst_108 : f32 to vector<2x256xf32>
    %821 = arith.select %819, %817, %820 : vector<2x256xi1>, vector<2x256xf32>
    %c88 = arith.constant 88 : index
    %822 = memref.load %arg8[%c88] : memref<98xf32, #tpu.memory_space<smem>>
    %823 = vector.extract_strided_slice %821 {offsets = [0, 0], sizes = [1, 256], strides = [1, 1]} : vector<2x256xf32> to vector<1x256xf32>
    %824 = vector.broadcast %822 : f32 to vector<1x256xf32>
    %825 = arith.mulf %824, %823 : vector<1x256xf32>
    %826 = arith.addf %816, %825 : vector<1x256xf32>
    %c89 = arith.constant 89 : index
    %827 = memref.load %arg8[%c89] : memref<98xf32, #tpu.memory_space<smem>>
    %828 = vector.extract_strided_slice %821 {offsets = [1, 0], sizes = [1, 256], strides = [1, 1]} : vector<2x256xf32> to vector<1x256xf32>
    %829 = vector.broadcast %827 : f32 to vector<1x256xf32>
    %830 = arith.mulf %829, %828 : vector<1x256xf32>
    %831 = arith.addf %826, %830 : vector<1x256xf32>
    %832 = vector.extract_strided_slice %179 {offsets = [0, 99], sizes = [2, 256], strides = [1, 1]} : vector<2x358xf32> to vector<2x256xf32>
    %c90 = arith.constant 90 : index
    %833 = memref.load %arg8[%c90] : memref<98xf32, #tpu.memory_space<smem>>
    %834 = vector.extract_strided_slice %832 {offsets = [0, 0], sizes = [1, 256], strides = [1, 1]} : vector<2x256xf32> to vector<1x256xf32>
    %835 = vector.broadcast %833 : f32 to vector<1x256xf32>
    %836 = arith.mulf %835, %834 : vector<1x256xf32>
    %837 = arith.addf %831, %836 : vector<1x256xf32>
    %c91 = arith.constant 91 : index
    %838 = memref.load %arg8[%c91] : memref<98xf32, #tpu.memory_space<smem>>
    %839 = vector.extract_strided_slice %832 {offsets = [1, 0], sizes = [1, 256], strides = [1, 1]} : vector<2x256xf32> to vector<1x256xf32>
    %840 = vector.broadcast %838 : f32 to vector<1x256xf32>
    %841 = arith.mulf %840, %839 : vector<1x256xf32>
    %842 = arith.addf %837, %841 : vector<1x256xf32>
    %843 = vector.extract_strided_slice %179 {offsets = [0, 100], sizes = [2, 256], strides = [1, 1]} : vector<2x358xf32> to vector<2x256xf32>
    %cst_109 = arith.constant 0.000000e+00 : f32
    %844 = vector.shape_cast %59 : vector<1x256xi1> to vector<1x256xi1>
    %845 = vector.broadcast %844 : vector<1x256xi1> to vector<2x256xi1>
    %846 = vector.broadcast %cst_109 : f32 to vector<2x256xf32>
    %847 = arith.select %845, %843, %846 : vector<2x256xi1>, vector<2x256xf32>
    %c92 = arith.constant 92 : index
    %848 = memref.load %arg8[%c92] : memref<98xf32, #tpu.memory_space<smem>>
    %849 = vector.extract_strided_slice %847 {offsets = [0, 0], sizes = [1, 256], strides = [1, 1]} : vector<2x256xf32> to vector<1x256xf32>
    %850 = vector.broadcast %848 : f32 to vector<1x256xf32>
    %851 = arith.mulf %850, %849 : vector<1x256xf32>
    %852 = arith.addf %842, %851 : vector<1x256xf32>
    %c93 = arith.constant 93 : index
    %853 = memref.load %arg8[%c93] : memref<98xf32, #tpu.memory_space<smem>>
    %854 = vector.extract_strided_slice %847 {offsets = [1, 0], sizes = [1, 256], strides = [1, 1]} : vector<2x256xf32> to vector<1x256xf32>
    %855 = vector.broadcast %853 : f32 to vector<1x256xf32>
    %856 = arith.mulf %855, %854 : vector<1x256xf32>
    %857 = arith.addf %852, %856 : vector<1x256xf32>
    %858 = vector.extract_strided_slice %179 {offsets = [0, 101], sizes = [2, 256], strides = [1, 1]} : vector<2x358xf32> to vector<2x256xf32>
    %cst_110 = arith.constant 0.000000e+00 : f32
    %859 = vector.shape_cast %68 : vector<1x256xi1> to vector<1x256xi1>
    %860 = vector.broadcast %859 : vector<1x256xi1> to vector<2x256xi1>
    %861 = vector.broadcast %cst_110 : f32 to vector<2x256xf32>
    %862 = arith.select %860, %858, %861 : vector<2x256xi1>, vector<2x256xf32>
    %c94 = arith.constant 94 : index
    %863 = memref.load %arg8[%c94] : memref<98xf32, #tpu.memory_space<smem>>
    %864 = vector.extract_strided_slice %862 {offsets = [0, 0], sizes = [1, 256], strides = [1, 1]} : vector<2x256xf32> to vector<1x256xf32>
    %865 = vector.broadcast %863 : f32 to vector<1x256xf32>
    %866 = arith.mulf %865, %864 : vector<1x256xf32>
    %867 = arith.addf %857, %866 : vector<1x256xf32>
    %c95 = arith.constant 95 : index
    %868 = memref.load %arg8[%c95] : memref<98xf32, #tpu.memory_space<smem>>
    %869 = vector.extract_strided_slice %862 {offsets = [1, 0], sizes = [1, 256], strides = [1, 1]} : vector<2x256xf32> to vector<1x256xf32>
    %870 = vector.broadcast %868 : f32 to vector<1x256xf32>
    %871 = arith.mulf %870, %869 : vector<1x256xf32>
    %872 = arith.addf %867, %871 : vector<1x256xf32>
    %873 = vector.extract_strided_slice %179 {offsets = [0, 102], sizes = [2, 256], strides = [1, 1]} : vector<2x358xf32> to vector<2x256xf32>
    %cst_111 = arith.constant 0.000000e+00 : f32
    %874 = vector.shape_cast %77 : vector<1x256xi1> to vector<1x256xi1>
    %875 = vector.broadcast %874 : vector<1x256xi1> to vector<2x256xi1>
    %876 = vector.broadcast %cst_111 : f32 to vector<2x256xf32>
    %877 = arith.select %875, %873, %876 : vector<2x256xi1>, vector<2x256xf32>
    %c96 = arith.constant 96 : index
    %878 = memref.load %arg8[%c96] : memref<98xf32, #tpu.memory_space<smem>>
    %879 = vector.extract_strided_slice %877 {offsets = [0, 0], sizes = [1, 256], strides = [1, 1]} : vector<2x256xf32> to vector<1x256xf32>
    %880 = vector.broadcast %878 : f32 to vector<1x256xf32>
    %881 = arith.mulf %880, %879 : vector<1x256xf32>
    %882 = arith.addf %872, %881 : vector<1x256xf32>
    %c97 = arith.constant 97 : index
    %883 = memref.load %arg8[%c97] : memref<98xf32, #tpu.memory_space<smem>>
    %884 = vector.extract_strided_slice %877 {offsets = [1, 0], sizes = [1, 256], strides = [1, 1]} : vector<2x256xf32> to vector<1x256xf32>
    %885 = vector.broadcast %883 : f32 to vector<1x256xf32>
    %886 = arith.mulf %885, %884 : vector<1x256xf32>
    %887 = arith.addf %882, %886 : vector<1x256xf32>
    %888 = vector.broadcast %6 : f32 to vector<1x256xf32>
    %889 = arith.addf %887, %888 : vector<1x256xf32>
    %cst_112 = arith.constant 5.000000e-01 : f32
    %890 = vector.broadcast %cst_112 : f32 to vector<1x256xf32>
    %891 = arith.mulf %890, %889 : vector<1x256xf32>
    %892 = math.tanh %891 : vector<1x256xf32>
    %cst_113 = arith.constant 1.000000e+00 : f32
    %893 = vector.broadcast %cst_113 : f32 to vector<1x256xf32>
    %894 = arith.addf %892, %893 : vector<1x256xf32>
    %cst_114 = arith.constant 5.000000e-01 : f32
    %895 = vector.broadcast %cst_114 : f32 to vector<1x256xf32>
    %896 = arith.mulf %895, %894 : vector<1x256xf32>
    %897 = vector.broadcast %896 : vector<1x256xf32> to vector<8x256xf32>
    %898 = arith.mulf %170, %897 : vector<8x256xf32>
    %c0_115 = arith.constant 0 : index
    %c4_116 = arith.constant 4 : index
    %c0_117 = arith.constant 0 : index
    %899 = vector.load %arg10[%c0_115, %c4_116, %c0_117] : memref<1x12x256xf32, #tpu.memory_space<vmem>>, vector<1x8x256xf32>
    %900 = vector.shape_cast %899 : vector<1x8x256xf32> to vector<8x256xf32>
    %901 = vector.shape_cast %898 : vector<8x256xf32> to vector<1x8x256xf32>
    tpu.vector_store %arg10[%c0_115, %c4_116, %c0_117], %901 {strides = array<i32>} : memref<1x12x256xf32, #tpu.memory_space<vmem>>, vector<1x8x256xf32>,
    return
  }
  func.func @transform_0(%arg0: i32) -> (i32, i32, i32) {
    %c0_i32 = arith.constant 0 : i32
    %c0_i32_0 = arith.constant 0 : i32
    %c0_i32_1 = arith.constant 0 : i32
    return %arg0, %c0_i32, %c0_i32_0 : i32, i32, i32
  }
  func.func @transform_1(%arg0: i32) -> (i32, i32) {
    %c0_i32 = arith.constant 0 : i32
    %c0_i32_0 = arith.constant 0 : i32
    %c0_i32_1 = arith.constant 0 : i32
    return %c0_i32, %c0_i32_0 : i32, i32
  }
  func.func @transform_2(%arg0: i32) -> (i32, i32) {
    %c0_i32 = arith.constant 0 : i32
    %c0_i32_0 = arith.constant 0 : i32
    %c0_i32_1 = arith.constant 0 : i32
    return %c0_i32, %c0_i32_0 : i32, i32
  }
  func.func @transform_3(%arg0: i32) -> (i32, i32) {
    %c0_i32 = arith.constant 0 : i32
    %c0_i32_0 = arith.constant 0 : i32
    %c0_i32_1 = arith.constant 0 : i32
    return %c0_i32, %c0_i32_0 : i32, i32
  }
  func.func @transform_4(%arg0: i32) -> (i32, i32) {
    %c0_i32 = arith.constant 0 : i32
    %c0_i32_0 = arith.constant 0 : i32
    %c0_i32_1 = arith.constant 0 : i32
    return %c0_i32, %c0_i32_0 : i32, i32
  }
  func.func @transform_5(%arg0: i32) -> (i32, i32) {
    %c0_i32 = arith.constant 0 : i32
    %c0_i32_0 = arith.constant 0 : i32
    %c0_i32_1 = arith.constant 0 : i32
    return %c0_i32, %c0_i32_0 : i32, i32
  }
  func.func @transform_6(%arg0: i32) -> (i32, i32) {
    %c0_i32 = arith.constant 0 : i32
    %c0_i32_0 = arith.constant 0 : i32
    %c0_i32_1 = arith.constant 0 : i32
    return %c0_i32, %c0_i32_0 : i32, i32
  }
  func.func @transform_7(%arg0: i32) -> i32 {
    %c0_i32 = arith.constant 0 : i32
    %c0_i32_0 = arith.constant 0 : i32
    return %c0_i32 : i32
  }
  func.func @transform_8(%arg0: i32) -> i32 {
    %c0_i32 = arith.constant 0 : i32
    %c0_i32_0 = arith.constant 0 : i32
    return %c0_i32 : i32
  }
  func.func @transform_9(%arg0: i32) -> (i32, i32, i32) {
    %c0_i32 = arith.constant 0 : i32
    %c0_i32_0 = arith.constant 0 : i32
    %c0_i32_1 = arith.constant 0 : i32
    return %arg0, %c0_i32, %c0_i32_0 : i32, i32, i32
  }
}

</mosaic_0001>

<bundles_post_ra>
// kernel: tpu_custom_call.1
= control target key start
LH: loop header
LB: loop body
LE: loop exit
PB: predicated region body
PF: predicated region fallthrough
CT: control target
= control target key end

     0   :  { %s4607_s0 = inlined_call_operand.vmem [shape: f32[2,4,256], index: 0, kind: input, shape index: {}]   ;;  %s4608_s1 = inlined_call_operand.vmem [shape: f32[8,36], index: 1, kind: input, shape index: {}]   ;;  %s4609_s2 = inlined_call_operand.vmem [shape: f32[8,1], index: 2, kind: input, shape index: {}]   ;;  %s4610_s3 = inlined_call_operand.vmem [shape: f32[4,8], index: 3, kind: input, shape index: {}]   ;;  %s4611_s4 = inlined_call_operand.vmem [shape: f32[4,1], index: 4, kind: input, shape index: {}]   ;;  %s4612_s5 = inlined_call_operand.vmem [shape: f32[8,4], index: 5, kind: input, shape index: {}]   ;;  %s4613_s6 = inlined_call_operand.vmem [shape: f32[8,1], index: 6, kind: input, shape index: {}]   ;;  %s4614_s7 = inlined_call_operand.vmem [shape: f32[98], index: 7, kind: input, shape index: {}]   ;;  %s4615_s8 = inlined_call_operand.<no memory space> [shape: f32[1], index: 8, kind: input, shape index: {}]   ;;  %s4616_s9 = inlined_call_operand.vmem [shape: f32[2,12,256], index: 9, kind: output, shape index: {}]  }
   0x1   :  { %14 = sst [smem:[#allocation2]] %s4615_s8 }
   0x2   :  { %15 = vsyncpa [#allocation4], 0  ;;  %s3027_s11 = smov 0  }
   0x3 LB: > { %s2628_s12 = sadd.s32 4294967295, %s2918_s11   ;;  %p2630_p0 = scmp.ge.s32.totalorder %s2918_s11, 1  ;;  %s2918_s11 = sphi %s3027_s11, %s21_s11  }
   0x4   : > { %p246_p1 = scmp.lt.s32.totalorder %s2918_s11, 3  ;;  %s277_s15 = sshll.u32 %s4614_s7, 4  ;;  %s278_s15 = int_to_ptr.vmem [resolvable:$true] %s277_s15 }
   0x5   : > { %p2779_p3 = scmp.eq.s32.totalorder %s2628_s12, 0  ;;  %s2893_s16 = scalar_lea.vmem %s278_s15, 16 }
   0x6   : > { %p3038_p2 = pnand %p2630_p0, %p246_p1  ;;  %p2894_p6 = scmp.ne.s32.totalorder %s278_s15, %s2893_s16 }
   0x7   : > { %p2901_p10 = scmp.lt.s32.totalorder %s278_s15, %s278_s15  ;;  %p2902_p11 = scmp.lt.s32.totalorder %s2893_s16, %s2893_s16 }
   0x8   : > { %p2775_p4 = pneg %p3038_p2 }
   0x9   : > { %p2903_p12 = por %p2902_p11, %p2901_p10 }
   0xa   : > { %p2776_p5 = pnand %p2779_p3, %p2775_p4 }
   0xc   : > { %p2895_p7 = pneg %p2776_p5 }
   0xe   : > { %p2896_p8 = pnand %p2895_p7, %p2894_p6 }
  0x10   : > { %p2897_p9 = pneg %p2896_p8 }
  0x12   : > { %p2904_p13 = pnand %p2903_p12, %p2897_p9 }
  0x14   : > { %2907 = shalt.err (!%p2904_p13)
}
  0x15   : > { %s2920_s17 = smov [#allocation3]   ;;  %301 = sbr.rel (%p3038_p2) target bundleno = 2022 (0x7e6), region = 56 }
  0x16   : > { %2778 = dma.vmem_to_smem (!%p2776_p5), %s278_s15, 16, %s2920_s17, [#allocation4]  }
  0x1c   : > { %2913 = dma.done.wait (%p2779_p3), [#allocation4], 16  }
  0x1d   : > { %2915 = vsyncadd (%p2779_p3), [#allocation4], 4294967280 }
  0x1e   : > { %307 = sfence }
  0x1f   : > { %p338_p0 = scmp.lt.s32.totalorder %s2628_s12, 1  ;;  %s2921_s26 = smov 17   ;;  %vm440_vm0 = vcmask 138240   ;;  %v2929_v12 = vmov 0.0   ;;  %v2930_v13 = vmov 0   ;;  %v349_v14 = vld [vmem:[%s4609_s2] sm:$0xff]  ;;  %v4618_v15 = vlaneseq }
  0x20   : > { %s2922_s27 = smov 112   ;;  %s2923_s28 = smov 126   ;;  %660 = vmatprep.mubr.f32.mxu0 %v2929_v12  ;;  %2878 = vset.pattern.permute.xlu1 %v2930_v13  ;;  %vm465_vm5 = vcmask 1031168   ;;  %vm4634_vm6 = vcmask 785408   ;;  %vm478_vm7 = vcmask 916480   ;;  %vm4640_vm8 = vcmask 900096  }
  0x21   : > { %s4805_s12 = smov (!%p338_p0, %s2628_s12), 1  ;;  %s2924_s29 = smov 110   ;;  %2753 = vmatprep.subr.mxu1 %v2929_v12  ;;  %2879 = vset.pattern.permute.xlu0 %v2930_v13  ;;  %v356_v17 = vand.u32 127, %v4618_v15  ;;  %vm550_vm9 = vcmask 908288   ;;  %vm572_vm10 = vcmask 1043456   ;;  %vm533_vm11 = vcmask 1039360  }
  0x22   : > { %s2747_s18 = sshll.u32 %s4805_s12, 3  ;;  %s2748_s19 = sshll.u32 %s4805_s12, 5  ;;  %vm4631_vm12 = vcmask 777216   ;;  %vm4617_vm13 = vcmask 769024   ;;  %vm586_vm14 = vcmask 293888  }
  0x23   : > { %s342_s22 = scalar_lea.vmem %s4607_s0, %s2747_s18  ;;  %s3055_s25 = scalar_lea.vmem %s4616_s9, %s2748_s19  ;;  %v357_v18 = vadd.s32 128, %v356_v17  ;;  %v3096_v20 = vand.u32 15, %v356_v17 }
  0x24   : > { %v430_v0 = vld [vmem:[%s342_s22] sm:$0xff]  ;;  %s2925_s30 = smov 127   ;;  %s2926_s10 = smov 96  }
  0x25   : > { %436 = vrot.lane.b32.xlu0 %v430_v0, %s2921_s26  ;;  %434 = vst [vmem:[%s3055_s25] sm:$0xf] %v430_v0  ;;  %v432_v1 = vcombine.high %v430_v0, %v430_v0  ;;  %s2927_s12 = smov 111   ;;  %s2928_s13 = smov 95   ;;  %v3098_v22 = vand.u32 15, %v357_v18  ;;  %v3101_v24 = vadd.s32 4294967295, %v3096_v20  ;;  %v3110_v28 = vadd.s32 1, %v3096_v20 }
  0x26   : > { %s2931_s14 = smov 94   ;;  %s2933_s15 = smov 51  }
  0x27   : > { %435 = vst [vmem:[%s3055_s25 + $0x8] sm:$0xf] %v432_v1  ;;  %v3104_v26 = vadd.s32 1, %v3098_v22  ;;  %v3107_v27 = vadd.s32 4294967295, %v3098_v22  ;;  %vm4639_vm1 = vcmp.ge.s32.totalorder %v3101_v24, 0  ;;  %vm410_vm4 = vcmp.le.s32.totalorder %v3110_v28, 15 }
  0x28   : > { %s2934_s8 = smov 124   ;;  %s2935_s16 = smov 123  }
  0x29   : > { %438 = vrot.lane.b32.xlu0 %v432_v1, %s2921_s26  ;;  %vm411_vm2 = vcmp.le.s32.totalorder %v3104_v26, 15  ;;  %vm4637_vm3 = vcmp.ge.s32.totalorder %v3107_v27, 0  ;;  %s2943_s17 = smov 80   ;;  %s2944_s18 = smov 79  }
  0x2a   : > { %s2667_s19 = sld [smem:[#allocation3 + $0x14]]  ;;  %s2945_s20 = smov 78  }
  0x2b   : > { %s2946_s21 = smov 125   ;;  %s2681_s22 = sld [smem:[#allocation3 + $0x22]] }
  0x2c   : > { %s2947_s23 = smov 76   ;;  %s2654_s24 = sld [smem:[#allocation3 + $0x7]] }
  0x2d   : > { %s2948_s26 = smov 109  }
  0x97   : > { %v437_v2 = vpop.permute.xlu0 %436 }
  0x98   : > { %v3059_v3 = vsel %vm440_vm0, 0.0, %v437_v2 }
  0x99   : > { %472 = vrot.lane.b32.xlu1 %v3059_v3, %s2922_s27  ;;  %v524_v8 = vrot.slane %v3059_v3, 4  ;;  %v451_v34 = vsel %vm4639_vm1, %v3059_v3, 0.0 }
  0x9b   : > { %v439_v4 = vpop.permute.xlu0 %438 }
  0x9c   : > { %v3063_v5 = vsel %vm440_vm0, %v437_v2, %v439_v4  ;;  %v446_v6 = vsel %vm440_vm0, %v439_v4, 0.0 }
  0x9d   : > { %459 = vrot.lane.b32.xlu1 %v3059_v3, %s2923_s28  ;;  %v2848_v7 = vpack.i.bf16 %v446_v6, %v3063_v5  ;;  %v525_v9 = vrot.slane %v3063_v5, 4  ;;  %v526_v10 = vrot.slane %v446_v6, 4  ;;  %v452_v37 = vsel %vm4637_vm3, %v3063_v5, 0.0 }
  0x9f   : > { %2849 = vrot.lane.b32.xlu0 %v2848_v7, %s2923_s28  ;;  %v2868_v11 = vpack.i.bf16 %v526_v10, %v525_v9 }
  0xa1   : > { %485 = vrot.lane.b32.xlu1 %v3059_v3, %s2924_s29 }
  0xa3   : > { %527 = vrot.lane.b32.xlu0 %v524_v8, %s2925_s30 }
  0xa5   : > { %498 = vrot.lane.b32.xlu1 %v3059_v3, %s2926_s10 }
  0xa7   : > { %2859 = vrot.lane.b32.xlu0 %v2848_v7, %s2926_s10 }
  0xa9   : > { %2844 = vrot.lane.b32.xlu1 %v2848_v7, %s2922_s27 }
  0xab   : > { %2864 = vrot.lane.b32.xlu0 %v2848_v7, %s2927_s12 }
  0xad   : > { %2854 = vrot.lane.b32.xlu1 %v2848_v7, %s2924_s29 }
  0xaf   : > { %2869 = vrot.lane.b32.xlu0 %v2868_v11, %s2925_s30 }
  0xb1   : > { %2874 = vrot.lane.b32.xlu1 %v2868_v11, %s2928_s13 }
  0xb3   : > { %544 = vrot.lane.b32.xlu0 %v3059_v3, %s2927_s12 }
  0xb5   : > { %561 = vrot.lane.b32.xlu1 %v524_v8, %s2928_s13 }
  0xb7   : > { %513 = vrot.lane.b32.xlu0 %v3063_v5, %s2931_s14 }
  0xb9   : > { %515 = vrot.lane.b32.xlu1 %v446_v6, %s2931_s14 }
  0xbb   : > { %511 = vrot.lane.b32.xlu0 %v3059_v3, %s2931_s14 }
  0xbd   : > { %583 = vperm.xlu1 %2878, %v349_v14  }
 0x10b   : > { %v473_v16 = vpop.permute.xlu1 %472 }
 0x10f   : > { %v460_v19 = vpop.permute.xlu1 %459 }
 0x111   : > { %v2850_v21 = vpop.permute.xlu0 %2849 }
 0x112   : > { %v2852_v31 = vunpack.i.h.bf16 %v2850_v21  ;;  %v2851_v32 = vunpack.i.l.bf16 %v2850_v21 }
 0x113   : > { %v486_v23 = vpop.permute.xlu1 %485 }
 0x114   : > { %v467_v42 = vsel %vm465_vm5, %v2851_v32, %v2852_v31  ;;  %v466_v44 = vsel %vm465_vm5, %v460_v19, %v2851_v32 }
 0x115   : > { %v528_v25 = vpop.permute.xlu0 %527  ;;  %v471_v55 = vsel %vm411_vm2, %v467_v42, 0.0  ;;  %v470_v56 = vsel %vm410_vm4, %v466_v44, 0.0 }
 0x117   : > { %v499_v29 = vpop.permute.xlu1 %498 }
 0x119   : > { %v2860_v30 = vpop.permute.xlu0 %2859 }
 0x11a   : > { %v2862_v38 = vunpack.i.h.bf16 %v2860_v30  ;;  %v2861_v39 = vunpack.i.l.bf16 %v2860_v30 }
 0x11b   : > { %v2845_v33 = vpop.permute.xlu1 %2844 }
 0x11c   : > { %v2847_v35 = vunpack.i.h.bf16 %v2845_v33  ;;  %v2846_v36 = vunpack.i.l.bf16 %v2845_v33  ;;  %v506_v53 = vsel %vm4634_vm6, %v2861_v39, %v2862_v38  ;;  %v505_v1 = vsel %vm4634_vm6, %v499_v29, %v2861_v39 }
 0x11d   : > { %v2865_v40 = vpop.permute.xlu0 %2864 }
 0x11e   : > { %v479_v41 = vsel %vm478_vm7, %v473_v16, %v2846_v36  ;;  %v480_v43 = vsel %vm478_vm7, %v2846_v36, %v2847_v35  ;;  %v2867_v45 = vunpack.i.h.bf16 %v2865_v40  ;;  %v2866_v46 = vunpack.i.l.bf16 %v2865_v40 }
 0x11f   : > { %v2855_v47 = vpop.permute.xlu1 %2854  ;;  %v484_v48 = vsel %vm4637_vm3, %v480_v43, 0.0  ;;  %v483_v49 = vsel %vm4639_vm1, %v479_v41, 0.0  ;;  %v348_v43 = vld [vmem:[%s4608_s1] sm:$0xff] }
 0x120   : > { %v2857_v50 = vunpack.i.h.bf16 %v2855_v47  ;;  %v2856_v51 = vunpack.i.l.bf16 %v2855_v47  ;;  %v541_v52 = vrot.slane %v484_v48, 4  ;;  %v540_v57 = vrot.slane %v483_v49, 4 }
 0x121   : > { %v2870_v54 = vpop.permute.xlu0 %2869  ;;  %v552_v2 = vsel %vm550_vm9, %v2866_v46, %v2867_v45 }
 0x122   : > { %v492_v58 = vsel %vm4640_vm8, %v486_v23, %v2856_v51  ;;  %v493_v59 = vsel %vm4640_vm8, %v2856_v51, %v2857_v50  ;;  %v2872_v60 = vunpack.i.h.bf16 %v2870_v54  ;;  %v2871_v61 = vunpack.i.l.bf16 %v2870_v54 }
 0x123   : > { %v497_v62 = vsel %vm411_vm2, %v493_v59, 0.0  ;;  %v2875_v63 = vpop.permute.xlu1 %2874  ;;  %v496_v0 = vsel %vm410_vm4, %v492_v58, 0.0  ;;  %v576_v6 = vsel %vm572_vm10, %v471_v55, %v541_v52  ;;  %v575_v11 = vsel %vm572_vm10, %v470_v56, %v540_v57 }
 0x124   : > { %v558_v3 = vrot.slane %v497_v62, 4  ;;  %v2877_v4 = vunpack.i.h.bf16 %v2875_v63  ;;  %v2876_v5 = vunpack.i.l.bf16 %v2875_v63  ;;  %v557_v7 = vrot.slane %v496_v0, 4 }
 0x125   : > { %v545_v8 = vpop.permute.xlu0 %544  ;;  %v535_v9 = vsel %vm533_vm11, %v2871_v61, %v2872_v60  ;;  %v534_v10 = vsel %vm533_vm11, %v528_v25, %v2871_v61  ;;  %v510_v23 = vsel %vm4637_vm3, %v506_v53, 0.0  ;;  %v509_v25 = vsel %vm4639_vm1, %v505_v1, 0.0  ;;  %v353_v1 = vld [vmem:[%s4613_s6] sm:$0xff] }
 0x126   : > { %v551_v13 = vsel %vm550_vm9, %v545_v8, %v2866_v46  ;;  %v574_v14 = vsel %vm572_vm10, %v452_v37, %v535_v9  ;;  %v573_v16 = vsel %vm572_vm10, %v451_v34, %v534_v10  ;;  %v569_v17 = vsel %vm4631_vm12, %v2876_v5, %v2877_v4 }
 0x127   : > { %v562_v18 = vpop.permute.xlu1 %561  ;;  %v2763_v19 = vpack.c.bf16 %v576_v6, %v574_v14  ;;  %v2765_v21 = vpack.c.bf16 %v575_v11, %v573_v16  ;;  %v578_v29 = vsel %vm572_vm10, %v552_v2, %v558_v3  ;;  %v580_v31 = vsel %vm572_vm10, %v510_v23, %v569_v17  ;;  %v351_v2 = vld [vmem:[%s4611_s4] sm:$0xf] }
 0x128   : > { %v568_v30 = vsel %vm4631_vm12, %v562_v18, %v2876_v5  ;;  %v577_v32 = vsel %vm572_vm10, %v551_v13, %v557_v7  ;;  %v2767_v35 = vpack.c.bf16 %v580_v31, %v578_v29  ;;  %v350_v6 = vld [vmem:[%s4610_s3] sm:$0xf]  ;;  %vm4638_vm12 = vcmask 760832  }
 0x129   : > { %v579_v33 = vsel %vm572_vm10, %v509_v25, %v568_v30  ;;  %2764 = vmatprep.subr.bf16.mxu0 %v2763_v19  ;;  %v514_v34 = vpop.permute.xlu0 %513  ;;  %v352_v23 = vld [vmem:[%s4612_s5] sm:$0xff] }
 0x12a   : > { %2766 = vmatpush1.bf16.msra.mxu0 %v2765_v21  ;;  %v2769_v36 = vpack.c.bf16 %v579_v33, %v577_v32 }
 0x12b   : > { %2768 = vmatprep.subr.bf16.mxu0 %v2767_v35  ;;  %v516_v37 = vpop.permute.xlu1 %515 }
 0x12c   : > { %v519_v38 = vsel %vm4617_vm13, %v514_v34, %v516_v37 }
 0x12d   : > { %v523_v39 = vsel %vm411_vm2, %v519_v38, 0.0  ;;  %v512_v40 = vpop.permute.xlu0 %511 }
 0x12e   : > { %v518_v41 = vsel %vm4617_vm13, %v512_v40, %v514_v34  ;;  %2770 = vmatpush1.bf16.msra.mxu0 %v2769_v36 }
 0x12f   : > { %v522_v42 = vsel %vm410_vm4, %v518_v41, 0.0  ;;  %2639 = vmatprep.subr.msk.mxu0 %vm572_vm10, %v523_v39 }
 0x132   : > { %2640 = vmatpush1.msk.msra.mxu0 %vm572_vm10, %v522_v42 }
 0x133   : > { %2641 = vmatmul.mubr.msk.f32.vlgmr.msra.gmra.mrb[0].mxu0 %vm586_vm14, %v348_v43  ;;  %vm2932_vm14 = vmmov 0  }
 0x134   : > { %2755 = vmatprep.mubr.msk.f32.mxu1 %vm2932_vm14, %v2929_v12 }
 0x13c   : > { %v584_v44 = vpop.permute.xlu1 %583 }
 0x206   : > { %v662_v45 = vpop.f32.mrb[0].mxu0 }
 0x207   : > { %v663_v46 = vadd.f32 %v662_v45, %v584_v44  ;;  %v664_v47 = vpop.f32.mrb[1].mxu0 }
 0x208   : > { %v665_v48 = vadd.f32 %v664_v47, %v584_v44 }
 0x209   : > { %v669_v49 = vmin.f32 %v663_v46, 0.0  ;;  %vm667_vm15 = vcmp.gt.f32.partialorder %v663_v46, 0.0 }
 0x20a   : > { %v670_v50 = vmin.f32 %v665_v48, 0.0  ;;  %vm668_vm0 = vcmp.gt.f32.partialorder %v665_v48, 0.0 }
 0x20b   : > { %v671_v51 = vmul.f32 1.442695, %v669_v49 }
 0x20c   : > { %v673_v52 = vmul.f32 1.442695, %v670_v50 }
 0x20d   : > { %2881 = vpow2.f32 %v671_v51 }
 0x20e   : > { %2883 = vpow2.f32 %v673_v52 }
 0x217   : > { %v2882_v53 = vpop.eup %2881 }
 0x218   : > { %v2884_v54 = vpop.eup %2883  ;;  %v2642_v55 = vadd.f32 -1.0, %v2882_v53 }
 0x219   : > { %v2643_v56 = vadd.f32 -1.0, %v2884_v54 }
 0x21a   : > { %v677_v57 = vmul.f32 1.6732632, %v2642_v55 }
 0x21b   : > { %v678_v58 = vmul.f32 1.6732632, %v2643_v56 }
 0x21c   : > { %v679_v59 = vsel %vm667_vm15, %v663_v46, %v677_v57  ;;  %vm691_vm15 = vcmask 7168  }
 0x21d   : > { %v681_v60 = vmul.f32 1.050701, %v679_v59  ;;  %v680_v61 = vsel %vm668_vm0, %v665_v48, %v678_v58  ;;  %vm698_vm0 = vcmask 64512  }
 0x21e   : > { %v682_v62 = vmul.f32 1.050701, %v680_v61 }
 0x220   : > { %v688_v63 = vmax.f32 %v681_v60, %v682_v62  ;;  %v683_v0 = vadd.f32 %v682_v62, %v681_v60 }
 0x222   : > { %689 = vmax.xlane.f32.xlu1 %v688_v63  ;;  %684 = vadd.xlane.f32.xlu0 %v683_v0 }
 0x233   : > { %782 = vperm.xlu1 %2878, %v353_v1  }
 0x238   : > { %695 = vperm.xlu0 %2879, %v351_v2  }
 0x2af   : > { %v685_v3 = vpop.xlane.xlu0 %684  ;;  %v690_v5 = vpop.xlane.xlu1 %689 }
 0x2b0   : > { %v687_v4 = vmul.f32 0.00390625, %v685_v3 }
 0x2b2   : > { %v692_v7 = vsel %vm691_vm15, %v687_v4, %v690_v5  ;;  %vm785_vm15 = vcmask 31744  }
 0x2b3   : > { %2754 = vmatpush3.msra.mxu1 %v692_v7 }
 0x2b4   : > { %2756 = vmatmul.mubr.msk.f32.vlgmr.msra.gmra.mrb[0].mxu1 %vm698_vm0, %v350_v6  ;;  %2758 = vmatprep.subr.mxu1 %v2929_v12 }
 0x2b5   : > { %2760 = vmatprep.mubr.msk.f32.mxu1 %vm2932_vm14, %v2929_v12  ;;  %v783_v12 = vpop.permute.xlu1 %782 }
 0x2b7   : > { %v696_v8 = vpop.permute.xlu0 %695 }
 0x387   : > { %v768_v9 = vpop.f32.mrb[0].mxu1 }
 0x388   : > { %v769_v10 = vadd.f32 %v768_v9, %v696_v8  ;;  %v2757_v11 = vpop.f32.mrb[1].mxu1 }
 0x38a   : > { %v773_v13 = vmin.f32 %v769_v10, 0.0  ;;  %vm772_vm13 = vcmp.gt.f32.partialorder %v769_v10, 0.0 }
 0x38c   : > { %v774_v14 = vmul.f32 1.442695, %v773_v13 }
 0x38e   : > { %2885 = vpow2.f32 %v774_v14 }
 0x398   : > { %v2886_v16 = vpop.eup %2885 }
 0x399   : > { %v2645_v17 = vadd.f32 -1.0, %v2886_v16 }
 0x39b   : > { %v777_v18 = vmul.f32 1.6732632, %v2645_v17  ;;  %v1247_v17 = vstv %s2667_s19  ;;  %s2958_s19 = smov 59  }
 0x39d   : > { %v778_v19 = vsel %vm772_vm13, %v769_v10, %v777_v18  ;;  %vm914_vm13 = vcmask 416768  }
 0x39e   : > { %v779_v21 = vmul.f32 1.050701, %v778_v19 }
 0x3a0   : > { %2759 = vmatpush3.msk.msra.mxu1 %vm572_vm10, %v779_v21  ;;  %vm905_vm10 = vcmask 1040384  }
 0x3a1   : > { %2761 = vmatmul.mubr.msk.f32.vlgmr.msra.gmra.mrb[2].mxu1 %vm785_vm15, %v352_v23 }
 0x474   : > { %v858_v29 = vpop.f32.mrb[2].mxu1 }
 0x475   : > { %v859_v25 = vadd.f32 %v858_v29, %v783_v12  ;;  %v2762_v30 = vpop.f32.mrb[3].mxu1 }
 0x477   : > { %863 = vrot.lane.b32.xlu1 %v859_v25, %s2925_s30 }
 0x4e9   : > { %v864_v31 = vpop.permute.xlu1 %863 }
 0x4ea   : > { %v866_v32 = vadd.f32 %v864_v31, %v859_v25  ;;  %v1474_v31 = vstv %s2681_s22  ;;  %s2960_s22 = smov 48  }
 0x4ec   : > { %v867_v33 = vmul.f32 0.5, %v866_v32 }
 0x4ee   : > { %2887 = vtanh.f32 %v867_v33 }
 0x4f8   : > { %v2888_v34 = vpop.eup %2887 }
 0x4f9   : > { %v869_v35 = vadd.f32 1.0, %v2888_v34 }
 0x4fb   : > { %v870_v36 = vmul.f32 0.5, %v869_v35 }
 0x4fd   : > { %873 = vperm.xlu1 %2878, %v870_v36   ;;  %v1033_v36 = vstv %s2654_s24  ;;  %s3480_s24 = sld [smem:[#allocation3 + $0x1]] }
 0x57c   : > { %v874_v37 = vpop.permute.xlu1 %873 }
 0x57d   : > { %v3188_v38 = vmul.f32 %v874_v37, %v681_v60  ;;  %v3190_v39 = vmul.f32 %v874_v37, %v682_v62 }
 0x57f   : > { %4645 = vst [vmem:[#allocation6_spill] sm:$0xff] %v3188_v38  ;;  %4646 = vst [vmem:[#allocation7_spill] sm:$0xff] %v3190_v39  ;;  %v878_v40 = vrot.slane %v3188_v38, 4  ;;  %v884_v41 = vrot.slane %v3190_v39, 4 }
 0x581   : > { %v879_v42 = vadd.f32 %v878_v40, %v3188_v38  ;;  %v894_v43 = vmax.f32 %v3188_v38, %v878_v40  ;;  %v885_v44 = vadd.f32 %v884_v41, %v3190_v39  ;;  %v900_v45 = vmax.f32 %v3190_v39, %v884_v41 }
 0x583   : > { %v880_v46 = vrot.slane %v879_v42, 2  ;;  %v895_v47 = vrot.slane %v894_v43, 2  ;;  %v886_v48 = vrot.slane %v885_v44, 2  ;;  %v901_v49 = vrot.slane %v900_v45, 2 }
 0x585   : > { %v881_v50 = vadd.f32 %v880_v46, %v879_v42  ;;  %v896_v51 = vmax.f32 %v894_v43, %v895_v47  ;;  %v887_v52 = vadd.f32 %v886_v48, %v885_v44  ;;  %v902_v56 = vmax.f32 %v900_v45, %v901_v49 }
 0x587   : > { %v882_v53 = vrot.slane %v881_v50, 1  ;;  %v897_v54 = vrot.slane %v896_v51, 1  ;;  %v888_v55 = vrot.slane %v887_v52, 1  ;;  %v903_v61 = vrot.slane %v902_v56, 1 }
 0x589   : > { %v883_v57 = vadd.f32 %v882_v53, %v881_v50  ;;  %v889_v58 = vadd.f32 %v888_v55, %v887_v52  ;;  %v898_v60 = vmax.f32 %v896_v51, %v897_v54  ;;  %v904_v0 = vmax.f32 %v902_v56, %v903_v61 }
 0x58b   : > { %v891_v59 = vmul.f32 0.125, %v883_v57  ;;  %v892_v63 = vmul.f32 0.125, %v889_v58 }
 0x58d   : > { %v906_v62 = vsel %vm905_vm10, %v891_v59, %v898_v60  ;;  %v907_v1 = vsel %vm905_vm10, %v892_v63, %v904_v0 }
 0x58e   : > { %910 = vrot.lane.b32.xlu1 %v906_v62, %s2933_s15 }
 0x592   : > { %912 = vrot.lane.b32.xlu1 %v907_v1, %s2933_s15  ;;  %s2695_s15 = sld [smem:[#allocation3 + $0x30]] }
 0x598   : > { %v1704_v37 = vstv %s2695_s15  ;;  %s3504_s15 = sld [smem:[#allocation3 + $0x4c]] }
 0x600   : > { %v911_v2 = vpop.permute.xlu1 %910 }
 0x601   : > { %v3198_v3 = vsel %vm914_vm13, 0.0, %v911_v2 }
 0x602   : > { %951 = vrot.lane.b32.xlu1 %v3198_v3, %s2925_s30  ;;  %v1248_v21 = vmul.f32 %v1247_v17, %v3198_v3  ;;  %v1475_v34 = vmul.f32 %v1474_v31, %v3198_v3  ;;  %v1034_v44 = vmul.f32 %v1033_v36, %v3198_v3  ;;  %v1705_v47 = vmul.f32 %v1704_v37, %v3198_v3 }
 0x604   : > { %v913_v4 = vpop.permute.xlu1 %912  ;;  %v1040_v48 = vrot.slane %v1034_v44, 1 }
 0x605   : > { %v3202_v5 = vsel %vm914_vm13, %v911_v2, %v913_v4  ;;  %v3204_v6 = vsel %vm914_vm13, %v913_v4, 0.0  ;;  %vm1096_vm13 = vcmask 1006592  }
 0x606   : > { %955 = vrot.lane.b32.xlu0 %v3204_v6, %s2925_s30  ;;  %953 = vrot.lane.b32.xlu1 %v3202_v5, %s2925_s30  ;;  %s2936_s30 = smov 122   ;;  %v1250_v25 = vmul.f32 %v1247_v17, %v3204_v6  ;;  %v1249_v30 = vmul.f32 %v1247_v17, %v3202_v5  ;;  %v1476_v35 = vmul.f32 %v1474_v31, %v3202_v5 }
 0x607   : > { %v1477_v42 = vmul.f32 %v1474_v31, %v3204_v6  ;;  %v1706_v43 = vmul.f32 %v1704_v37, %v3202_v5  ;;  %v1707_v51 = vmul.f32 %v1704_v37, %v3204_v6  ;;  %v1035_v52 = vmul.f32 %v1033_v36, %v3202_v5 }
 0x608   : > { %v1036_v53 = vmul.f32 %v1033_v36, %v3204_v6 }
 0x609   : > { %v1041_v56 = vrot.slane %v1035_v52, 1 }
 0x60a   : > { %983 = vrot.lane.b32.xlu0 %v3202_v5, %s2923_s28  ;;  %981 = vrot.lane.b32.xlu1 %v3198_v3, %s2923_s28  ;;  %v1042_v57 = vrot.slane %v1036_v53, 1 }
 0x60e   : > { %1055 = vrot.lane.b32.xlu0 %v3198_v3, %s2934_s8  ;;  %985 = vrot.lane.b32.xlu1 %v3204_v6, %s2923_s28  ;;  %s2937_s28 = smov 108  }
 0x612   : > { %1059 = vrot.lane.b32.xlu0 %v3204_v6, %s2934_s8  ;;  %1057 = vrot.lane.b32.xlu1 %v3202_v5, %s2934_s8  ;;  %s2949_s8 = smov 93  }
 0x616   : > { %1092 = vrot.lane.b32.xlu0 %v3202_v5, %s2935_s16  ;;  %1090 = vrot.lane.b32.xlu1 %v3198_v3, %s2935_s16 }
 0x61a   : > { %1125 = vrot.lane.b32.xlu0 %v3198_v3, %s2936_s30  ;;  %1094 = vrot.lane.b32.xlu1 %v3204_v6, %s2935_s16  ;;  %s2950_s16 = smov 77  }
 0x61e   : > { %1129 = vrot.lane.b32.xlu0 %v3204_v6, %s2936_s30  ;;  %1127 = vrot.lane.b32.xlu1 %v3202_v5, %s2936_s30  ;;  %s2951_s30 = smov 75  }
 0x622   : > { %1158 = vrot.lane.b32.xlu0 %v3202_v5, %s2922_s27  ;;  %1156 = vrot.lane.b32.xlu1 %v3198_v3, %s2922_s27 }
 0x626   : > { %1186 = vrot.lane.b32.xlu0 %v3198_v3, %s2927_s12  ;;  %1160 = vrot.lane.b32.xlu1 %v3204_v6, %s2922_s27  ;;  %s2938_s27 = smov 107  }
 0x62a   : > { %1190 = vrot.lane.b32.xlu0 %v3204_v6, %s2927_s12  ;;  %1188 = vrot.lane.b32.xlu1 %v3202_v5, %s2927_s12  ;;  %s2939_s12 = smov 106  }
 0x62e   : > { %1218 = vrot.lane.b32.xlu0 %v3202_v5, %s2924_s29  ;;  %1216 = vrot.lane.b32.xlu1 %v3198_v3, %s2924_s29 }
 0x632   : > { %1290 = vrot.lane.b32.xlu0 %v3198_v3, %s2937_s28  ;;  %1220 = vrot.lane.b32.xlu1 %v3204_v6, %s2924_s29  ;;  %s2940_s29 = smov 92  }
 0x636   : > { %1294 = vrot.lane.b32.xlu0 %v3204_v6, %s2937_s28  ;;  %1292 = vrot.lane.b32.xlu1 %v3202_v5, %s2937_s28  ;;  %s2668_s28 = sld [smem:[#allocation3 + $0x15]] }
 0x63a   : > { %1323 = vrot.lane.b32.xlu0 %v3202_v5, %s2938_s27  ;;  %1321 = vrot.lane.b32.xlu1 %v3198_v3, %s2938_s27 }
 0x63c   : > { %v1268_v2 = vstv %s2668_s28  ;;  %s3517_s28 = sld [smem:[#allocation3 + $0x5a]] }
 0x63e   : > { %1352 = vrot.lane.b32.xlu0 %v3198_v3, %s2939_s12  ;;  %1325 = vrot.lane.b32.xlu1 %v3204_v6, %s2938_s27  ;;  %s2952_s27 = smov 74  }
 0x642   : > { %1356 = vrot.lane.b32.xlu0 %v3204_v6, %s2939_s12  ;;  %1354 = vrot.lane.b32.xlu1 %v3202_v5, %s2939_s12  ;;  %s2953_s12 = smov 64  }
 0x646   : > { %1385 = vrot.lane.b32.xlu0 %v3202_v5, %s2926_s10  ;;  %1383 = vrot.lane.b32.xlu1 %v3198_v3, %s2926_s10 }
 0x64a   : > { %1413 = vrot.lane.b32.xlu0 %v3198_v3, %s2928_s13  ;;  %1387 = vrot.lane.b32.xlu1 %v3204_v6, %s2926_s10  ;;  %s2941_s10 = smov 91  }
 0x64e   : > { %1417 = vrot.lane.b32.xlu0 %v3204_v6, %s2928_s13  ;;  %1415 = vrot.lane.b32.xlu1 %v3202_v5, %s2928_s13  ;;  %s2942_s13 = smov 90  }
 0x652   : > { %1445 = vrot.lane.b32.xlu0 %v3202_v5, %s2931_s14  ;;  %1443 = vrot.lane.b32.xlu1 %v3198_v3, %s2931_s14 }
 0x656   : > { %1517 = vrot.lane.b32.xlu0 %v3198_v3, %s2940_s29  ;;  %1447 = vrot.lane.b32.xlu1 %v3204_v6, %s2931_s14  ;;  %s2653_s14 = sld [smem:[#allocation3 + $0x6]] }
 0x65a   : > { %1521 = vrot.lane.b32.xlu0 %v3204_v6, %s2940_s29  ;;  %1519 = vrot.lane.b32.xlu1 %v3202_v5, %s2940_s29  ;;  %s2954_s29 = smov 63  }
 0x65c   : > { %v1012_v8 = vstv %s2653_s14  ;;  %s2956_s14 = smov 61  }
 0x65d   : > { %v1013_v11 = vmul.f32 %v1012_v8, %v3198_v3  ;;  %v1015_v16 = vmul.f32 %v1012_v8, %v3204_v6  ;;  %v1014_v23 = vmul.f32 %v1012_v8, %v3202_v5 }
 0x65e   : > { %1550 = vrot.lane.b32.xlu0 %v3202_v5, %s2941_s10  ;;  %1548 = vrot.lane.b32.xlu1 %v3198_v3, %s2941_s10 }
 0x662   : > { %1579 = vrot.lane.b32.xlu0 %v3198_v3, %s2942_s13  ;;  %1552 = vrot.lane.b32.xlu1 %v3204_v6, %s2941_s10  ;;  %s2709_s10 = sld [smem:[#allocation3 + $0x3e]] }
 0x666   : > { %1583 = vrot.lane.b32.xlu0 %v3204_v6, %s2942_s13  ;;  %1581 = vrot.lane.b32.xlu1 %v3202_v5, %s2942_s13  ;;  %s2682_s13 = sld [smem:[#allocation3 + $0x23]] }
 0x668   : > { %v1934_v44 = vstv %s2709_s10  ;;  %s3532_s10 = sld [smem:[#allocation3 + $0x4]] }
 0x66a   : > { %1612 = vrot.lane.b32.xlu0 %v3202_v5, %s2943_s17  ;;  %1610 = vrot.lane.b32.xlu1 %v3198_v3, %s2943_s17 }
 0x66e   : > { %1641 = vrot.lane.b32.xlu0 %v3198_v3, %s2944_s18  ;;  %1614 = vrot.lane.b32.xlu1 %v3204_v6, %s2943_s17  ;;  %s2955_s17 = smov 62  }
 0x672   : > { %1645 = vrot.lane.b32.xlu0 %v3204_v6, %s2944_s18  ;;  %1643 = vrot.lane.b32.xlu1 %v3202_v5, %s2944_s18  ;;  %s2957_s18 = smov 60  }
 0x674   : > { %v3285_v7 = vpop.permute.xlu1 %951 }
 0x676   : > { %1674 = vrot.lane.b32.xlu0 %v3202_v5, %s2945_s20  ;;  %1672 = vrot.lane.b32.xlu1 %v3198_v3, %s2945_s20 }
 0x678   : > { %v3289_v9 = vpop.permute.xlu0 %955  ;;  %v3291_v10 = vpop.permute.xlu1 %953 }
 0x67a   : > { %1019 = vrot.lane.b32.xlu0 %v1013_v11, %s2946_s21  ;;  %1676 = vrot.lane.b32.xlu1 %v3204_v6, %s2945_s20  ;;  %v1269_v11 = vmul.f32 %v1268_v2, %v3198_v3  ;;  %s2696_s20 = sld [smem:[#allocation3 + $0x31]] }
 0x67c   : > { %v3296_v13 = vpop.permute.xlu0 %983  ;;  %v3298_v14 = vpop.permute.xlu1 %981 }
 0x67e   : > { %1023 = vrot.lane.b32.xlu0 %v1015_v16, %s2946_s21  ;;  %1747 = vrot.lane.b32.xlu1 %v3198_v3, %s2947_s23 }
 0x680   : > { %v3304_v18 = vpop.permute.xlu0 %1055  ;;  %v3306_v19 = vpop.permute.xlu1 %985 }
 0x682   : > { %1254 = vrot.lane.b32.xlu0 %v1248_v21, %s2948_s26  ;;  %1021 = vrot.lane.b32.xlu1 %v1014_v23, %s2946_s21  ;;  %v1275_v21 = vrot.slane %v1269_v11, 1  ;;  %v1270_v23 = vmul.f32 %v1268_v2, %v3202_v5 }
 0x684   : > { %v3312_v12 = vpop.permute.xlu0 %1059  ;;  %v3314_v29 = vpop.permute.xlu1 %1057 }
 0x686   : > { %1258 = vrot.lane.b32.xlu0 %v1250_v25, %s2948_s26  ;;  %1256 = vrot.lane.b32.xlu1 %v1249_v30, %s2948_s26  ;;  %v1271_v25 = vmul.f32 %v1268_v2, %v3204_v6  ;;  %v1495_v2 = vstv %s2682_s13  ;;  %s3534_s13 = sld [smem:[#allocation3 + $0x5]] }
 0x688   : > { %v3320_v32 = vpop.permute.xlu0 %1092  ;;  %v3322_v33 = vpop.permute.xlu1 %1090 }
 0x68a   : > { %1481 = vrot.lane.b32.xlu0 %v1475_v34, %s2949_s8  ;;  %1483 = vrot.lane.b32.xlu1 %v1476_v35, %s2949_s8  ;;  %v1276_v34 = vrot.slane %v1270_v23, 1  ;;  %v1277_v35 = vrot.slane %v1271_v25, 1  ;;  %v1497_v23 = vmul.f32 %v1495_v2, %v3202_v5  ;;  %v1496_v25 = vmul.f32 %v1495_v2, %v3198_v3 }
 0x68c   : > { %v3328_v40 = vpop.permute.xlu0 %1125  ;;  %v3330_v41 = vpop.permute.xlu1 %1094 }
 0x68e   : > { %1485 = vrot.lane.b32.xlu0 %v1477_v42, %s2949_s8  ;;  %1713 = vrot.lane.b32.xlu1 %v1706_v43, %s2950_s16 }
 0x690   : > { %v3337_v45 = vpop.permute.xlu0 %1129  ;;  %v3339_v46 = vpop.permute.xlu1 %1127 }
 0x692   : > { %1711 = vrot.lane.b32.xlu0 %v1705_v47, %s2950_s16  ;;  %1043 = vrot.lane.b32.xlu1 %v1040_v48, %s2946_s21 }
 0x694   : > { %v3344_v49 = vpop.permute.xlu0 %1158  ;;  %v3346_v50 = vpop.permute.xlu1 %1156 }
 0x696   : > { %1715 = vrot.lane.b32.xlu0 %v1707_v51, %s2950_s16  ;;  %1751 = vrot.lane.b32.xlu1 %v3204_v6, %s2947_s23  ;;  %v1935_v51 = vmul.f32 %v1934_v44, %v3198_v3 }
 0x698   : > { %v3354_v54 = vpop.permute.xlu0 %1186  ;;  %v3356_v55 = vpop.permute.xlu1 %1160 }
 0x69a   : > { %1045 = vrot.lane.b32.xlu0 %v1041_v56, %s2946_s21  ;;  %1047 = vrot.lane.b32.xlu1 %v1042_v57, %s2946_s21  ;;  %v1937_v56 = vmul.f32 %v1934_v44, %v3204_v6  ;;  %v1936_v57 = vmul.f32 %v1934_v44, %v3202_v5  ;;  %v1503_v44 = vrot.slane %v1497_v23, 1  ;;  %s2959_s21 = smov 58  }
 0x69c   : > { %v3360_v58 = vpop.permute.xlu0 %1190  ;;  %v3362_v59 = vpop.permute.xlu1 %1188 }
 0x69e   : > { %1749 = vrot.lane.b32.xlu0 %v3202_v5, %s2947_s23  ;;  %1778 = vrot.lane.b32.xlu1 %v3198_v3, %s2951_s30  ;;  %s2961_s23 = smov 47  }
 0x6a0   : > { %v3367_v60 = vpop.permute.xlu0 %1218  ;;  %v3369_v61 = vpop.permute.xlu1 %1216 }
 0x6a2   : > { %1780 = vrot.lane.b32.xlu0 %v3202_v5, %s2951_s30  ;;  %1782 = vrot.lane.b32.xlu1 %v3204_v6, %s2951_s30  ;;  %s3511_s30 = sld [smem:[#allocation3 + $0x4d]] }
 0x6a4   : > { %v3373_v62 = vpop.permute.xlu0 %1290  ;;  %v3375_v63 = vpop.permute.xlu1 %1220 }
 0x6a5   : > { %4647 = vst [vmem:[#allocation8_spill] sm:$0xff] %v3373_v62 }
 0x6a6   : > { %1809 = vrot.lane.b32.xlu0 %v3198_v3, %s2952_s27  ;;  %1811 = vrot.lane.b32.xlu1 %v3202_v5, %s2952_s27 }
 0x6a8   : > { %v3379_v0 = vpop.permute.xlu0 %1294  ;;  %v3381_v1 = vpop.permute.xlu1 %1292 }
 0x6a9   : > { %4648 = vst [vmem:[#allocation9_spill] sm:$0xff] %v3379_v0  ;;  %4649 = vst [vmem:[#allocation10_spill] sm:$0xff] %v3381_v1 }
 0x6aa   : > { %1813 = vrot.lane.b32.xlu0 %v3204_v6, %s2952_s27  ;;  %1840 = vrot.lane.b32.xlu1 %v3198_v3, %s2953_s12  ;;  %s3519_s27 = sld [smem:[#allocation3 + $0x5b]] }
 0x6ac   : > { %v3385_v4 = vpop.permute.xlu0 %1323  ;;  %v3387_v8 = vpop.permute.xlu1 %1321 }
 0x6ad   : > { %4650 = vst [vmem:[#allocation11_spill] sm:$0xff] %v3385_v4  ;;  %4651 = vst [vmem:[#allocation12_spill] sm:$0xff] %v3387_v8  ;;  %v988_v4 = vsel %vm465_vm5, %v3296_v13, %v3306_v19 }
 0x6ae   : > { %1842 = vrot.lane.b32.xlu0 %v3202_v5, %s2953_s12  ;;  %1844 = vrot.lane.b32.xlu1 %v3204_v6, %s2953_s12  ;;  %s3524_s12 = sld [smem:[#allocation3 + $0x2]] }
 0x6b0   : > { %v3392_v16 = vpop.permute.xlu0 %1352  ;;  %v3394_v17 = vpop.permute.xlu1 %1325 }
 0x6b1   : > { %4652 = vst [vmem:[#allocation13_spill] sm:$0xff] %v3392_v16  ;;  %4653 = vst [vmem:[#allocation14_spill] sm:$0xff] %v3394_v17 }
 0x6b2   : > { %1871 = vrot.lane.b32.xlu0 %v3198_v3, %s2954_s29  ;;  %1278 = vrot.lane.b32.xlu1 %v1275_v21, %s2948_s26 }
 0x6b4   : > { %v3400_v30 = vpop.permute.xlu0 %1356  ;;  %v3402_v31 = vpop.permute.xlu1 %1354 }
 0x6b5   : > { %4654 = vst [vmem:[#allocation15_spill] sm:$0xff] %v3400_v30  ;;  %4655 = vst [vmem:[#allocation16_spill] sm:$0xff] %v3402_v31  ;;  %v964_v30 = vstv %s3524_s12  ;;  %s3691_s12 = sld [smem:[#allocation3 + $0x16]] }
 0x6b6   : > { %1280 = vrot.lane.b32.xlu0 %v1276_v34, %s2948_s26  ;;  %1282 = vrot.lane.b32.xlu1 %v1277_v35, %s2948_s26  ;;  %s3502_s26 = sld [smem:[#allocation3]] }
 0x6b8   : > { %v3406_v36 = vpop.permute.xlu0 %1385  ;;  %v3408_v37 = vpop.permute.xlu1 %1383 }
 0x6b9   : > { %4656 = vst [vmem:[#allocation17_spill] sm:$0xff] %v3406_v36  ;;  %4657 = vst [vmem:[#allocation18_spill] sm:$0xff] %v3408_v37  ;;  %v3578_v36 = vstv %s3519_s27  ;;  %s3689_s27 = sld [smem:[#allocation3 + $0x13]] }
 0x6ba   : > { %1875 = vrot.lane.b32.xlu0 %v3204_v6, %s2954_s29  ;;  %1873 = vrot.lane.b32.xlu1 %v3202_v5, %s2954_s29  ;;  %s3530_s29 = sld [smem:[#allocation3 + $0x3]] }
 0x6bc   : > { %v3412_v42 = vpop.permute.xlu0 %1413  ;;  %v3414_v43 = vpop.permute.xlu1 %1387 }
 0x6bd   : > { %4658 = vst [vmem:[#allocation19_spill] sm:$0xff] %v3412_v42  ;;  %4659 = vst [vmem:[#allocation20_spill] sm:$0xff] %v3414_v43 }
 0x6be   : > { %1904 = vrot.lane.b32.xlu0 %v3202_v5, %s2955_s17  ;;  %1902 = vrot.lane.b32.xlu1 %v3198_v3, %s2955_s17 }
 0x6c0   : > { %v3418_v47 = vpop.permute.xlu0 %1417  ;;  %v3420_v48 = vpop.permute.xlu1 %1415  ;;  %v970_v16 = vstv %s3530_s29  ;;  %s3696_s29 = sld [smem:[#allocation3 + $0x17]] }
 0x6c1   : > { %4660 = vst [vmem:[#allocation21_spill] sm:$0xff] %v3418_v47  ;;  %4661 = vst [vmem:[#allocation22_spill] sm:$0xff] %v3420_v48 }
 0x6c2   : > { %1941 = vrot.lane.b32.xlu0 %v1935_v51, %s2956_s14  ;;  %1906 = vrot.lane.b32.xlu1 %v3204_v6, %s2955_s17  ;;  %v1502_v51 = vrot.slane %v1496_v25, 1  ;;  %s3536_s17 = sld [smem:[#allocation3 + $0x8]] }
 0x6c4   : > { %v3425_v52 = vpop.permute.xlu0 %1445  ;;  %v3427_v53 = vpop.permute.xlu1 %1443 }
 0x6c5   : > { %4662 = vst [vmem:[#allocation23_spill] sm:$0xff] %v3425_v52  ;;  %4663 = vst [vmem:[#allocation24_spill] sm:$0xff] %v3427_v53  ;;  %v2185_v52 = vstv %s3511_s30  ;;  %s3666_s30 = sld [smem:[#allocation3 + $0x11]] }
 0x6c6   : > { %1945 = vrot.lane.b32.xlu0 %v1937_v56, %s2956_s14  ;;  %1943 = vrot.lane.b32.xlu1 %v1936_v57, %s2956_s14  ;;  %v1498_v56 = vmul.f32 %v1495_v2, %v3204_v6  ;;  %v3634_v17 = vmul.f32 %v2185_v52, %v3198_v3  ;;  %v3640_v62 = vmul.f32 %v2185_v52, %v3204_v6 }
 0x6c8   : > { %v3433_v11 = vpop.permute.xlu0 %1517  ;;  %v3435_v21 = vpop.permute.xlu1 %1447  ;;  %v1504_v39 = vrot.slane %v1498_v56, 1  ;;  %4687 = vst [vmem:[#allocation48_spill] sm:$0xff] %v3634_v17 }
 0x6c9   : > { %4664 = vst [vmem:[#allocation25_spill] sm:$0xff] %v3433_v11  ;;  %4665 = vst [vmem:[#allocation26_spill] sm:$0xff] %v3435_v21  ;;  %v2164_v21 = vstv %s3504_s15  ;;  %s2964_s15 = smov 44  }
 0x6ca   : > { %1979 = vrot.lane.b32.xlu0 %v3202_v5, %s2957_s18  ;;  %1977 = vrot.lane.b32.xlu1 %v3198_v3, %s2957_s18  ;;  %v2165_v37 = vmul.f32 %v2164_v21, %v3198_v3 }
 0x6cc   : > { %v3441_v34 = vpop.permute.xlu0 %1521  ;;  %v3443_v35 = vpop.permute.xlu1 %1519 }
 0x6cd   : > { %4666 = vst [vmem:[#allocation27_spill] sm:$0xff] %v3441_v34  ;;  %4667 = vst [vmem:[#allocation28_spill] sm:$0xff] %v3443_v35 }
 0x6ce   : > { %1507 = vrot.lane.b32.xlu0 %v1503_v44, %s2949_s8  ;;  %1505 = vrot.lane.b32.xlu1 %v1502_v51, %s2949_s8  ;;  %v1725_v51 = vstv %s2696_s20  ;;  %s3550_s20 = sld [smem:[#allocation3 + $0xb]] }
 0x6d0   : > { %v3448_v57 = vpop.permute.xlu0 %1550  ;;  %v3450_v15 = vpop.permute.xlu1 %1548 }
 0x6d1   : > { %4668 = vst [vmem:[#allocation29_spill] sm:$0xff] %v3448_v57  ;;  %4669 = vst [vmem:[#allocation30_spill] sm:$0xff] %v3450_v15  ;;  %v1728_v57 = vmul.f32 %v1725_v51, %v3204_v6 }
 0x6d2   : > { %2010 = vrot.lane.b32.xlu0 %v3202_v5, %s2958_s19  ;;  %1509 = vrot.lane.b32.xlu1 %v1504_v39, %s2949_s8  ;;  %s3509_s8 = sld [smem:[#allocation3 + $0x3f]] }
 0x6d4   : > { %v3454_v38 = vpop.permute.xlu0 %1579  ;;  %v3456_v23 = vpop.permute.xlu1 %1552 }
 0x6d5   : > { %4670 = vst [vmem:[#allocation31_spill] sm:$0xff] %v3454_v38  ;;  %4671 = vst [vmem:[#allocation32_spill] sm:$0xff] %v3456_v23 }
 0x6d6   : > { %2039 = vrot.lane.b32.xlu0 %v3198_v3, %s2959_s21  ;;  %1981 = vrot.lane.b32.xlu1 %v3204_v6, %s2957_s18  ;;  %s3543_s18 = sld [smem:[#allocation3 + $0x9]] }
 0x6d8   : > { %v3460_v2 = vpop.permute.xlu0 %1583  ;;  %v3462_v25 = vpop.permute.xlu1 %1581 }
 0x6d9   : > { %4672 = vst [vmem:[#allocation33_spill] sm:$0xff] %v3460_v2  ;;  %4673 = vst [vmem:[#allocation34_spill] sm:$0xff] %v3462_v25  ;;  %v1726_v2 = vmul.f32 %v1725_v51, %v3198_v3 }
 0x6da   : > { %2043 = vrot.lane.b32.xlu0 %v3204_v6, %s2959_s21  ;;  %2008 = vrot.lane.b32.xlu1 %v3198_v3, %s2958_s19 }
 0x6dc   : > { %v3466_v44 = vpop.permute.xlu0 %1612  ;;  %v3468_v39 = vpop.permute.xlu1 %1610 }
 0x6dd   : > { %4674 = vst [vmem:[#allocation35_spill] sm:$0xff] %v3466_v44  ;;  %4675 = vst [vmem:[#allocation36_spill] sm:$0xff] %v3468_v39  ;;  %v3483_v39 = vadd.s32 4294967293, %v3096_v20 }
 0x6de   : > { %2072 = vrot.lane.b32.xlu0 %v3202_v5, %s2960_s22  ;;  %2012 = vrot.lane.b32.xlu1 %v3204_v6, %s2958_s19  ;;  %s3548_s19 = sld [smem:[#allocation3 + $0xa]] }
 0x6df   : > { %vm384_vm14 = vcmp.ge.s32.totalorder %v3483_v39, 0 }
 0x6e0   : > { %v3472_v56 = vpop.permute.xlu0 %1641  ;;  %v3474_v38 = vpop.permute.xlu1 %1614 }
 0x6e1   : > { %4676 = vst [vmem:[#allocation37_spill] sm:$0xff] %v3472_v56  ;;  %4677 = vst [vmem:[#allocation38_spill] sm:$0xff] %v3474_v38  ;;  %v1732_v56 = vrot.slane %v1726_v2, 1  ;;  %v3490_v38 = vadd.s32 4294967293, %v3098_v22  ;;  %v925_v2 = vsel %vm384_vm14, %v3198_v3, 0.0 }
 0x6e2   : > { %2101 = vrot.lane.b32.xlu0 %v3198_v3, %s2961_s23  ;;  %2041 = vrot.lane.b32.xlu1 %v3202_v5, %s2959_s21  ;;  %s2963_s21 = smov 45  }
 0x6e3   : > { %vm385_vm0 = vcmp.ge.s32.totalorder %v3490_v38, 0 }
 0x6e4   : > { %v3485_v44 = vpop.permute.xlu0 %1645  ;;  %v3487_v25 = vpop.permute.xlu1 %1643 }
 0x6e5   : > { %4678 = vst [vmem:[#allocation39_spill] sm:$0xff] %v3485_v44  ;;  %4679 = vst [vmem:[#allocation40_spill] sm:$0xff] %v3487_v25  ;;  %v1727_v44 = vmul.f32 %v1725_v51, %v3202_v5  ;;  %v934_v51 = vstv %s3480_s24  ;;  %v1734_v25 = vrot.slane %v1728_v57, 1  ;;  %v3541_v57 = vadd.s32 4294967294, %v3096_v20  ;;  %s3643_s24 = sld [smem:[#allocation3 + $0xe]] }
 0x6e6   : > { %1735 = vrot.lane.b32.xlu0 %v1732_v56, %s2950_s16  ;;  %2070 = vrot.lane.b32.xlu1 %v3198_v3, %s2960_s22  ;;  %v926_v56 = vsel %vm385_vm0, %v3202_v5, 0.0  ;;  %v935_v11 = vmul.f32 %v934_v51, %v925_v2 }
 0x6e7   : > { %v1733_v34 = vrot.slane %v1727_v44, 1  ;;  %v936_v44 = vmul.f32 %v934_v51, %v926_v56  ;;  %v1955_v51 = vstv %s3509_s8  ;;  %vm392_vm15 = vcmp.ge.s32.totalorder %v3541_v57, 0  ;;  %s3664_s8 = sld [smem:[#allocation3 + $0x10]] }
 0x6e8   : > { %v3495_v23 = vpop.permute.xlu0 %1674  ;;  %v3497_v15 = vpop.permute.xlu1 %1672  ;;  %v939_v53 = vrot.slane %v935_v11, 1  ;;  %v957_v11 = vsel %vm533_vm11, %v3285_v7, %v3291_v10  ;;  %v3595_v7 = vadd.s32 2, %v3096_v20 }
 0x6e9   : > { %4680 = vst [vmem:[#allocation41_spill] sm:$0xff] %v3495_v23  ;;  %4681 = vst [vmem:[#allocation42_spill] sm:$0xff] %v3497_v15  ;;  %v940_v47 = vrot.slane %v936_v44, 1 }
 0x6ea   : > { %2105 = vrot.lane.b32.xlu0 %v3204_v6, %s2961_s23  ;;  %2074 = vrot.lane.b32.xlu1 %v3204_v6, %s2960_s22  ;;  %s3597_s22 = sld [smem:[#allocation3 + $0xc]]  ;;  %vm418_vm6 = vcmp.le.s32.totalorder %v3595_v7, 15 }
 0x6ec   : > { %v3526_v15 = vpop.permute.xlu0 %1019  ;;  %v3528_v23 = vpop.permute.xlu1 %1676 }
 0x6ed   : > { %4682 = vst [vmem:[#allocation43_spill] sm:$0xff] %v3528_v23  ;;  %v3546_v23 = vadd.s32 4294967294, %v3098_v22 }
 0x6ee   : > { %1739 = vrot.lane.b32.xlu0 %v1734_v25, %s2950_s16  ;;  %1737 = vrot.lane.b32.xlu1 %v1733_v34, %s2950_s16  ;;  %v928_v34 = vstv %s3502_s26  ;;  %s2962_s16 = smov 46   ;;  %s3653_s26 = sld [smem:[#allocation3 + $0xf]] }
 0x6ef   : > { %vm4641_vm10 = vcmp.ge.s32.totalorder %v3546_v23, 0  ;;  %v929_v42 = vmul.f32 %v928_v34, %v925_v2  ;;  %v930_v44 = vmul.f32 %v928_v34, %v926_v56  ;;  %v958_v2 = vsel %vm533_vm11, %v3291_v10, %v3289_v9 }
 0x6f0   : > { %v3552_v35 = vpop.permute.xlu0 %1023  ;;  %v3554_v25 = vpop.permute.xlu1 %1747  ;;  %v3614_v34 = vadd.s32 3, %v3096_v20  ;;  %vm1061_vm11 = vcmask 1014784   ;;  %v1956_v9 = vmul.f32 %v1955_v51, %v3198_v3  ;;  %v3621_v10 = vmul.f32 %v1955_v51, %v3204_v6 }
 0x6f1   : > { %4683 = vst [vmem:[#allocation44_spill] sm:$0xff] %v3554_v25  ;;  %v3569_v25 = vstv %s3517_s28  ;;  %v943_v31 = vadd.f32 %v939_v53, %v929_v42  ;;  %v944_v56 = vadd.f32 %v940_v47, %v930_v44  ;;  %v3604_v42 = vadd.s32 2, %v3098_v22  ;;  %s3669_s28 = sld [smem:[#allocation3 + $0x12]] }
 0x6f2   : > { %2134 = vrot.lane.b32.xlu0 %v3202_v5, %s2962_s16  ;;  %2103 = vrot.lane.b32.xlu1 %v3202_v5, %s2961_s23  ;;  %s3599_s23 = sld [smem:[#allocation3 + $0xd]]  ;;  %v2167_v47 = vmul.f32 %v2164_v21, %v3204_v6  ;;  %v987_v20 = vsel %vm465_vm5, %v3298_v14, %v3296_v13  ;;  %v1962_v19 = vrot.slane %v1956_v9, 1  ;;  %vm426_vm8 = vcmp.le.s32.totalorder %v3614_v34, 15 }
 0x6f3   : > { %v991_v13 = vsel %vm4639_vm1, %v987_v20, 0.0  ;;  %vm419_vm5 = vcmp.le.s32.totalorder %v3604_v42, 15  ;;  %vm1025_vm1 = vcmask 1022976  }
 0x6f4   : > { %v3572_v48 = vpop.permute.xlu0 %1254  ;;  %v3574_v43 = vpop.permute.xlu1 %1021 }
 0x6f5   : > { %4684 = vst [vmem:[#allocation45_spill] sm:$0xff] %v3572_v48  ;;  %v961_v48 = vsel %vm392_vm15, %v957_v11, 0.0  ;;  %v962_v11 = vsel %vm4641_vm10, %v958_v2, 0.0  ;;  %v3624_v2 = vmul.f32 %v1955_v51, %v3202_v5 }
 0x6f6   : > { %2171 = vrot.lane.b32.xlu0 %v2165_v37, %s2963_s21  ;;  %2132 = vrot.lane.b32.xlu1 %v3198_v3, %s2962_s16  ;;  %v965_v44 = vmul.f32 %v964_v30, %v961_v48  ;;  %v971_v8 = vmul.f32 %v970_v16, %v961_v48  ;;  %v3630_v48 = vadd.s32 3, %v3098_v22 }
 0x6f8   : > { %v3606_v53 = vpop.permute.xlu0 %1258  ;;  %v3608_v37 = vpop.permute.xlu1 %1256  ;;  %v967_v14 = vadd.f32 %v965_v44, %v943_v31  ;;  %v975_v22 = vrot.slane %v971_v8, 1  ;;  %vm427_vm10 = vcmp.le.s32.totalorder %v3630_v48, 15  ;;  %v4801_v48 = vlaneseq }
 0x6f9   : > { %4685 = vst [vmem:[#allocation46_spill] sm:$0xff] %v3606_v53  ;;  %4686 = vst [vmem:[#allocation47_spill] sm:$0xff] %v3608_v37  ;;  %v966_v53 = vmul.f32 %v964_v30, %v962_v11  ;;  %v972_v37 = vmul.f32 %v970_v16, %v962_v11  ;;  %v3649_v16 = vmul.f32 %v2185_v52, %v3202_v5  ;;  %v992_v52 = vsel %vm4637_vm3, %v988_v4, 0.0 }
 0x6fa   : > { %2175 = vrot.lane.b32.xlu0 %v2167_v47, %s2963_s21  ;;  %2136 = vrot.lane.b32.xlu1 %v3204_v6, %s2962_s16  ;;  %v2166_v47 = vmul.f32 %v2164_v21, %v3202_v5  ;;  %v3674_v4 = vmul.f32 %v3578_v36, %v3198_v3  ;;  %v979_v11 = vadd.f32 %v975_v22, %v967_v14  ;;  %v4689_v21 = vstv %s3532_s10  ;;  %s2965_s10 = smov 43   ;;  %s2968_s16 = smov 31  }
 0x6fb   : > { %v968_v9 = vadd.f32 %v966_v53, %v944_v56  ;;  %v976_v20 = vrot.slane %v972_v37, 1  ;;  %v995_v8 = vmul.f32 %v4689_v21, %v991_v13  ;;  %v4690_v53 = vstv %s3534_s13  ;;  %s3815_s13 = sld [smem:[#allocation3 + $0x18]] }
 0x6fc   : > { %v1482_v51 = vpop.permute.xlu0 %1481  ;;  %v1484_v0 = vpop.permute.xlu1 %1483  ;;  %v1001_v37 = vmul.f32 %v4690_v53, %v991_v13  ;;  %v4691_v44 = vmov %v4689_v21  ;;  %v4692_v1 = vmov %v4690_v53  ;;  %vm1131_vm3 = vcmask 998400  }
 0x6fd   : > { %v3646_v30 = vsel %vm4638_vm12, %v1482_v51, %v1484_v0  ;;  %v996_v17 = vmul.f32 %v4691_v44, %v992_v52  ;;  %v1002_v31 = vmul.f32 %v4692_v1, %v992_v52  ;;  %v3704_v1 = vmul.f32 %v3569_v25, %v3204_v6 }
 0x6fe   : > { %4688 = vst [vmem:[#allocation49_spill] sm:$0xff] %v3646_v30  ;;  %2209 = vrot.lane.b32.xlu0 %v3202_v5, %s2964_s15  ;;  %2173 = vrot.lane.b32.xlu1 %v2166_v47, %s2963_s21  ;;  %v3708_v14 = vmul.f32 %v3569_v25, %v3202_v5  ;;  %v3712_v22 = vmul.f32 %v3578_v36, %v3204_v6  ;;  %v1005_v53 = vrot.slane %v1001_v37, 1  ;;  %v1235_v56 = vstv %s3689_s27  ;;  %s4062_s27 = sld [smem:[#allocation3 + $0x25]] }
 0x6ff   : > { %v980_v13 = vadd.f32 %v976_v20, %v968_v9  ;;  %v3717_v44 = vmul.f32 %v3578_v36, %v3202_v5  ;;  %v1063_v9 = vsel %vm1061_vm11, %v3314_v29, %v3312_v12  ;;  %v1097_v20 = vsel %vm1096_vm13, %v3322_v33, %v3320_v32 }
 0x700   : > { %v1486_v47 = vpop.permute.xlu0 %1485  ;;  %v1714_v51 = vpop.permute.xlu1 %1713  ;;  %v1006_v21 = vrot.slane %v1002_v31, 1  ;;  %v1304_v12 = vstv %s3691_s12  ;;  %s2971_s12 = smov 28  }
 0x701   : > { %v3680_v30 = vsel %vm4638_vm12, %v1484_v0, %v1486_v47  ;;  %vm4642_vm12 = vcmask 629760   ;;  %v3700_v0 = vmul.f32 %v3569_v25, %v3198_v3  ;;  %v1062_v25 = vsel %vm1061_vm11, %v3304_v18, %v3314_v29 }
 0x702   : > { %1965 = vrot.lane.b32.xlu0 %v1962_v19, %s2956_s14  ;;  %2207 = vrot.lane.b32.xlu1 %v3198_v3, %s2964_s15  ;;  %v997_v47 = vadd.f32 %v995_v8, %v979_v11  ;;  %v998_v18 = vadd.f32 %v996_v17, %v980_v13  ;;  %v1067_v17 = vsel %vm411_vm2, %v1063_v9, 0.0  ;;  %v1101_v8 = vsel %vm418_vm6, %v1097_v20, 0.0 }
 0x703   : > { %v1098_v13 = vsel %vm1096_vm13, %v3320_v32, %v3330_v41  ;;  %v1027_v9 = vsel %vm1025_vm1, %v3574_v43, %v3552_v35  ;;  %v4694_v29 = vrot.slane %v3621_v10, 1  ;;  %v4695_v32 = vrot.slane %v3624_v2, 1 }
 0x704   : > { %v1712_v19 = vpop.permute.xlu0 %1711  ;;  %v1044_v52 = vpop.permute.xlu1 %1043  ;;  %v1009_v31 = vadd.f32 %v1005_v53, %v997_v47  ;;  %v1010_v33 = vadd.f32 %v1006_v21, %v998_v18  ;;  %v4699_v47 = vstv %s3550_s20  ;;  %v1102_v53 = vsel %vm419_vm5, %v1098_v13, 0.0  ;;  %s3857_s20 = sld [smem:[#allocation3 + $0x1b]] }
 0x705   : > { %v3731_v36 = vsel %vm4642_vm12, %v1712_v19, %v1714_v51  ;;  %v1066_v19 = vsel %vm410_vm4, %v1062_v25, 0.0  ;;  %v1026_v25 = vsel %vm1025_vm1, %v3526_v15, %v3574_v43  ;;  %v4696_v15 = vstv %s3536_s17 }
 0x706   : > { %4693 = vst [vmem:[#allocation50_spill] sm:$0xff] %v3731_v36  ;;  %2240 = vrot.lane.b32.xlu0 %v3202_v5, %s2965_s10  ;;  %2211 = vrot.lane.b32.xlu1 %v3204_v6, %s2964_s15  ;;  %v1070_v41 = vmul.f32 %v4696_v15, %v1066_v19  ;;  %v4697_v36 = vstv %s3543_s18  ;;  %v1111_v21 = vmul.f32 %v4699_v47, %v1101_v8  ;;  %vm1753_vm11 = vcmask 621568   ;;  %s3838_s18 = sld [smem:[#allocation3 + $0x1a]]  ;;  %s2969_s15 = smov 30  }
 0x707   : > { %v1076_v43 = vmul.f32 %v4697_v36, %v1066_v19  ;;  %v4698_v35 = vmov %v4697_v36  ;;  %v1030_v18 = vadd.f32 %v1026_v25, %v1009_v31  ;;  %v1031_v10 = vadd.f32 %v1027_v9, %v1010_v33 }
 0x708   : > { %v1716_v11 = vpop.permute.xlu0 %1715  ;;  %v1752_v37 = vpop.permute.xlu1 %1751  ;;  %v1133_v36 = vsel %vm1131_vm3, %v3339_v46, %v3337_v45  ;;  %v4701_v45 = vstv %s3548_s19  ;;  %s2967_s19 = smov 32   ;;  %vm4713_vm13 = vcmask 900096  }
 0x709   : > { %v3758_v20 = vsel %vm4642_vm12, %v1714_v51, %v1716_v11  ;;  %v1077_v51 = vmul.f32 %v4698_v35, %v1067_v17  ;;  %v1310_v11 = vstv %s3696_s29  ;;  %v4700_v35 = vstv %s3536_s17  ;;  %s3827_s17 = sld [smem:[#allocation3 + $0x19]]  ;;  %s4070_s29 = sld [smem:[#allocation3 + $0x26]] }
 0x70a   : > { %1969 = vrot.lane.b32.xlu0 %v4694_v29, %s2956_s14  ;;  %1967 = vrot.lane.b32.xlu1 %v4695_v32, %s2956_s14  ;;  %v1132_v32 = vsel %vm1131_vm3, %v3328_v40, %v3339_v46  ;;  %v1071_v13 = vmul.f32 %v4700_v35, %v1067_v17  ;;  %s2966_s14 = smov 42   ;;  %v1080_v40 = vrot.slane %v1076_v43, 1  ;;  %v1105_v46 = vmul.f32 %v4701_v45, %v1101_v8 }
 0x70b   : > { %v1081_v25 = vrot.slane %v1077_v51, 1  ;;  %v1136_v17 = vsel %vm426_vm8, %v1132_v32, 0.0  ;;  %v1115_v43 = vrot.slane %v1111_v21, 1  ;;  %v1162_v8 = vsel %vm478_vm7, %v3346_v50, %v3344_v49 }
 0x70c   : > { %v1046_v29 = vpop.permute.xlu0 %1045  ;;  %v1048_v2 = vpop.permute.xlu1 %1047  ;;  %v1163_v51 = vsel %vm478_vm7, %v3344_v49, %v3356_v55  ;;  %v4704_v49 = vstv %s3597_s22  ;;  %v4705_v21 = vstv %s3599_s23  ;;  %vm1296_vm3 = vcmask 883712   ;;  %s3884_s22 = sld [smem:[#allocation3 + $0x1c]]  ;;  %s3886_s23 = sld [smem:[#allocation3 + $0x1d]] }
 0x70d   : > { %v1049_v19 = vsel %vm1025_vm1, %v1044_v52, %v1046_v29  ;;  %v1050_v15 = vsel %vm1025_vm1, %v1046_v29, %v1048_v2  ;;  %v4702_v52 = vmov %v4699_v47  ;;  %v1137_v47 = vsel %vm427_vm10, %v1133_v36, 0.0 }
 0x70e   : > { %v1053_v31 = vadd.f32 %v1049_v19, %v1030_v18  ;;  %v1054_v33 = vadd.f32 %v1050_v15, %v1031_v10  ;;  %2269 = vrot.lane.b32.xlu0 %v3198_v3, %s2966_s14  ;;  %2238 = vrot.lane.b32.xlu1 %v3198_v3, %s2965_s10  ;;  %v1112_v9 = vmul.f32 %v4702_v52, %v1102_v53  ;;  %vm1784_vm1 = vcmask 613376  }
 0x70f   : > { %v1140_v55 = vmul.f32 %v4704_v49, %v1136_v17  ;;  %v4706_v35 = vmov %v4705_v21  ;;  %v4707_v52 = vmov %v4704_v49  ;;  %vm1815_vm7 = vcmask 605184  }
 0x710   : > { %v1072_v18 = vadd.f32 %v1070_v41, %v1053_v31  ;;  %v1073_v10 = vadd.f32 %v1071_v13, %v1054_v33  ;;  %v3801_v29 = vpop.permute.xlu0 %1749  ;;  %v1779_v2 = vpop.permute.xlu1 %1778  ;;  %v4703_v41 = vmov %v4701_v45  ;;  %v1116_v50 = vrot.slane %v1112_v9, 1 }
 0x711   : > { %v3811_v32 = vsel %vm1753_vm11, %v3801_v29, %v1752_v37  ;;  %v1106_v36 = vmul.f32 %v4703_v41, %v1102_v53  ;;  %v1146_v37 = vmul.f32 %v4705_v21, %v1136_v17  ;;  %v1147_v13 = vmul.f32 %v4706_v35, %v1137_v47 }
 0x712   : > { %v1084_v19 = vadd.f32 %v1080_v40, %v1072_v18  ;;  %v1085_v15 = vadd.f32 %v1081_v25, %v1073_v10  ;;  %2273 = vrot.lane.b32.xlu0 %v3204_v6, %s2966_s14  ;;  %2242 = vrot.lane.b32.xlu1 %v3204_v6, %s2965_s10  ;;  %v1166_v53 = vsel %vm384_vm14, %v1162_v8, 0.0  ;;  %v1167_v31 = vsel %vm385_vm0, %v1163_v51, 0.0  ;;  %s4079_s10 = sld [smem:[#allocation3 + $0x27]] }
 0x713   : > { %v1141_v9 = vmul.f32 %v4707_v52, %v1137_v47  ;;  %v1192_v17 = vsel %vm550_vm9, %v3354_v54, %v3362_v59  ;;  %v1150_v54 = vrot.slane %v1146_v37, 1  ;;  %v1151_v47 = vrot.slane %v1147_v13, 1 }
 0x714   : > { %v1107_v33 = vadd.f32 %v1105_v46, %v1084_v19  ;;  %v1108_v40 = vadd.f32 %v1106_v36, %v1085_v15  ;;  %v1781_v25 = vpop.permute.xlu0 %1780  ;;  %v1783_v45 = vpop.permute.xlu1 %1782  ;;  %v1193_v46 = vsel %vm550_vm9, %v3362_v59, %v3360_v58  ;;  %v4710_v58 = vstv %s3643_s24  ;;  %s3897_s24 = sld [smem:[#allocation3 + $0x1e]] }
 0x715   : > { %v3841_v18 = vsel %vm1784_vm1, %v1779_v2, %v1781_v25  ;;  %v3844_v10 = vsel %vm1784_vm1, %v1781_v25, %v1783_v45  ;;  %v4708_v2 = vstv %s3653_s26  ;;  %v1170_v59 = vmul.f32 %v4710_v58, %v1166_v53  ;;  %vm4714_vm1 = vmmov %vm4713_vm13  ;;  %s3904_s26 = sld [smem:[#allocation3 + $0x1f]] }
 0x716   : > { %v1119_v8 = vadd.f32 %v1115_v43, %v1107_v33  ;;  %v1120_v51 = vadd.f32 %v1116_v50, %v1108_v40  ;;  %2302 = vrot.lane.b32.xlu0 %v3202_v5, %s2967_s19  ;;  %2271 = vrot.lane.b32.xlu1 %v3202_v5, %s2966_s14  ;;  %v1176_v41 = vmul.f32 %v4708_v2, %v1166_v53  ;;  %v1196_v43 = vsel %vm392_vm15, %v1192_v17, 0.0  ;;  %s4089_s14 = sld [smem:[#allocation3 + $0x28]] }
 0x717   : > { %v4709_v36 = vmov %v4708_v2  ;;  %v4711_v35 = vmov %v4710_v58  ;;  %vm4712_vm9 = vcmp.ge.s32.totalorder %v3546_v23, 0  ;;  %v1222_v33 = vsel %vm4713_vm13, %v3369_v61, %v3367_v60 }
 0x718   : > { %v1177_v19 = vmul.f32 %v4709_v36, %v1167_v31  ;;  %v1142_v15 = vadd.f32 %v1140_v55, %v1119_v8  ;;  %v1143_v50 = vadd.f32 %v1141_v9, %v1120_v51  ;;  %v1810_v49 = vpop.permute.xlu0 %1809  ;;  %v1812_v21 = vpop.permute.xlu1 %1811  ;;  %v1171_v37 = vmul.f32 %v4711_v35, %v1167_v31  ;;  %v4721_v35 = vld [vmem:[#allocation10_spill] sm:$0xff] }
 0x719   : > { %v1197_v13 = vsel %vm4712_vm9, %v1193_v46, 0.0  ;;  %v3871_v53 = vsel %vm1815_vm7, %v1810_v49, %v1812_v21  ;;  %v1223_v55 = vsel %vm4714_vm1, %v3367_v60, %v3375_v63  ;;  %vm1327_vm12 = vcmask 875520  }
 0x71a   : > { %v1335_v40 = vstv %s3815_s13  ;;  %v1154_v25 = vadd.f32 %v1150_v54, %v1142_v15  ;;  %v1155_v45 = vadd.f32 %v1151_v47, %v1143_v50  ;;  %2331 = vrot.lane.b32.xlu0 %v3198_v3, %s2968_s16  ;;  %2300 = vrot.lane.b32.xlu1 %v3198_v3, %s2967_s19  ;;  %v1180_v61 = vrot.slane %v1176_v41, 1  ;;  %s2972_s13 = smov 27  }
 0x71b   : > { %v1181_v31 = vrot.slane %v1177_v19, 1  ;;  %v4715_v52 = vstv %s3666_s30  ;;  %v1341_v17 = vstv %s3827_s17  ;;  %vm4717_vm9 = vcmp.ge.s32.totalorder %v3101_v24, 0  ;;  %s4027_s30 = sld [smem:[#allocation3 + $0x20]]  ;;  %s4094_s17 = sld [smem:[#allocation3 + $0x29]] }
 0x71c   : > { %v1206_v9 = vmul.f32 %v4715_v52, %v1196_v43  ;;  %v4716_v60 = vmov %v4715_v52  ;;  %v1226_v46 = vsel %vm4717_vm9, %v1222_v33, 0.0  ;;  %v1814_v8 = vpop.permute.xlu0 %1813  ;;  %v1841_v51 = vpop.permute.xlu1 %1840  ;;  %v1172_v54 = vadd.f32 %v1170_v59, %v1154_v25 }
 0x71d   : > { %v1207_v63 = vmul.f32 %v4716_v60, %v1197_v13  ;;  %v1173_v47 = vadd.f32 %v1171_v37, %v1155_v45  ;;  %v4718_v2 = vstv %s3664_s8  ;;  %vm4719_vm13 = vcmp.ge.s32.totalorder %v3107_v27, 0  ;;  %v4722_v37 = vld [vmem:[#allocation8_spill] sm:$0xff]  ;;  %s2970_s8 = smov 29  }
 0x71e   : > { %v1200_v41 = vmul.f32 %v4718_v2, %v1196_v43  ;;  %v1227_v36 = vsel %vm4719_vm13, %v1223_v55, 0.0  ;;  %v1366_v19 = vstv %s3838_s18  ;;  %v3900_v58 = vsel %vm1815_vm7, %v1812_v21, %v1814_v8  ;;  %2335 = vrot.lane.b32.xlu0 %v3204_v6, %s2968_s16  ;;  %2304 = vrot.lane.b32.xlu1 %v3204_v6, %s2967_s19  ;;  %s4109_s18 = sld [smem:[#allocation3 + $0x2a]]  ;;  %s4129_s19 = sld [smem:[#allocation3 + $0x2b]] }
 0x71f   : > { %v4720_v15 = vmov %v4718_v2  ;;  %vm1358_vm1 = vcmask 867328   ;;  %vm1846_vm9 = vcmask 523264   ;;  %v1184_v59 = vadd.f32 %v1180_v61, %v1172_v54 }
 0x720   : > { %v1201_v50 = vmul.f32 %v4720_v15, %v1197_v13  ;;  %v1185_v43 = vadd.f32 %v1181_v31, %v1173_v47  ;;  %v1210_v49 = vrot.slane %v1206_v9, 1  ;;  %v1236_v21 = vmul.f32 %v1235_v56, %v1226_v46  ;;  %v1843_v45 = vpop.permute.xlu0 %1842  ;;  %v1845_v52 = vpop.permute.xlu1 %1844  ;;  %v4724_v31 = vld [vmem:[#allocation9_spill] sm:$0xff] }
 0x721   : > { %v1297_v13 = vsel %vm1296_vm3, %v4722_v37, %v4721_v35  ;;  %v1372_v33 = vstv %s3857_s20  ;;  %v1211_v55 = vrot.slane %v1207_v63, 1  ;;  %v1237_v25 = vmul.f32 %v1235_v56, %v1227_v36  ;;  %s4149_s20 = sld [smem:[#allocation3 + $0x2d]] }
 0x722   : > { %v1202_v60 = vadd.f32 %v1200_v41, %v1184_v59  ;;  %v1203_v8 = vadd.f32 %v1201_v50, %v1185_v43  ;;  %v4723_v61 = vstv %s3669_s28  ;;  %v1298_v9 = vsel %vm1296_vm3, %v4721_v35, %v4724_v31  ;;  %v4726_v41 = vld [vmem:[#allocation48_spill] sm:$0xff]  ;;  %2333 = vrot.lane.b32.xlu1 %v3202_v5, %s2968_s16  ;;  %s4060_s28 = sld [smem:[#allocation3 + $0x24]]  ;;  %s2973_s16 = smov 26  }
 0x723   : > { %v1230_v54 = vmul.f32 %v4723_v61, %v1226_v46  ;;  %v3924_v47 = vsel %vm1846_vm9, %v1841_v51, %v1843_v45  ;;  %v3927_v2 = vsel %vm1846_vm9, %v1843_v45, %v1845_v52  ;;  %v4725_v63 = vmov %v4723_v61 }
 0x724   : > { %v1231_v56 = vmul.f32 %v4725_v63, %v1227_v36  ;;  %v1301_v15 = vsel %vm410_vm4, %v1297_v13, 0.0  ;;  %v4727_v50 = vrot.slane %v4726_v41, 1  ;;  %v1214_v46 = vadd.f32 %v1210_v49, %v1202_v60  ;;  %v1872_v13 = vpop.permute.xlu0 %1871  ;;  %v1279_v45 = vpop.permute.xlu1 %1278  ;;  %v4728_v49 = vld [vmem:[#allocation11_spill] sm:$0xff]  ;;  %v4729_v60 = vld [vmem:[#allocation12_spill] sm:$0xff] }
 0x725   : > { %v1215_v51 = vadd.f32 %v1211_v55, %v1203_v8  ;;  %v1240_v59 = vrot.slane %v1236_v21, 1  ;;  %v1396_v43 = vstv %s3884_s22  ;;  %v1402_v35 = vstv %s3886_s23  ;;  %v4730_v21 = vld [vmem:[#allocation14_spill] sm:$0xff]  ;;  %s4172_s22 = sld [smem:[#allocation3 + $0x2c]]  ;;  %s4174_s23 = sld [smem:[#allocation3 + $0x2f]] }
 0x726   : > { %2195 = vrot.lane.b32.xlu0 %v4727_v50, %s2963_s21  ;;  %vm1260_vm3 = vcmask 891904   ;;  %v1241_v36 = vrot.slane %v1237_v25, 1  ;;  %v1302_v37 = vsel %vm411_vm2, %v1298_v9, 0.0  ;;  %v1232_v52 = vadd.f32 %v1230_v54, %v1214_v46 }
 0x727   : > { %v1233_v61 = vadd.f32 %v1231_v56, %v1215_v51  ;;  %v1305_v31 = vmul.f32 %v1304_v12, %v1301_v15  ;;  %v1328_v55 = vsel %vm1327_vm12, %v4729_v60, %v4728_v49  ;;  %v1329_v8 = vsel %vm1327_vm12, %v4728_v49, %v4730_v21  ;;  %v4733_v60 = vld [vmem:[#allocation47_spill] sm:$0xff]  ;;  %v4734_v49 = vld [vmem:[#allocation45_spill] sm:$0xff] }
 0x728   : > { %v1311_v63 = vmul.f32 %v1310_v11, %v1301_v15  ;;  %v1432_v41 = vstv %s3904_s26  ;;  %v4731_v9 = vrot.slane %v3640_v62, 1  ;;  %v4732_v54 = vrot.slane %v3649_v16, 1  ;;  %v4735_v15 = vld [vmem:[#allocation46_spill] sm:$0xff]  ;;  %s4215_s26 = sld [smem:[#allocation3 + $0x33]] }
 0x729   : > { %v1244_v56 = vadd.f32 %v1240_v59, %v1232_v52  ;;  %v1245_v50 = vadd.f32 %v1241_v36, %v1233_v61  ;;  %v1306_v46 = vmul.f32 %v1304_v12, %v1302_v37  ;;  %v1312_v51 = vmul.f32 %v1310_v11, %v1302_v37  ;;  %v1281_v59 = vpop.permute.xlu0 %1280  ;;  %v1283_v11 = vpop.permute.xlu1 %1282  ;;  %v4736_v37 = vld [vmem:[#allocation16_spill] sm:$0xff]  ;;  %v4737_v52 = vld [vmem:[#allocation13_spill] sm:$0xff] }
 0x72a   : > { %2199 = vrot.lane.b32.xlu0 %v4731_v9, %s2963_s21  ;;  %2197 = vrot.lane.b32.xlu1 %v4732_v54, %s2963_s21  ;;  %v1261_v21 = vsel %vm1260_vm3, %v4734_v49, %v4733_v60  ;;  %v1262_v25 = vsel %vm1260_vm3, %v4733_v60, %v4735_v15  ;;  %v1332_v62 = vsel %vm418_vm6, %v1328_v55, 0.0  ;;  %v1333_v16 = vsel %vm419_vm5, %v1329_v8, 0.0  ;;  %v4738_v9 = vld [vmem:[#allocation15_spill] sm:$0xff]  ;;  %s3982_s21 = sld [smem:[#allocation3 + $0x21]] }
 0x72b   : > { %v1265_v36 = vadd.f32 %v1261_v21, %v1244_v56  ;;  %v1266_v12 = vadd.f32 %v1262_v25, %v1245_v50  ;;  %v1359_v61 = vsel %vm1358_vm1, %v4737_v52, %v4736_v37  ;;  %v1360_v54 = vsel %vm1358_vm1, %v4736_v37, %v4738_v9  ;;  %v4739_v37 = vld [vmem:[#allocation17_spill] sm:$0xff]  ;;  %v4742_v9 = vld [vmem:[#allocation20_spill] sm:$0xff] }
 0x72c   : > { %v1284_v55 = vsel %vm1260_vm3, %v1279_v45, %v1281_v59  ;;  %v1285_v60 = vsel %vm1260_vm3, %v1281_v59, %v1283_v11  ;;  %v1315_v8 = vrot.slane %v1311_v63, 1  ;;  %vm1877_vm12 = vcmask 515072  }
 0x72d   : > { %v1288_v56 = vadd.f32 %v1284_v55, %v1265_v36  ;;  %v1289_v25 = vadd.f32 %v1285_v60, %v1266_v12  ;;  %v1316_v50 = vrot.slane %v1312_v51, 1  ;;  %v1336_v49 = vmul.f32 %v1335_v40, %v1332_v62  ;;  %v1876_v12 = vpop.permute.xlu0 %1875  ;;  %v1874_v11 = vpop.permute.xlu1 %1873  ;;  %v4740_v51 = vld [vmem:[#allocation18_spill] sm:$0xff] }
 0x72e   : > { %2364 = vrot.lane.b32.xlu0 %v3202_v5, %s2969_s15  ;;  %2362 = vrot.lane.b32.xlu1 %v3198_v3, %s2969_s15  ;;  %v1342_v21 = vmul.f32 %v1341_v17, %v1332_v62  ;;  %v1343_v45 = vmul.f32 %v1341_v17, %v1333_v16  ;;  %v1363_v63 = vsel %vm426_vm8, %v1359_v61, 0.0  ;;  %v1364_v15 = vsel %vm427_vm10, %v1360_v54, 0.0 }
 0x72f   : > { %v1307_v59 = vadd.f32 %v1305_v31, %v1288_v56  ;;  %v1308_v36 = vadd.f32 %v1306_v46, %v1289_v25  ;;  %vm4741_vm7 = vcmask 785408   ;;  %v4002_v62 = vsel %vm1877_vm12, %v1872_v13, %v1874_v11 }
 0x730   : > { %v1389_v52 = vsel %vm4741_vm7, %v4740_v51, %v4739_v37  ;;  %vm4743_vm13 = vmmov %vm4741_vm7  ;;  %v4004_v61 = vsel %vm1877_vm12, %v1874_v11, %v1876_v12  ;;  %v1337_v54 = vmul.f32 %v1335_v40, %v1333_v16  ;;  %vm1908_vm1 = vcmask 506880   ;;  %v4747_v12 = vld [vmem:[#allocation21_spill] sm:$0xff] }
 0x731   : > { %v1390_v17 = vsel %vm4743_vm13, %v4739_v37, %v4742_v9  ;;  %v1319_v31 = vadd.f32 %v1315_v8, %v1307_v59  ;;  %v1320_v46 = vadd.f32 %v1316_v50, %v1308_v36  ;;  %v1346_v55 = vrot.slane %v1342_v21, 1  ;;  %v1903_v50 = vpop.permute.xlu1 %1902  ;;  %v4744_v59 = vld [vmem:[#allocation22_spill] sm:$0xff] }
 0x732   : > { %2401 = vrot.lane.b32.xlu0 %v3700_v0, %s2970_s8  ;;  %2366 = vrot.lane.b32.xlu1 %v3204_v6, %s2969_s15  ;;  %v1347_v60 = vrot.slane %v1343_v45, 1  ;;  %v1373_v13 = vmul.f32 %v1372_v33, %v1363_v63  ;;  %v1374_v56 = vmul.f32 %v1372_v33, %v1364_v15  ;;  %v1393_v40 = vsel %vm384_vm14, %v1389_v52, 0.0  ;;  %v1905_v0 = vpop.permute.xlu0 %1904  ;;  %v4745_v45 = vld [vmem:[#allocation19_spill] sm:$0xff]  ;;  %s4228_s15 = sld [smem:[#allocation3 + $0x35]] }
 0x733   : > { %v1394_v16 = vsel %vm385_vm0, %v1390_v17, 0.0  ;;  %v1338_v8 = vadd.f32 %v1336_v49, %v1319_v31  ;;  %v1339_v25 = vadd.f32 %v1337_v54, %v1320_v46  ;;  %v1367_v21 = vmul.f32 %v1366_v19, %v1363_v63 }
 0x734   : > { %vm4746_vm9 = vcmask 777216   ;;  %v4030_v11 = vsel %vm1908_vm1, %v1903_v50, %v1905_v0  ;;  %v1368_v49 = vmul.f32 %v1366_v19, %v1364_v15  ;;  %v1462_v37 = vstv %s3982_s21  ;;  %s4226_s21 = sld [smem:[#allocation3 + $0x32]] }
 0x735   : > { %v1419_v36 = vsel %vm4746_vm9, %v4745_v45, %v4744_v59  ;;  %vm4748_vm3 = vmmov %vm4746_vm9  ;;  %v1350_v51 = vadd.f32 %v1346_v55, %v1338_v8  ;;  %v1351_v52 = vadd.f32 %v1347_v60, %v1339_v25  ;;  %v1377_v63 = vrot.slane %v1373_v13, 1  ;;  %v4751_v13 = vld [vmem:[#allocation24_spill] sm:$0xff]  ;;  %v4753_v8 = vld [vmem:[#allocation26_spill] sm:$0xff] }
 0x736   : > { %v1420_v33 = vsel %vm4748_vm3, %v4744_v59, %v4747_v12  ;;  %2405 = vrot.lane.b32.xlu0 %v3704_v1, %s2970_s8  ;;  %2403 = vrot.lane.b32.xlu1 %v3708_v14, %s2970_s8  ;;  %v1378_v9 = vrot.slane %v1374_v56, 1  ;;  %v1403_v17 = vmul.f32 %v1402_v35, %v1393_v40  ;;  %v1404_v54 = vmul.f32 %v1402_v35, %v1394_v16  ;;  %v1942_v55 = vpop.permute.xlu0 %1941  ;;  %v1907_v1 = vpop.permute.xlu1 %1906  ;;  %v4750_v14 = vld [vmem:[#allocation23_spill] sm:$0xff] }
 0x737   : > { %v1423_v19 = vsel %vm392_vm15, %v1419_v36, 0.0  ;;  %vm4749_vm12 = vcmp.ge.s32.totalorder %v3546_v23, 0  ;;  %v1369_v31 = vadd.f32 %v1367_v21, %v1350_v51  ;;  %v1370_v46 = vadd.f32 %v1368_v49, %v1351_v52 }
 0x738   : > { %v1424_v15 = vsel %vm4749_vm12, %v1420_v33, 0.0  ;;  %v1397_v60 = vmul.f32 %v1396_v43, %v1393_v40  ;;  %vm4752_vm7 = vcmask 769024   ;;  %v4056_v25 = vsel %vm1908_vm1, %v1905_v0, %v1907_v1 }
 0x739   : > { %v1449_v56 = vsel %vm4752_vm7, %v4751_v13, %v4750_v14  ;;  %vm4754_vm13 = vmmov %vm4752_vm7  ;;  %v1398_v50 = vmul.f32 %v1396_v43, %v1394_v16  ;;  %v1381_v21 = vadd.f32 %v1377_v63, %v1369_v31  ;;  %v1382_v40 = vadd.f32 %v1378_v9, %v1370_v46 }
 0x73a   : > { %v1450_v35 = vsel %vm4754_vm13, %v4750_v14, %v4753_v8  ;;  %2439 = vrot.lane.b32.xlu0 %v3202_v5, %s2971_s12  ;;  %2437 = vrot.lane.b32.xlu1 %v3198_v3, %s2971_s12  ;;  %vm1947_vm9 = vcmask 498688   ;;  %v1407_v59 = vrot.slane %v1403_v17, 1  ;;  %v1408_v0 = vrot.slane %v1404_v54, 1  ;;  %v1946_v12 = vpop.permute.xlu0 %1945  ;;  %v1944_v33 = vpop.permute.xlu1 %1943 }
 0x73b   : > { %v1433_v45 = vmul.f32 %v1432_v41, %v1423_v19  ;;  %v1434_v43 = vmul.f32 %v1432_v41, %v1424_v15  ;;  %vm4755_vm1 = vcmp.ge.s32.totalorder %v3101_v24, 0  ;;  %vm4756_vm3 = vcmp.ge.s32.totalorder %v3107_v27, 0 }
 0x73c   : > { %v1453_v16 = vsel %vm4755_vm1, %v1449_v56, 0.0  ;;  %v1454_v36 = vsel %vm4756_vm3, %v1450_v35, 0.0  ;;  %v1399_v49 = vadd.f32 %v1397_v60, %v1381_v21  ;;  %v1400_v51 = vadd.f32 %v1398_v50, %v1382_v40  ;;  %v4759_v40 = vld [vmem:[#allocation28_spill] sm:$0xff] }
 0x73d   : > { %v4757_v52 = vstv %s3897_s24  ;;  %v1456_v9 = vstv %s4027_s30  ;;  %v4082_v17 = vsel %vm1947_vm9, %v1942_v55, %v1944_v33  ;;  %v4085_v41 = vsel %vm1947_vm9, %v1944_v33, %v1946_v12  ;;  %s4197_s24 = sld [smem:[#allocation3 + $0x2e]]  ;;  %s4237_s30 = sld [smem:[#allocation3 + $0x37]] }
 0x73e   : > { %v1427_v63 = vmul.f32 %v4757_v52, %v1423_v19  ;;  %v4758_v54 = vmov %v4757_v52  ;;  %vm1523_vm12 = vcmask 752640   ;;  %2470 = vrot.lane.b32.xlu0 %v3202_v5, %s2972_s13  ;;  %2441 = vrot.lane.b32.xlu1 %v3204_v6, %s2971_s12  ;;  %v1411_v19 = vadd.f32 %v1407_v59, %v1399_v49  ;;  %v4098_v56 = vpop.permute.xlu0 %1979  ;;  %v4100_v8 = vpop.permute.xlu1 %1977  ;;  %v4760_v59 = vld [vmem:[#allocation25_spill] sm:$0xff]  ;;  %s4265_s12 = sld [smem:[#allocation3 + $0x38]] }
 0x73f   : > { %v1428_v31 = vmul.f32 %v4758_v54, %v1424_v15  ;;  %v1412_v46 = vadd.f32 %v1408_v0, %v1400_v51  ;;  %v1463_v1 = vmul.f32 %v1462_v37, %v1453_v16  ;;  %v1464_v55 = vmul.f32 %v1462_v37, %v1454_v36  ;;  %v4761_v0 = vld [vmem:[#allocation27_spill] sm:$0xff] }
 0x740   : > { %v2424_v60 = vrot.slane %v3712_v22, 1  ;;  %v2423_v15 = vrot.slane %v3717_v44, 1  ;;  %v1437_v14 = vrot.slane %v1433_v45, 1  ;;  %v1438_v13 = vrot.slane %v1434_v43, 1 }
 0x741   : > { %v1429_v35 = vadd.f32 %v1427_v63, %v1411_v19  ;;  %v1430_v50 = vadd.f32 %v1428_v31, %v1412_v46  ;;  %v1457_v21 = vmul.f32 %v1456_v9, %v1453_v16  ;;  %v1524_v37 = vsel %vm1523_vm12, %v4760_v59, %v4759_v40  ;;  %v4763_v46 = vld [vmem:[#allocation29_spill] sm:$0xff] }
 0x742   : > { %v1525_v22 = vsel %vm1523_vm12, %v4759_v40, %v4761_v0  ;;  %vm1554_vm7 = vcmask 744448   ;;  %v1458_v44 = vmul.f32 %v1456_v9, %v1454_v36  ;;  %v1531_v45 = vstv %s4060_s28  ;;  %2468 = vrot.lane.b32.xlu1 %v3198_v3, %s2972_s13  ;;  %v1508_v9 = vpop.permute.xlu0 %1507  ;;  %s4249_s28 = sld [smem:[#allocation3 + $0x36]] }
 0x743   : > { %v4762_v43 = vrot.slane %v3674_v4, 1  ;;  %v1441_v16 = vadd.f32 %v1437_v14, %v1429_v35  ;;  %v1442_v12 = vadd.f32 %v1438_v13, %v1430_v50  ;;  %v1467_v33 = vrot.slane %v1463_v1, 1  ;;  %v1506_v4 = vpop.permute.xlu1 %1505  ;;  %v4764_v14 = vld [vmem:[#allocation30_spill] sm:$0xff]  ;;  %v4765_v1 = vld [vmem:[#allocation32_spill] sm:$0xff] }
 0x744   : > { %v1468_v49 = vrot.slane %v1464_v55, 1  ;;  %v1537_v51 = vstv %s4062_s27  ;;  %v1562_v52 = vstv %s4070_s29  ;;  %v1528_v36 = vsel %vm410_vm4, %v1524_v37, 0.0  ;;  %s4251_s27 = sld [smem:[#allocation3 + $0x39]]  ;;  %s4267_s29 = sld [smem:[#allocation3 + $0x3b]] }
 0x745   : > { %2425 = vrot.lane.b32.xlu0 %v4762_v43, %s2970_s8  ;;  %v1529_v63 = vsel %vm411_vm2, %v1525_v22, 0.0  ;;  %v1459_v54 = vadd.f32 %v1457_v21, %v1441_v16  ;;  %v1460_v31 = vadd.f32 %v1458_v44, %v1442_v12  ;;  %v1568_v19 = vstv %s4079_s10  ;;  %v4766_v43 = vld [vmem:[#allocation49_spill] sm:$0xff]  ;;  %s4283_s10 = sld [smem:[#allocation3 + $0x3a]] }
 0x746   : > { %v1555_v13 = vsel %vm1554_vm7, %v4764_v14, %v4763_v46  ;;  %v1556_v55 = vsel %vm1554_vm7, %v4763_v46, %v4765_v1  ;;  %vm1585_vm13 = vcmask 736256   ;;  %v1593_v35 = vstv %s4089_s14  ;;  %2427 = vrot.lane.b32.xlu1 %v2423_v15, %s2970_s8  ;;  %v4140_v12 = vpop.permute.xlu0 %2010  ;;  %v4767_v15 = vld [vmem:[#allocation34_spill] sm:$0xff]  ;;  %s4285_s14 = sld [smem:[#allocation3 + $0x3d]] }
 0x747   : > { %vm1616_vm1 = vcmask 654336   ;;  %v1471_v50 = vadd.f32 %v1467_v33, %v1459_v54  ;;  %v1472_v21 = vadd.f32 %v1468_v49, %v1460_v31  ;;  %v1532_v40 = vmul.f32 %v1531_v45, %v1528_v36  ;;  %v1510_v33 = vpop.permute.xlu1 %1509  ;;  %v4768_v49 = vld [vmem:[#allocation31_spill] sm:$0xff] }
 0x748   : > { %v1538_v59 = vmul.f32 %v1537_v51, %v1528_v36  ;;  %v1539_v37 = vmul.f32 %v1537_v51, %v1529_v63  ;;  %v1599_v0 = vstv %s4094_s17  ;;  %v1559_v22 = vsel %vm418_vm6, %v1555_v13, 0.0  ;;  %v4769_v36 = vld [vmem:[#allocation33_spill] sm:$0xff]  ;;  %s4313_s17 = sld [smem:[#allocation3 + $0x40]] }
 0x749   : > { %2429 = vrot.lane.b32.xlu0 %v2424_v60, %s2970_s8  ;;  %v1560_v44 = vsel %vm419_vm5, %v1556_v55, 0.0  ;;  %v1492_v16 = vadd.f32 %v4766_v43, %v1471_v50  ;;  %v1493_v60 = vadd.f32 %v3680_v30, %v1472_v21  ;;  %v1586_v54 = vsel %vm1585_vm13, %v4768_v49, %v4767_v15  ;;  %v4773_v49 = vld [vmem:[#allocation36_spill] sm:$0xff]  ;;  %s4235_s8 = sld [smem:[#allocation3 + $0x34]] }
 0x74a   : > { %v1587_v51 = vsel %vm1585_vm13, %v4767_v15, %v4769_v36  ;;  %vm4770_vm3 = vcmask 760832   ;;  %v1533_v14 = vmul.f32 %v1531_v45, %v1529_v63  ;;  %v1624_v13 = vstv %s4109_s18  ;;  %2472 = vrot.lane.b32.xlu1 %v3204_v6, %s2972_s13  ;;  %v4772_v15 = vld [vmem:[#allocation35_spill] sm:$0xff]  ;;  %s4299_s13 = sld [smem:[#allocation3 + $0x3c]]  ;;  %s4315_s18 = sld [smem:[#allocation3 + $0x41]] }
 0x74b   : > { %v1511_v31 = vsel %vm4770_vm3, %v1506_v4, %v1508_v9  ;;  %vm4771_vm12 = vmmov %vm4770_vm3  ;;  %v1542_v55 = vrot.slane %v1538_v59, 1  ;;  %v1543_v50 = vrot.slane %v1539_v37, 1  ;;  %v1569_v21 = vmul.f32 %v1568_v19, %v1559_v22  ;;  %v4774_v37 = vld [vmem:[#allocation38_spill] sm:$0xff] }
 0x74c   : > { %v1512_v46 = vsel %vm4771_vm12, %v1508_v9, %v1510_v33  ;;  %v1515_v1 = vadd.f32 %v1511_v31, %v1492_v16  ;;  %v1570_v43 = vmul.f32 %v1568_v19, %v1560_v44  ;;  %v1590_v4 = vsel %vm426_vm8, %v1586_v54, 0.0  ;;  %v4161_v16 = vpop.permute.xlu0 %2039 }
 0x74d   : > { %v1516_v30 = vadd.f32 %v1512_v46, %v1493_v60  ;;  %2499 = vrot.lane.b32.xlu0 %v3198_v3, %s2973_s16  ;;  %v1591_v45 = vsel %vm427_vm10, %v1587_v51, 0.0  ;;  %v4163_v60 = vpop.permute.xlu1 %1981  ;;  %v1563_v3 = vmul.f32 %v1562_v52, %v1559_v22  ;;  %v1630_v33 = vstv %s4129_s19  ;;  %s4327_s19 = sld [smem:[#allocation3 + $0x42]] }
 0x74e   : > { %v1534_v63 = vadd.f32 %v1532_v40, %v1515_v1  ;;  %v1617_v59 = vsel %vm1616_vm1, %v4773_v49, %v4772_v15  ;;  %v1618_v19 = vsel %vm1616_vm1, %v4772_v15, %v4774_v37  ;;  %v1564_v40 = vmul.f32 %v1562_v52, %v1560_v44  ;;  %2501 = vrot.lane.b32.xlu1 %v3202_v5, %s2973_s16  ;;  %v4776_v5 = vld [vmem:[#allocation37_spill] sm:$0xff] }
 0x74f   : > { %v1535_v9 = vadd.f32 %v1533_v14, %v1516_v30  ;;  %vm1647_vm7 = vcmask 646144   ;;  %v1573_v22 = vrot.slane %v1569_v21, 1  ;;  %v1574_v51 = vrot.slane %v1570_v43, 1  ;;  %v4777_v43 = vld [vmem:[#allocation39_spill] sm:$0xff] }
 0x750   : > { %v1546_v54 = vadd.f32 %v1542_v55, %v1534_v63  ;;  %v1600_v31 = vmul.f32 %v1599_v0, %v1590_v4  ;;  %v1601_v46 = vmul.f32 %v1599_v0, %v1591_v45  ;;  %v1621_v14 = vsel %vm384_vm14, %v1617_v59, 0.0  ;;  %v4182_v30 = vpop.permute.xlu0 %2043 }
 0x751   : > { %v1547_v36 = vadd.f32 %v1543_v50, %v1535_v9  ;;  %2503 = vrot.lane.b32.xlu0 %v3204_v6, %s2973_s16  ;;  %v1622_v52 = vsel %vm385_vm0, %v1618_v19, 0.0  ;;  %v4184_v55 = vpop.permute.xlu1 %2008  ;;  %v1661_v6 = vstv %s4149_s20  ;;  %v4775_v50 = vld [vmem:[#allocation40_spill] sm:$0xff]  ;;  %vm1678_vm13 = vcmask 637952   ;;  %s4329_s20 = sld [smem:[#allocation3 + $0x43]]  ;;  %s4331_s16 = sld [smem:[#allocation3 + $0x44]] }
 0x752   : > { %v1565_v44 = vadd.f32 %v1563_v3, %v1546_v54  ;;  %v1648_v21 = vsel %vm1647_vm7, %v4776_v5, %v4775_v50  ;;  %v1649_v0 = vsel %vm1647_vm7, %v4775_v50, %v4777_v43  ;;  %v1594_v63 = vmul.f32 %v1593_v35, %v1590_v4 }
 0x753   : > { %v1566_v1 = vadd.f32 %v1564_v40, %v1547_v36  ;;  %v1595_v9 = vmul.f32 %v1593_v35, %v1591_v45  ;;  %v1604_v49 = vrot.slane %v1600_v31, 1  ;;  %v1605_v59 = vrot.slane %v1601_v46, 1  ;;  %v4782_v31 = vld [vmem:[#allocation43_spill] sm:$0xff] }
 0x754   : > { %v1577_v3 = vadd.f32 %v1573_v22, %v1565_v44  ;;  %v1631_v37 = vmul.f32 %v1630_v33, %v1621_v14  ;;  %v1632_v19 = vmul.f32 %v1630_v33, %v1622_v52  ;;  %v1652_v40 = vsel %vm392_vm15, %v1648_v21, 0.0  ;;  %v4203_v4 = vpop.permute.xlu0 %2072  ;;  %v4780_v22 = vld [vmem:[#allocation41_spill] sm:$0xff] }
 0x755   : > { %v1578_v15 = vadd.f32 %v1574_v51, %v1566_v1  ;;  %vm4778_vm1 = vcmp.ge.s32.totalorder %v3546_v23, 0  ;;  %4779 = vst [vmem:[#allocation10_spill] sm:$0xff] %v4203_v4  ;;  %v4205_v5 = vpop.permute.xlu1 %2012  ;;  %v1655_v35 = vstv %s4172_s22  ;;  %v1692_v45 = vstv %s4174_s23  ;;  %v4781_v51 = vld [vmem:[#allocation42_spill] sm:$0xff]  ;;  %s4334_s22 = sld [smem:[#allocation3 + $0x45]]  ;;  %s4336_s23 = sld [smem:[#allocation3 + $0x46]] }
 0x756   : > { %v1653_v54 = vsel %vm4778_vm1, %v1649_v0, 0.0  ;;  %v1596_v36 = vadd.f32 %v1594_v63, %v1577_v3  ;;  %v1679_v33 = vsel %vm1678_vm13, %v4781_v51, %v4780_v22  ;;  %v1680_v46 = vsel %vm1678_vm13, %v4780_v22, %v4782_v31  ;;  %vm4790_vm13 = vmmov %vm4778_vm1 }
 0x757   : > { %v1597_v50 = vadd.f32 %v1595_v9, %v1578_v15  ;;  %v1625_v44 = vmul.f32 %v1624_v13, %v1621_v14  ;;  %v1626_v1 = vmul.f32 %v1624_v13, %v1622_v52  ;;  %v1635_v0 = vrot.slane %v1631_v37, 1 }
 0x758   : > { %v1608_v21 = vadd.f32 %v1604_v49, %v1596_v36  ;;  %v1636_v63 = vrot.slane %v1632_v19, 1  ;;  %v1662_v9 = vmul.f32 %v1661_v6, %v1652_v40  ;;  %v1663_v3 = vmul.f32 %v1661_v6, %v1653_v54  ;;  %v4221_v4 = vpop.permute.xlu0 %2101 }
 0x759   : > { %v1609_v43 = vadd.f32 %v1605_v59, %v1597_v50  ;;  %vm4783_vm3 = vcmp.ge.s32.totalorder %v3101_v24, 0  ;;  %vm4784_vm12 = vcmp.ge.s32.totalorder %v3107_v27, 0  ;;  %4785 = vst [vmem:[#allocation8_spill] sm:$0xff] %v4221_v4  ;;  %v4223_v22 = vpop.permute.xlu1 %2041  ;;  %v1656_v52 = vmul.f32 %v1655_v35, %v1652_v40  ;;  %v4786_v40 = vld [vmem:[#allocation44_spill] sm:$0xff] }
 0x75a   : > { %v1683_v15 = vsel %vm4783_vm3, %v1679_v33, 0.0  ;;  %v1684_v51 = vsel %vm4784_vm12, %v1680_v46, 0.0  ;;  %v1627_v13 = vadd.f32 %v1625_v44, %v1608_v21  ;;  %v1657_v49 = vmul.f32 %v1655_v35, %v1653_v54  ;;  %vm4791_vm1 = vmmov %vm4783_vm3 }
 0x75b   : > { %v1628_v14 = vadd.f32 %v1626_v1, %v1609_v43  ;;  %v1686_v19 = vstv %s4197_s24  ;;  %v1693_v6 = vmul.f32 %v1692_v45, %v1683_v15  ;;  %v1694_v36 = vmul.f32 %v1692_v45, %v1684_v51  ;;  %vm4792_vm3 = vmmov %vm4784_vm12  ;;  %s4364_s24 = sld [smem:[#allocation3 + $0x47]] }
 0x75c   : > { %v1639_v59 = vadd.f32 %v1635_v0, %v1627_v13  ;;  %v1666_v50 = vrot.slane %v1662_v9, 1  ;;  %v1667_v33 = vrot.slane %v1663_v3, 1  ;;  %v1736_v31 = vpop.permute.xlu0 %1735  ;;  %v1754_v54 = vsel %vm1753_vm11, %v4786_v40, %v3801_v29 }
 0x75d   : > { %v1640_v37 = vadd.f32 %v1636_v63, %v1628_v14  ;;  %v4230_v46 = vpop.permute.xlu1 %2070  ;;  %v1687_v35 = vmul.f32 %v1686_v19, %v1683_v15  ;;  %v1688_v45 = vmul.f32 %v1686_v19, %v1684_v51  ;;  %v1697_v43 = vrot.slane %v1693_v6, 1 }
 0x75e   : > { %v1658_v4 = vadd.f32 %v1656_v52, %v1639_v59  ;;  %v1698_v0 = vrot.slane %v1694_v36, 1  ;;  %v1767_v63 = vstv %s4215_s26  ;;  %v1758_v9 = vsel %vm410_vm4, %v1754_v54, 0.0  ;;  %v4787_v36 = vld [vmem:[#allocation50_spill] sm:$0xff]  ;;  %s4381_s26 = sld [smem:[#allocation3 + $0x49]] }
 0x75f   : > { %v1659_v44 = vadd.f32 %v1657_v49, %v1640_v37  ;;  %v1759_v29 = vsel %vm411_vm2, %v3811_v32, 0.0  ;;  %v1761_v52 = vstv %s4226_s21  ;;  %v1768_v49 = vmul.f32 %v1767_v63, %v1758_v9  ;;  %s4400_s21 = sld [smem:[#allocation3 + $0x48]] }
 0x760   : > { %v1670_v1 = vadd.f32 %v1666_v50, %v1658_v4  ;;  %v4245_v3 = vpop.permute.xlu0 %2105  ;;  %v1769_v59 = vmul.f32 %v1767_v63, %v1759_v29  ;;  %v1798_v37 = vstv %s4228_s15  ;;  %v1789_v32 = vsel %vm418_vm6, %v3841_v18, 0.0  ;;  %s4402_s15 = sld [smem:[#allocation3 + $0x4b]] }
 0x761   : > { %v1671_v21 = vadd.f32 %v1667_v33, %v1659_v44  ;;  %v4247_v13 = vpop.permute.xlu1 %2074  ;;  %v1790_v19 = vsel %vm419_vm5, %v3844_v10, 0.0  ;;  %v1792_v40 = vstv %s4235_s8  ;;  %v1829_v54 = vstv %s4237_s30  ;;  %s4419_s8 = sld [smem:[#allocation3 + $0x4a]]  ;;  %s4421_s30 = sld [smem:[#allocation3 + $0x4e]] }
 0x762   : > { %v1689_v15 = vadd.f32 %v1687_v35, %v1670_v1  ;;  %vm4788_vm11 = vcmask 629760   ;;  %v1763_v10 = vmul.f32 %v1761_v52, %v1759_v29  ;;  %v1800_v63 = vmul.f32 %v1798_v37, %v1790_v19 }
 0x763   : > { %v1690_v51 = vadd.f32 %v1688_v45, %v1671_v21  ;;  %vm4789_vm7 = vmmov %vm4788_vm11  ;;  %v1762_v45 = vmul.f32 %v1761_v52, %v1758_v9  ;;  %v1823_v29 = vstv %s4249_s28  ;;  %v1860_v52 = vstv %s4251_s27  ;;  %s4439_s28 = sld [smem:[#allocation3 + $0x4f]]  ;;  %s4453_s27 = sld [smem:[#allocation3 + $0x50]] }
 0x764   : > { %v1701_v4 = vadd.f32 %v1697_v43, %v1689_v15  ;;  %v1740_v6 = vpop.permute.xlu0 %1739  ;;  %v1772_v43 = vrot.slane %v1768_v49, 1  ;;  %v1820_v15 = vsel %vm426_vm8, %v3871_v53, 0.0  ;;  %v1793_v49 = vmul.f32 %v1792_v40, %v1789_v32 }
 0x765   : > { %v1702_v14 = vadd.f32 %v1698_v0, %v1690_v51  ;;  %v1738_v44 = vpop.permute.xlu1 %1737  ;;  %v1773_v0 = vrot.slane %v1769_v59, 1  ;;  %v1794_v53 = vmul.f32 %v1792_v40, %v1790_v19  ;;  %v1854_v19 = vstv %s4265_s12  ;;  %s4455_s12 = sld [smem:[#allocation3 + $0x51]] }
 0x766   : > { %v1722_v50 = vadd.f32 %v4787_v36, %v1701_v4  ;;  %v1741_v35 = vsel %vm4788_vm11, %v1736_v31, %v1738_v44  ;;  %v1742_v18 = vsel %vm4789_vm7, %v1738_v44, %v1740_v6  ;;  %v1821_v31 = vsel %vm427_vm10, %v3900_v58, 0.0 }
 0x767   : > { %v1723_v33 = vadd.f32 %v3758_v20, %v1702_v14  ;;  %v1799_v20 = vmul.f32 %v1798_v37, %v1789_v32  ;;  %v1804_v58 = vrot.slane %v1800_v63, 1  ;;  %v1830_v36 = vmul.f32 %v1829_v54, %v1820_v15 }
 0x768   : > { %v1745_v1 = vadd.f32 %v1741_v35, %v1722_v50  ;;  %v4277_v14 = vpop.permute.xlu0 %2134  ;;  %v1831_v50 = vmul.f32 %v1829_v54, %v1821_v31  ;;  %v1852_v44 = vsel %vm385_vm0, %v3927_v2, 0.0  ;;  %v1891_v40 = vstv %s4267_s29  ;;  %s4457_s29 = sld [smem:[#allocation3 + $0x52]] }
 0x769   : > { %v1746_v21 = vadd.f32 %v1742_v18, %v1723_v33  ;;  %v4279_v9 = vpop.permute.xlu1 %2103  ;;  %v1803_v6 = vrot.slane %v1799_v20, 1  ;;  %v1851_v33 = vsel %vm384_vm14, %v3924_v47, 0.0  ;;  %v1825_v54 = vmul.f32 %v1823_v29, %v1821_v31 }
 0x76a   : > { %v1764_v51 = vadd.f32 %v1762_v45, %v1745_v1  ;;  %v1835_v47 = vrot.slane %v1831_v50, 1  ;;  %v1862_v20 = vmul.f32 %v1860_v52, %v1852_v44  ;;  %v1882_v2 = vsel %vm392_vm15, %v4002_v62, 0.0 }
 0x76b   : > { %v1765_v4 = vadd.f32 %v1763_v10, %v1746_v21  ;;  %v1824_v10 = vmul.f32 %v1823_v29, %v1820_v15  ;;  %v1883_v63 = vsel %vm4790_vm13, %v4004_v61, 0.0  ;;  %v1885_v29 = vstv %s4283_s10  ;;  %s4459_s10 = sld [smem:[#allocation3 + $0x53]] }
 0x76c   : > { %v1776_v59 = vadd.f32 %v1772_v43, %v1764_v51  ;;  %v4293_v45 = vpop.permute.xlu0 %2171  ;;  %v1834_v43 = vrot.slane %v1830_v36, 1  ;;  %v1866_v62 = vrot.slane %v1862_v20, 1  ;;  %v1893_v36 = vmul.f32 %v1891_v40, %v1883_v63 }
 0x76d   : > { %v1777_v37 = vadd.f32 %v1773_v0, %v1765_v4  ;;  %v4295_v32 = vpop.permute.xlu1 %2132  ;;  %v1861_v0 = vmul.f32 %v1860_v52, %v1851_v33  ;;  %v1855_v52 = vmul.f32 %v1854_v19, %v1851_v33  ;;  %v1913_v61 = vsel %vm4791_vm1, %v4030_v11, 0.0 }
 0x76e   : > { %v1795_v35 = vadd.f32 %v1793_v49, %v1776_v59  ;;  %v1922_v49 = vstv %s4285_s14  ;;  %v1914_v50 = vsel %vm4792_vm3, %v4056_v25, 0.0  ;;  %vm1983_vm12 = vcmask 490496   ;;  %s4488_s14 = sld [smem:[#allocation3 + $0x55]] }
 0x76f   : > { %v1796_v18 = vadd.f32 %v1794_v53, %v1777_v37  ;;  %v1856_v53 = vmul.f32 %v1854_v19, %v1852_v44  ;;  %v1886_v19 = vmul.f32 %v1885_v29, %v1882_v2  ;;  %v1923_v25 = vmul.f32 %v1922_v49, %v1913_v61 }
 0x770   : > { %v1807_v1 = vadd.f32 %v1803_v6, %v1795_v35  ;;  %v4307_v4 = vpop.permute.xlu0 %2175  ;;  %v1865_v6 = vrot.slane %v1861_v0, 1  ;;  %vm2014_vm11 = vcmask 482304   ;;  %vm2045_vm7 = vcmask 474112  }
 0x771   : > { %v1808_v21 = vadd.f32 %v1804_v58, %v1796_v18  ;;  %v4309_v31 = vpop.permute.xlu1 %2136  ;;  %v1892_v58 = vmul.f32 %v1891_v40, %v1882_v2  ;;  %v1887_v40 = vmul.f32 %v1885_v29, %v1883_v63  ;;  %v1991_v63 = vstv %s4313_s17  ;;  %s4512_s17 = sld [smem:[#allocation3 + $0x57]] }
 0x772   : > { %v1826_v51 = vadd.f32 %v1824_v10, %v1807_v1  ;;  %v1924_v1 = vmul.f32 %v1922_v49, %v1914_v50  ;;  %vm2076_vm13 = vcmask 392192   ;;  %vm2138_vm1 = vcmask 375808  }
 0x773   : > { %v1827_v15 = vadd.f32 %v1825_v54, %v1808_v21  ;;  %v1916_v54 = vstv %s4299_s13  ;;  %v1896_v21 = vrot.slane %v1892_v58, 1  ;;  %vm4795_vm3 = vcmp.ge.s32.totalorder %v3546_v23, 0  ;;  %s4508_s13 = sld [smem:[#allocation3 + $0x54]] }
 0x774   : > { %v1838_v59 = vadd.f32 %v1834_v43, %v1826_v51  ;;  %v4323_v35 = vpop.permute.xlu0 %2209  ;;  %v1897_v43 = vrot.slane %v1893_v36, 1  ;;  %v1984_v51 = vsel %vm1983_vm12, %v4100_v8, %v4098_v56  ;;  %v1917_v29 = vmul.f32 %v1916_v54, %v1913_v61 }
 0x775   : > { %v1839_v37 = vadd.f32 %v1835_v47, %v1827_v15  ;;  %v4325_v33 = vpop.permute.xlu1 %2173  ;;  %v1985_v15 = vsel %vm1983_vm12, %v4098_v56, %v4163_v60  ;;  %v1918_v49 = vmul.f32 %v1916_v54, %v1914_v50  ;;  %v2022_v61 = vstv %s4327_s19  ;;  %s4527_s19 = sld [smem:[#allocation3 + $0x59]] }
 0x776   : > { %v1857_v44 = vadd.f32 %v1855_v52, %v1838_v59  ;;  %v1927_v59 = vrot.slane %v1923_v25, 1  ;;  %v1989_v8 = vsel %vm411_vm2, %v1985_v15, 0.0  ;;  %v2028_v50 = vstv %s4329_s20  ;;  %s4539_s20 = sld [smem:[#allocation3 + $0x58]] }
 0x777   : > { %v1858_v18 = vadd.f32 %v1856_v53, %v1839_v37  ;;  %v1928_v37 = vrot.slane %v1924_v1, 1  ;;  %v2059_v25 = vstv %s4334_s22  ;;  %v2084_v1 = vstv %s4336_s23  ;;  %s4560_s22 = sld [smem:[#allocation3 + $0x5c]]  ;;  %s4563_s23 = sld [smem:[#allocation3 + $0x5f]] }
 0x778   : > { %v1869_v11 = vadd.f32 %v1865_v6, %v1857_v44  ;;  %v1966_v47 = vpop.permute.xlu0 %1965  ;;  %v1997_v6 = vstv %s4315_s18  ;;  %v2015_v44 = vsel %vm2014_vm11, %v4184_v55, %v4140_v12  ;;  %vm4796_vm12 = vcmp.ge.s32.totalorder %v3101_v24, 0  ;;  %s4525_s18 = sld [smem:[#allocation3 + $0x56]] }
 0x779   : > { %v1870_v10 = vadd.f32 %v1866_v62, %v1858_v18  ;;  %v4338_v0 = vpop.permute.xlu1 %2207  ;;  %v1988_v62 = vsel %vm410_vm4, %v1984_v51, 0.0  ;;  %v2016_v18 = vsel %vm2014_vm11, %v4140_v12, %v4205_v5  ;;  %v1999_v54 = vmul.f32 %v1997_v6, %v1989_v8 }
 0x77a   : > { %v1888_v20 = vadd.f32 %v1886_v19, %v1869_v11  ;;  %v2053_v19 = vstv %s4331_s16  ;;  %v2020_v55 = vsel %vm419_vm5, %v2016_v18, 0.0  ;;  %v2047_v51 = vsel %vm2045_vm7, %v4223_v22, %v4182_v30  ;;  %s4553_s16 = sld [smem:[#allocation3 + $0x5d]] }
 0x77b   : > { %v1889_v2 = vadd.f32 %v1887_v40, %v1870_v10  ;;  %v1998_v10 = vmul.f32 %v1997_v6, %v1988_v62  ;;  %v2030_v6 = vmul.f32 %v2028_v50, %v2020_v55  ;;  %v2051_v30 = vsel %vm427_vm10, %v2047_v51, 0.0 }
 0x77c   : > { %v1900_v52 = vadd.f32 %v1896_v21, %v1888_v20  ;;  %v4352_v56 = vpop.permute.xlu0 %2240  ;;  %v2019_v21 = vsel %vm418_vm6, %v2015_v44, 0.0  ;;  %v2024_v18 = vmul.f32 %v2022_v61, %v2020_v55  ;;  %vm4797_vm11 = vcmp.ge.s32.totalorder %v3107_v27, 0 }
 0x77d   : > { %v1901_v53 = vadd.f32 %v1897_v43, %v1889_v2  ;;  %v4354_v60 = vpop.permute.xlu1 %2211  ;;  %v2046_v2 = vsel %vm2045_vm7, %v4161_v16, %v4223_v22  ;;  %v2023_v44 = vmul.f32 %v2022_v61, %v2019_v21  ;;  %v4794_v61 = vld [vmem:[#allocation8_spill] sm:$0xff]  ;;  %vm2177_vm7 = vcmask 367616  }
 0x77e   : > { %v1919_v58 = vadd.f32 %v1917_v29, %v1900_v52  ;;  %v2050_v16 = vsel %vm426_vm8, %v2046_v2, 0.0  ;;  %v2488_v26 = vstv %s4563_s23 }
 0x77f   : > { %v1920_v36 = vadd.f32 %v1918_v49, %v1901_v53  ;;  %v1992_v49 = vmul.f32 %v1991_v63, %v1988_v62  ;;  %v2002_v53 = vrot.slane %v1998_v10, 1  ;;  %v2090_v62 = vstv %s4364_s24  ;;  %s4567_s24 = sld [smem:[#allocation3 + $0x5e]] }
 0x780   : > { %v1931_v40 = vadd.f32 %v1927_v59, %v1919_v58  ;;  %v1970_v43 = vpop.permute.xlu0 %1969  ;;  %v2003_v59 = vrot.slane %v1999_v54, 1  ;;  %v2034_v54 = vrot.slane %v2030_v6, 1 }
 0x781   : > { %v1932_v11 = vadd.f32 %v1928_v37, %v1920_v36  ;;  %v1968_v5 = vpop.permute.xlu1 %1967  ;;  %v2029_v37 = vmul.f32 %v2028_v50, %v2019_v21  ;;  %v2121_v21 = vstv %s4381_s26  ;;  %s4578_s26 = sld [smem:[#allocation3 + $0x60]] }
 0x782   : > { %v1952_v20 = vadd.f32 %v4082_v17, %v1931_v40  ;;  %v1971_v15 = vsel %vm1947_vm9, %v1966_v47, %v1968_v5  ;;  %v1972_v29 = vsel %vm1947_vm9, %v1968_v5, %v1970_v43  ;;  %v1993_v17 = vmul.f32 %v1991_v63, %v1989_v8  ;;  %v4793_v63 = vld [vmem:[#allocation10_spill] sm:$0xff] }
 0x783   : > { %v1953_v12 = vadd.f32 %v4085_v41, %v1932_v11  ;;  %v2077_v8 = vsel %vm2076_vm13, %v4230_v46, %v4793_v63  ;;  %v2078_v50 = vsel %vm2076_vm13, %v4793_v63, %v4247_v13  ;;  %vm2107_vm9 = vcmask 384000  }
 0x784   : > { %v1975_v52 = vadd.f32 %v1971_v15, %v1952_v20  ;;  %v4389_v47 = vpop.permute.xlu0 %2269  ;;  %v2033_v10 = vrot.slane %v2029_v37, 1  ;;  %v2060_v43 = vmul.f32 %v2059_v25, %v2050_v16  ;;  %v2061_v20 = vmul.f32 %v2059_v25, %v2051_v30 }
 0x785   : > { %v1976_v41 = vadd.f32 %v1972_v29, %v1953_v12  ;;  %v4391_v36 = vpop.permute.xlu1 %2238  ;;  %v2081_v46 = vsel %vm384_vm14, %v2077_v8, 0.0  ;;  %v2082_v13 = vsel %vm385_vm0, %v2078_v50, 0.0  ;;  %v2108_v55 = vsel %vm2107_vm9, %v4794_v61, %v4279_v9 }
 0x786   : > { %v1994_v22 = vadd.f32 %v1992_v49, %v1975_v52  ;;  %v2109_v25 = vsel %vm2107_vm9, %v4279_v9, %v4245_v3  ;;  %v2054_v15 = vmul.f32 %v2053_v19, %v2050_v16  ;;  %v2055_v29 = vmul.f32 %v2053_v19, %v2051_v30 }
 0x787   : > { %v1995_v58 = vadd.f32 %v1993_v17, %v1976_v41  ;;  %v2064_v52 = vrot.slane %v2060_v43, 1  ;;  %v2065_v41 = vrot.slane %v2061_v20, 1  ;;  %v2112_v3 = vsel %vm392_vm15, %v2108_v55, 0.0 }
 0x788   : > { %v2006_v40 = vadd.f32 %v2002_v53, %v1994_v22  ;;  %v4408_v2 = vpop.permute.xlu0 %2273  ;;  %v2091_v53 = vmul.f32 %v2090_v62, %v2081_v46  ;;  %v2113_v9 = vsel %vm4795_vm3, %v2109_v25, 0.0  ;;  %v2115_v30 = vstv %s4400_s21  ;;  %s4580_s21 = sld [smem:[#allocation3 + $0x61]] }
 0x789   : > { %v2007_v11 = vadd.f32 %v2003_v59, %v1995_v58  ;;  %v4410_v51 = vpop.permute.xlu1 %2242  ;;  %v2092_v59 = vmul.f32 %v2090_v62, %v2082_v13  ;;  %v2152_v22 = vstv %s4402_s15  ;;  %v2139_v58 = vsel %vm2138_vm1, %v4295_v32, %v4277_v14  ;;  %s354_s15 = sld [smem:[#allocation2]] }
 0x78a   : > { %v2025_v12 = vadd.f32 %v2023_v44, %v2006_v40  ;;  %v2140_v62 = vsel %vm2138_vm1, %v4277_v14, %v4309_v31  ;;  %v2085_v63 = vmul.f32 %v2084_v1, %v2081_v46  ;;  %v2086_v8 = vmul.f32 %v2084_v1, %v2082_v13 }
 0x78b   : > { %v2026_v5 = vadd.f32 %v2024_v18, %v2007_v11  ;;  %v2095_v18 = vrot.slane %v2091_v53, 1  ;;  %v2096_v40 = vrot.slane %v2092_v59, 1  ;;  %v2122_v11 = vmul.f32 %v2121_v21, %v2112_v3 }
 0x78c   : > { %v2037_v49 = vadd.f32 %v2033_v10, %v2025_v12  ;;  %v4427_v6 = vpop.permute.xlu0 %2302  ;;  %v2123_v10 = vmul.f32 %v2121_v21, %v2113_v9  ;;  %v2144_v32 = vsel %vm4797_vm11, %v2140_v62, 0.0  ;;  %vm2213_vm13 = vcmask 359424  }
 0x78d   : > { %v2038_v17 = vadd.f32 %v2034_v54, %v2026_v5  ;;  %v4429_v16 = vpop.permute.xlu1 %2271  ;;  %v2143_v54 = vsel %vm4796_vm12, %v2139_v58, 0.0  ;;  %v2116_v20 = vmul.f32 %v2115_v30, %v2112_v3  ;;  %v2117_v46 = vmul.f32 %v2115_v30, %v2113_v9 }
 0x78e   : > { %v2056_v19 = vadd.f32 %v2054_v15, %v2037_v49  ;;  %v2146_v5 = vstv %s4419_s8  ;;  %v2153_v21 = vmul.f32 %v2152_v22, %v2143_v54  ;;  %v2154_v61 = vmul.f32 %v2152_v22, %v2144_v32 }
 0x78f   : > { %v2057_v37 = vadd.f32 %v2055_v29, %v2038_v17  ;;  %v2221_v55 = vstv %s4421_s30  ;;  %v2126_v25 = vrot.slane %v2122_v11, 1  ;;  %v2127_v15 = vrot.slane %v2123_v10, 1 }
 0x790   : > { %v2068_v50 = vadd.f32 %v2064_v52, %v2056_v19  ;;  %v4449_v14 = vpop.permute.xlu0 %2331  ;;  %v2214_v53 = vsel %vm2213_vm13, %v4338_v0, %v4323_v35  ;;  %v2215_v59 = vsel %vm2213_vm13, %v4323_v35, %v4354_v60  ;;  %vm2244_vm9 = vcmask 351232  }
 0x791   : > { %v2069_v44 = vadd.f32 %v2065_v41, %v2057_v37  ;;  %v4451_v31 = vpop.permute.xlu1 %2300  ;;  %v2227_v41 = vstv %s4439_s28  ;;  %v2147_v3 = vmul.f32 %v2146_v5, %v2143_v54  ;;  %v2148_v9 = vmul.f32 %v2146_v5, %v2144_v32 }
 0x792   : > { %v2087_v43 = vadd.f32 %v2085_v63, %v2068_v50  ;;  %v2157_v30 = vrot.slane %v2153_v21, 1  ;;  %v2158_v22 = vrot.slane %v2154_v61, 1  ;;  %vm2275_vm1 = vcmask 343040  }
 0x793   : > { %v2088_v1 = vadd.f32 %v2086_v8, %v2069_v44  ;;  %vm2306_vm3 = vcmask 261120   ;;  %v2218_v0 = vsel %vm410_vm4, %v2214_v53, 0.0  ;;  %v2219_v58 = vsel %vm411_vm2, %v2215_v59, 0.0 }
 0x794   : > { %v2099_v13 = vadd.f32 %v2095_v18, %v2087_v43  ;;  %v4463_v29 = vpop.permute.xlu0 %2335  ;;  %v2252_v8 = vstv %s4453_s27  ;;  %v2258_v50 = vstv %s4455_s12  ;;  %v2245_v44 = vsel %vm2244_vm9, %v4391_v36, %v4352_v56 }
 0x795   : > { %v2100_v12 = vadd.f32 %v2096_v40, %v2088_v1  ;;  %v4465_v49 = vpop.permute.xlu1 %2304  ;;  %v2246_v18 = vsel %vm2244_vm9, %v4352_v56, %v4410_v51  ;;  %v2283_v40 = vstv %s4457_s29  ;;  %v2289_v11 = vstv %s4459_s10 }
 0x796   : > { %v2118_v17 = vadd.f32 %v2116_v20, %v2099_v13  ;;  %v2178_v32 = vsel %vm2177_vm7, %v4293_v45, %v4325_v33  ;;  %v2179_v43 = vsel %vm2177_vm7, %v4325_v33, %v4307_v4  ;;  %v2228_v1 = vmul.f32 %v2227_v41, %v2218_v0 }
 0x797   : > { %v2119_v52 = vadd.f32 %v2117_v46, %v2100_v12  ;;  %v2229_v36 = vmul.f32 %v2227_v41, %v2219_v58  ;;  %v2249_v20 = vsel %vm418_vm6, %v2245_v44, 0.0  ;;  %v2250_v56 = vsel %vm419_vm5, %v2246_v18, 0.0 }
 0x798   : > { %v2130_v19 = vadd.f32 %v2126_v25, %v2118_v17  ;;  %v2196_v35 = vpop.permute.xlu0 %2195  ;;  %v2276_v45 = vsel %vm2275_vm1, %v4389_v47, %v4429_v16  ;;  %v2277_v4 = vsel %vm2275_vm1, %v4429_v16, %v4408_v2  ;;  %v2222_v21 = vmul.f32 %v2221_v55, %v2218_v0 }
 0x799   : > { %v2131_v37 = vadd.f32 %v2127_v15, %v2119_v52  ;;  %v4478_v60 = vpop.permute.xlu1 %2333  ;;  %v2223_v61 = vmul.f32 %v2221_v55, %v2219_v58  ;;  %v2232_v17 = vrot.slane %v2228_v1, 1  ;;  %v2233_v52 = vrot.slane %v2229_v36, 1 }
 0x79a   : > { %v2149_v62 = vadd.f32 %v2147_v3, %v2130_v19  ;;  %v2259_v41 = vmul.f32 %v2258_v50, %v2249_v20  ;;  %v2260_v53 = vmul.f32 %v2258_v50, %v2250_v56  ;;  %v2280_v47 = vsel %vm426_vm8, %v2276_v45, 0.0 }
 0x79b   : > { %v2150_v63 = vadd.f32 %v2148_v9, %v2131_v37  ;;  %v2281_v2 = vsel %vm427_vm10, %v2277_v4, 0.0  ;;  %v2320_v19 = vstv %s4488_s14  ;;  %v2307_v55 = vsel %vm2306_vm3, %v4451_v31, %v4427_v6 }
 0x79c   : > { %v2161_v10 = vadd.f32 %v2157_v30, %v2149_v62  ;;  %v2200_v51 = vpop.permute.xlu0 %2199  ;;  %v2308_v37 = vsel %vm2306_vm3, %v4427_v6, %v4465_v49  ;;  %vm2337_vm12 = vcmask 252928   ;;  %v2253_v30 = vmul.f32 %v2252_v8, %v2249_v20 }
 0x79d   : > { %v2162_v54 = vadd.f32 %v2158_v22, %v2150_v63  ;;  %v2198_v12 = vpop.permute.xlu1 %2197  ;;  %v2254_v22 = vmul.f32 %v2252_v8, %v2250_v56  ;;  %v2264_v62 = vrot.slane %v2260_v53, 1  ;;  %v2290_v63 = vmul.f32 %v2289_v11, %v2280_v47 }
 0x79e   : > { %v2182_v46 = vadd.f32 %v2178_v32, %v2161_v10  ;;  %v2201_v33 = vsel %vm2177_vm7, %v2196_v35, %v2198_v12  ;;  %v2202_v5 = vsel %vm2177_vm7, %v2198_v12, %v2200_v51  ;;  %v2263_v35 = vrot.slane %v2259_v41, 1 }
 0x79f   : > { %v2183_v13 = vadd.f32 %v2179_v43, %v2162_v54  ;;  %v2291_v50 = vmul.f32 %v2289_v11, %v2281_v2  ;;  %v2311_v31 = vsel %vm384_vm14, %v2307_v55, 0.0  ;;  %v2312_v6 = vsel %vm385_vm0, %v2308_v37, 0.0 }
 0x7a0   : > { %v2205_v25 = vadd.f32 %v2201_v33, %v2182_v46  ;;  %v2365_v3 = vpop.permute.xlu0 %2364  ;;  %v2284_v10 = vmul.f32 %v2283_v40, %v2280_v47  ;;  %v2314_v54 = vstv %s4508_s13  ;;  %v2338_v11 = vsel %vm2337_vm12, %v4449_v14, %v4478_v60 }
 0x7a1   : > { %v2206_v15 = vadd.f32 %v2202_v5, %v2183_v13  ;;  %v2363_v9 = vpop.permute.xlu1 %2362  ;;  %vm2368_vm11 = vcmask 244736   ;;  %v2285_v39 = vmul.f32 %v2283_v40, %v2281_v2  ;;  %v2339_v38 = vsel %vm2337_vm12, %v4478_v60, %v4463_v29 }
 0x7a2   : > { %v2224_v16 = vadd.f32 %v2222_v21, %v2205_v25  ;;  %v2294_v1 = vrot.slane %v2290_v63, 1  ;;  %v2321_v36 = vmul.f32 %v2320_v19, %v2311_v31  ;;  %v2322_v20 = vmul.f32 %v2320_v19, %v2312_v6 }
 0x7a3   : > { %v2225_v59 = vadd.f32 %v2223_v61, %v2206_v15  ;;  %v2351_v56 = vstv %s4512_s17  ;;  %v2295_v51 = vrot.slane %v2291_v50, 1  ;;  %v2342_v46 = vsel %vm392_vm15, %v2338_v11, 0.0 }
 0x7a4   : > { %v2236_v0 = vadd.f32 %v2232_v17, %v2224_v16  ;;  %v4533_v18 = vpop.permute.xlu0 %2401  ;;  %v2315_v40 = vmul.f32 %v2314_v54, %v2311_v31  ;;  %v2345_v4 = vstv %s4525_s18  ;;  %vm4798_vm14 = vcmp.ge.s32.totalorder %v3546_v23, 0 }
 0x7a5   : > { %v2237_v58 = vadd.f32 %v2233_v52, %v2225_v59  ;;  %v2367_v8 = vpop.permute.xlu1 %2366  ;;  %v2343_v29 = vsel %vm4798_vm14, %v2339_v38, 0.0  ;;  %v2369_v60 = vsel %vm2368_vm11, %v2363_v9, %v2365_v3  ;;  %v2316_v33 = vmul.f32 %v2314_v54, %v2312_v6 }
 0x7a6   : > { %v2255_v49 = vadd.f32 %v2253_v30, %v2236_v0  ;;  %v2370_v61 = vsel %vm2368_vm11, %v2365_v3, %v2367_v8  ;;  %v2325_v57 = vrot.slane %v2321_v36, 1  ;;  %v2326_v25 = vrot.slane %v2322_v20, 1 }
 0x7a7   : > { %v2256_v44 = vadd.f32 %v2254_v22, %v2237_v58  ;;  %v2352_v15 = vmul.f32 %v2351_v56, %v2342_v46  ;;  %v2382_v17 = vstv %s4527_s19  ;;  %v2353_v52 = vmul.f32 %v2351_v56, %v2343_v29 }
 0x7a8   : > { %v2267_v32 = vadd.f32 %v2263_v35, %v2255_v49  ;;  %v2406_v12 = vpop.permute.xlu0 %2405  ;;  %vm4799_vm0 = vcmp.ge.s32.totalorder %v3101_v24, 0  ;;  %v2376_v16 = vstv %s4539_s20  ;;  %vm4800_vm15 = vcmp.ge.s32.totalorder %v3107_v27, 0 }
 0x7a9   : > { %v2268_v43 = vadd.f32 %v2264_v62, %v2256_v44  ;;  %v2404_v45 = vpop.permute.xlu1 %2403  ;;  %v2373_v23 = vsel %vm4799_vm0, %v2369_v60, 0.0  ;;  %v2374_v59 = vsel %vm4800_vm15, %v2370_v61, 0.0  ;;  %vm2443_vm7 = vcmask 228352  }
 0x7aa   : > { %v2286_v14 = vadd.f32 %v2284_v10, %v2267_v32  ;;  %v2346_v3 = vmul.f32 %v2345_v4, %v2342_v46  ;;  %v2347_v9 = vmul.f32 %v2345_v4, %v2343_v29  ;;  %v2356_v37 = vrot.slane %v2352_v15, 1 }
 0x7ab   : > { %v2287_v13 = vadd.f32 %v2285_v39, %v2268_v43  ;;  %v2383_v30 = vmul.f32 %v2382_v17, %v2373_v23  ;;  %v2357_v22 = vrot.slane %v2353_v52, 1  ;;  %v2384_v58 = vmul.f32 %v2382_v17, %v2374_v59 }
 0x7ac   : > { %v2298_v5 = vadd.f32 %v2294_v1, %v2286_v14  ;;  %v2440_v47 = vpop.permute.xlu0 %2439  ;;  %v2377_v63 = vmul.f32 %v2376_v16, %v2373_v23  ;;  %v2378_v6 = vmul.f32 %v2376_v16, %v2374_v59  ;;  %vm2407_vm13 = vcmask 236544  }
 0x7ad   : > { %v2299_v21 = vadd.f32 %v2295_v51, %v2287_v13  ;;  %v2438_v2 = vpop.permute.xlu1 %2437  ;;  %v2387_v44 = vrot.slane %v2383_v30, 1  ;;  %v2457_v8 = vstv %s4553_s16  ;;  %vm2474_vm9 = vcmask 220160  }
 0x7ae   : > { %v2317_v41 = vadd.f32 %v2315_v40, %v2298_v5  ;;  %v2444_v27 = vsel %vm2443_vm7, %v2438_v2, %v2440_v47  ;;  %v2388_v11 = vrot.slane %v2384_v58, 1  ;;  %v2408_v56 = vsel %vm2407_vm13, %v4533_v18, %v2404_v45 }
 0x7af   : > { %v2318_v53 = vadd.f32 %v2316_v33, %v2299_v21  ;;  %v2448_v39 = vsel %vm410_vm4, %v2444_v27, 0.0  ;;  %v2409_v51 = vsel %vm2407_vm13, %v2404_v45, %v2406_v12  ;;  %v2451_v46 = vstv %s4560_s22 }
 0x7b0   : > { %v2329_v19 = vadd.f32 %v2325_v57, %v2317_v41  ;;  %v2471_v35 = vpop.permute.xlu0 %2470  ;;  %v2458_v14 = vmul.f32 %v2457_v8, %v2448_v39  ;;  %v2452_v45 = vmul.f32 %v2451_v46, %v2448_v39  ;;  %v2482_v57 = vstv %s4567_s24 }
 0x7b1   : > { %v2330_v55 = vadd.f32 %v2326_v25, %v2318_v53  ;;  %v2442_v62 = vpop.permute.xlu1 %2441  ;;  %v2519_v30 = vstv %s4580_s21 }
 0x7b2   : > { %v2348_v24 = vadd.f32 %v2346_v3, %v2329_v19  ;;  %v2445_v49 = vsel %vm2443_vm7, %v2440_v47, %v2442_v62  ;;  %v2462_v61 = vrot.slane %v2458_v14, 1 }
 0x7b3   : > { %v2349_v0 = vadd.f32 %v2347_v9, %v2330_v55  ;;  %v2449_v43 = vsel %vm411_vm2, %v2445_v49, 0.0  ;;  %vm2505_vm2 = vcmask 211968  }
 0x7b4   : > { %v2360_v50 = vadd.f32 %v2356_v37, %v2348_v24  ;;  %v2459_v40 = vmul.f32 %v2457_v8, %v2449_v43  ;;  %v2453_v33 = vmul.f32 %v2451_v46, %v2449_v43  ;;  %v2513_v37 = vstv %s4578_s26 }
 0x7b5   : > { %v2361_v31 = vadd.f32 %v2357_v22, %v2349_v0  ;;  %v2469_v32 = vpop.permute.xlu1 %2468 }
 0x7b6   : > { %v2379_v10 = vadd.f32 %v2377_v63, %v2360_v50  ;;  %v2475_v20 = vsel %vm2474_vm9, %v2469_v32, %v2471_v35  ;;  %v2463_v25 = vrot.slane %v2459_v40, 1 }
 0x7b7   : > { %v2380_v54 = vadd.f32 %v2378_v6, %v2361_v31  ;;  %v2426_v38 = vpop.permute.xlu0 %2425  ;;  %v2479_v60 = vsel %vm418_vm6, %v2475_v20, 0.0 }
 0x7b8   : > { %v2391_v1 = vadd.f32 %v2387_v44, %v2379_v10  ;;  %v2489_v15 = vmul.f32 %v2488_v26, %v2479_v60  ;;  %v2483_v53 = vmul.f32 %v2482_v57, %v2479_v60  ;;  %v4803_v60 = vld [vmem:[#allocation7_spill] sm:$0xff] }
 0x7b9   : > { %v2392_v36 = vadd.f32 %v2388_v11, %v2380_v54  ;;  %v2428_v29 = vpop.permute.xlu1 %2427  ;;  %v2530_v54 = vstv %s354_s15 }
 0x7ba   : > { %v2412_v13 = vadd.f32 %v2408_v56, %v2391_v1  ;;  %v2431_v18 = vsel %vm2407_vm13, %v2426_v38, %v2428_v29  ;;  %v2493_v9 = vrot.slane %v2489_v15, 1 }
 0x7bb   : > { %v2413_v28 = vadd.f32 %v2409_v51, %v2392_v36  ;;  %v2430_v4 = vpop.permute.xlu0 %2429  ;;  %v2542_v36 = vshrl.u32 %v4801_v48, 7 }
 0x7bc   : > { %v2432_v12 = vsel %vm2407_vm13, %v2428_v29, %v2430_v4  ;;  %v2435_v5 = vadd.f32 %v2431_v18, %v2412_v13  ;;  %v4802_v29 = vld [vmem:[#allocation6_spill] sm:$0xff] }
 0x7bd   : > { %v2436_v21 = vadd.f32 %v2432_v12, %v2413_v28  ;;  %v2473_v23 = vpop.permute.xlu1 %2472  ;;  %v2543_v51 = vsub.s32 0, %v2542_v36 }
 0x7be   : > { %v2454_v17 = vadd.f32 %v2452_v45, %v2435_v5  ;;  %v2476_v7 = vsel %vm2474_vm9, %v2471_v35, %v2473_v23 }
 0x7bf   : > { %v2455_v52 = vadd.f32 %v2453_v33, %v2436_v21  ;;  %v2500_v41 = vpop.permute.xlu0 %2499  ;;  %v2480_v16 = vsel %vm419_vm5, %v2476_v7, 0.0 }
 0x7c0   : > { %v2466_v47 = vadd.f32 %v2462_v61, %v2454_v17  ;;  %v2484_v59 = vmul.f32 %v2482_v57, %v2480_v16  ;;  %v2490_v3 = vmul.f32 %v2488_v26, %v2480_v16 }
 0x7c1   : > { %v2467_v2 = vadd.f32 %v2463_v25, %v2455_v52  ;;  %v2502_v22 = vpop.permute.xlu1 %2501 }
 0x7c2   : > { %v2485_v19 = vadd.f32 %v2483_v53, %v2466_v47  ;;  %v2494_v0 = vrot.slane %v2490_v3, 1  ;;  %v2506_v58 = vsel %vm2505_vm2, %v2500_v41, %v2502_v22 }
 0x7c3   : > { %v2504_v55 = vpop.permute.xlu0 %2503  ;;  %v2486_v24 = vadd.f32 %v2484_v59, %v2467_v2  ;;  %v2510_v42 = vsel %vm426_vm8, %v2506_v58, 0.0 }
 0x7c4   : > { %v2507_v35 = vsel %vm2505_vm2, %v2502_v22, %v2504_v55  ;;  %v2497_v62 = vadd.f32 %v2493_v9, %v2485_v19  ;;  %v2514_v50 = vmul.f32 %v2513_v37, %v2510_v42  ;;  %v2520_v6 = vmul.f32 %v2519_v30, %v2510_v42 }
 0x7c5   : > { %v2511_v63 = vsel %vm427_vm10, %v2507_v35, 0.0  ;;  %v2498_v27 = vadd.f32 %v2494_v0, %v2486_v24 }
 0x7c6   : > { %v2515_v31 = vmul.f32 %v2513_v37, %v2511_v63  ;;  %v2521_v49 = vmul.f32 %v2519_v30, %v2511_v63  ;;  %v2516_v44 = vadd.f32 %v2514_v50, %v2497_v62  ;;  %v2524_v10 = vrot.slane %v2520_v6, 1 }
 0x7c8   : > { %v2517_v8 = vadd.f32 %v2515_v31, %v2498_v27  ;;  %v2525_v11 = vrot.slane %v2521_v49, 1  ;;  %v2528_v39 = vadd.f32 %v2524_v10, %v2516_v44 }
 0x7ca   : > { %v2529_v38 = vadd.f32 %v2525_v11, %v2517_v8  ;;  %v2531_v32 = vadd.f32 %v2530_v54, %v2528_v39 }
 0x7cc   : > { %v2532_v43 = vadd.f32 %v2530_v54, %v2529_v38  ;;  %v2533_v1 = vmul.f32 0.5, %v2531_v32 }
 0x7ce   : > { %v2534_v34 = vmul.f32 0.5, %v2532_v43  ;;  %2889 = vtanh.f32 %v2533_v1 }
 0x7d0   : > { %2891 = vtanh.f32 %v2534_v34 }
 0x7d8   : > { %v2890_v20 = vpop.eup %2889 }
 0x7d9   : > { %v2537_v46 = vadd.f32 1.0, %v2890_v20 }
 0x7da   : > { %v2892_v56 = vpop.eup %2891 }
 0x7db   : > { %v2538_v14 = vadd.f32 1.0, %v2892_v56  ;;  %v2539_v13 = vmul.f32 0.5, %v2537_v46 }
 0x7dd   : > { %v2540_v28 = vmul.f32 0.5, %v2538_v14  ;;  %v2544_v40 = vrot.slane %v2539_v13, %v2543_v51 }
 0x7df   : > { %v2548_v4 = vrot.slane %v2540_v28, %v2543_v51  ;;  %v2549_v26 = vmul.f32 %v2544_v40, %v4802_v29 }
 0x7e1   : > { %v2550_v18 = vmul.f32 %v2548_v4, %v4803_v60  ;;  %v2553_v12 = vrot.slane %v2549_v26, 4 }
 0x7e3   : > { %v2554_v45 = vrot.slane %v2550_v18, 4  ;;  %2557 = vst [vmem:[%s3055_s25 + $0x10] ss:$-12 sps:$4 sm:$0xff] %v2553_v12  }
 0x7e5   : > { %2558 = vst [vmem:[%s3055_s25 + $0x18] ss:$-12 sps:$4 sm:$0xff] %v2554_v45  }
 0x7e6 PF: > { %s21_s11 = sadd.s32 1, %s2918_s11  }
 0x7e7   : > { %p18_p1 = scmp.ge.s32.totalorder %s21_s11, 4  }
 0x7e9   :  { %20 = sbr.rel (!%p18_p1) target bundleno = 3 (0x3), region = 91 }
 0x7f0   :  { %2582 = vsyncpa [#allocation4], 1 }
 0x7f1   :  { %2584 = vsyncpa [#allocation4 + $0x1], 1 }

</bundles_post_ra>
